<compile_context>
chip_gen: v6e
topology: v6e:2x2x1
jax: 0.10.0
libtpu: 0.0.40
codegen_flags: <defaults>
</compile_context>

<pallas_src>
import jax
import jax.numpy as jnp
from jax.experimental import pallas as pl
from jax.experimental.pallas import tpu as pltpu


# ---------------------------------------------------------------------------
# Fused kernel factory: embed -> mamba_1 -> mamba_2 -> + residual.
# ---------------------------------------------------------------------------
def _make_kernel(bblk, n_groups, d_model, d_inner, d_state, k_conv):
    bf16 = jnp.bfloat16
    f32 = jnp.float32

    def mamba_block(x_seq, wm_ref, cm_ref):
        """One Mamba block on a (bblk*n_groups, d_model) flattened slab."""
        # f32 constants slab: [A_T; conv_w; conv_b; dt_bias; D; pad]
        cm = cm_ref[...]
        a_t = cm[0:d_state, :]                               # (d_state, d_inner)
        cw = cm[d_state:d_state + k_conv, :]                 # (K, d_inner)
        cb = cm[d_state + k_conv:d_state + k_conv + 1, :]
        bdt = cm[d_state + k_conv + 1:d_state + k_conv + 2, :]
        drow = cm[d_state + k_conv + 2:d_state + k_conv + 3, :]

        # bf16 matmul-weight slab, carved with static row windows.
        r = 0
        w_in_x = wm_ref[r:r + d_model, 0:d_inner]; r += d_model
        w_in_z = wm_ref[r:r + d_model, 0:d_inner]; r += d_model
        w_dtc = wm_ref[r:r + d_inner, 0:d_inner]; r += d_inner
        w_b = wm_ref[r:r + d_inner, 0:d_state]; r += d_inner
        w_c = wm_ref[r:r + d_inner, 0:d_state]; r += d_inner
        w_out = wm_ref[r:r + d_inner, 0:d_model]

        # ---- input projection (flattened over Bblk*L rows) ----
        xb = x_seq.astype(bf16)
        x_in = jnp.dot(xb, w_in_x, preferred_element_type=f32)   # (R, d_inner)
        z = jnp.dot(xb, w_in_z, preferred_element_type=f32)      # (R, d_inner)

        # ---- causal depthwise conv along the modality axis, per batch row ----
        conv_rows = []
        for b in range(bblk):
            x_b = x_in[b * n_groups:(b + 1) * n_groups, :]
            xpad = jnp.concatenate(
                [jnp.zeros((k_conv - 1, d_inner), f32), x_b], axis=0)
            acc = xpad[0:n_groups, :] * cw[0:1, :]
            for k in range(1, k_conv):
                acc = acc + xpad[k:k + n_groups, :] * cw[k:k + 1, :]
            conv_rows.append(acc)
        x_conv = jax.nn.silu(jnp.concatenate(conv_rows, axis=0) + cb)

        # ---- input-dependent SSM parameters (flattened matmuls) ----
        xcb = x_conv.astype(bf16)
        dt = jax.nn.softplus(
            jnp.dot(xcb, w_dtc, preferred_element_type=f32) + bdt)   # (R, d_inner)
        b_seq = jnp.dot(xcb, w_b, preferred_element_type=f32)        # (R, d_state)
        c_seq = jnp.dot(xcb, w_c, preferred_element_type=f32)        # (R, d_state)
        u = dt * x_conv

        # ---- selective scan: state (d_state, d_inner) per batch row ----
        y_rows = []
        for b in range(bblk):
            sl = slice(b * n_groups, (b + 1) * n_groups)
            bt = b_seq[sl, :].T                                   # (d_state, L)
            ct = c_seq[sl, :].T                                   # (d_state, L)
            # hoisted off the recurrence chain: EUP exp + rank-1 outer products
            da = [jnp.exp(dt[b * n_groups + t:b * n_groups + t + 1, :] * a_t)
                  for t in range(n_groups)]
            dbu = [bt[:, t:t + 1] * u[b * n_groups + t:b * n_groups + t + 1, :]
                   for t in range(n_groups)]
            h = jnp.zeros((d_state, d_inner), f32)
            for t in range(n_groups):
                h = da[t] * h + dbu[t]                            # pure FMA chain
                # C contraction as elementwise mult + sublane reduce (no M=1 MXU)
                y_rows.append(
                    jnp.sum(ct[:, t:t + 1] * h, axis=0, keepdims=True))
        y = jnp.concatenate(y_rows, axis=0) + drow * x_conv       # (R, d_inner)

        # ---- SiLU gate + output projection ----
        y = y * jax.nn.silu(z)
        return jnp.dot(y.astype(bf16), w_out, preferred_element_type=f32)

    def kernel(xrep_ref, wemb_ref, bemb_ref, wm1_ref, cm1_ref,
               wm2_ref, cm2_ref, o_ref):
        # fused group-linear embed -> (Bblk*L, d_model)
        seq = (jnp.dot(xrep_ref[...].astype(bf16), wemb_ref[...],
                       preferred_element_type=f32) + bemb_ref[...])
        y1 = mamba_block(seq, wm1_ref, cm1_ref)     # mamba_1(x)
        y2 = mamba_block(y1, wm2_ref, cm2_ref)      # mamba_2(.)
        # TODO(synk): a lane-dense (bblk, L*D) store needs an in-kernel
        # (rows, D) -> (bblk, L*D) relayout; output is tiny so keep (rows, D).
        o_ref[...] = y2 + y1                        # residual add
    return kernel


# ---------------------------------------------------------------------------
# Wrapper: batch blocking, BlockSpecs, lane-dense-ish layout plumbing.
# ---------------------------------------------------------------------------
def _build_x_rep(x, feature_list, n_cols):
    """(B, F) -> (B*G, sum F_g) block-structured input for the fused embed."""
    parts = []
    off = 0
    for idx in feature_list:
        sz = len(idx)
        xg = x[:, jnp.asarray(idx)]
        parts.append(jnp.pad(xg, ((0, 0), (off, n_cols - off - sz))))
        off += sz
    return jnp.stack(parts, axis=1).reshape(x.shape[0] * len(feature_list),
                                            n_cols)


def multimodal_ssm_forward(x, feature_list, w_emb, b_emb, wm1, cm1, wm2, cm2,
                           d_model, d_inner, d_state, k_conv, num_blocks=2):
    batch = x.shape[0]
    n_groups = len(feature_list)
    ok = (num_blocks >= 1 and batch % num_blocks == 0
          and ((batch // num_blocks) * n_groups) % 8 == 0)
    nblk = num_blocks if ok else 1          # 2 parallel blocks -> v7x megacore
    bblk = batch // nblk
    rows = bblk * n_groups
    n_cols = w_emb.shape[0]

    x_rep = _build_x_rep(x, feature_list, n_cols)           # (B*G, C)
    b_rows = jnp.tile(b_emb, (bblk, 1))                      # (rows, d_model)

    kernel = _make_kernel(bblk, n_groups, d_model, d_inner, d_state, k_conv)

    def _const(a):
        return pl.BlockSpec(a.shape, lambda i: (0,) * a.ndim)

    out_flat = pl.pallas_call(
        kernel,
        out_shape=jax.ShapeDtypeStruct((batch * n_groups, d_model), jnp.float32),
        grid=(nblk,),
        in_specs=[
            pl.BlockSpec((rows, n_cols), lambda i: (i, 0)),
            _const(w_emb), _const(b_rows),
            _const(wm1), _const(cm1), _const(wm2), _const(cm2),
        ],
        out_specs=pl.BlockSpec((rows, d_model), lambda i: (i, 0)),
        compiler_params=pltpu.CompilerParams(
            dimension_semantics=("parallel",)),
    )(x_rep, w_emb, b_rows, wm1, cm1, wm2, cm2)
    return out_flat.reshape(batch, n_groups, d_model)        # free reshape


# ---------------------------------------------------------------------------
# Wrapper-side weight preparation (transposes / constants / slab packing).
# ---------------------------------------------------------------------------
def prepare_embed_params(feature_list, lin_ws, lin_bs):
    d_model = lin_ws[0].shape[0]
    sizes = [len(i) for i in feature_list]
    n_cols = sum(sizes)
    w = jnp.zeros((n_cols, d_model), jnp.float32)
    off = 0
    for sz, wg in zip(sizes, lin_ws):
        w = w.at[off:off + sz, :].set(wg.T)
        off += sz
    b = jnp.stack(lin_bs, axis=0)                            # (G, d_model)
    return w.astype(jnp.bfloat16), b.astype(jnp.float32)


def prepare_mamba_params(p):
    d_inner, dt_rank = p["dt_proj_w"].shape
    d_state = p["A_log"].shape[1]
    k_conv = p["conv_w"].shape[1]
    f32 = jnp.float32
    slab_w = max(d_inner, d_state, p["in_proj_w"].shape[1])

    def padw(a):
        a = a.astype(f32)
        return jnp.pad(a, ((0, 0), (0, slab_w - a.shape[1])))

    w_in_x = p["in_proj_w"][:d_inner].T
    w_in_z = p["in_proj_w"][d_inner:].T
    w_dtc = p["x_proj_w"][:dt_rank].T @ p["dt_proj_w"].T      # pre-combined
    w_b = p["x_proj_w"][dt_rank:dt_rank + d_state].T
    w_c = p["x_proj_w"][dt_rank + d_state:].T
    w_out = p["out_proj_w"].T
    wm = jnp.concatenate(
        [padw(w_in_x), padw(w_in_z), padw(w_dtc), padw(w_b), padw(w_c),
         padw(w_out)], axis=0).astype(jnp.bfloat16)           # bf16 matmul slab

    cm = jnp.concatenate([
        (-jnp.exp(p["A_log"])).T.astype(f32),                 # (d_state, d_inner)
        p["conv_w"].T.astype(f32),                            # (K, d_inner)
        p["conv_b"][None, :].astype(f32),
        p["dt_proj_b"][None, :].astype(f32),
        p["D"][None, :].astype(f32),
        jnp.zeros((1, d_inner), f32),                         # pad row
    ], axis=0)                                                # f32 consts slab
    return wm, cm


# ---------------------------------------------------------------------------
# Pure-JAX reference mirroring the PyTorch module (mamba_ssm slow path).
# ---------------------------------------------------------------------------
def mamba_ref(x, p):
    bsz, seq_len, _ = x.shape
    d_inner, k_conv = p["conv_w"].shape
    dt_rank = p["dt_proj_w"].shape[1]
    d_state = p["A_log"].shape[1]

    xz = jnp.einsum("bld,ed->ble", x, p["in_proj_w"])
    xi, z = xz[..., :d_inner], xz[..., d_inner:]

    xpad = jnp.pad(xi, ((0, 0), (k_conv - 1, 0), (0, 0)))
    xc = sum(xpad[:, k:k + seq_len, :] * p["conv_w"][:, k]
             for k in range(k_conv)) + p["conv_b"]
    xc = jax.nn.silu(xc)

    x_dbl = jnp.einsum("bld,ed->ble", xc, p["x_proj_w"])
    dt_in = x_dbl[..., :dt_rank]
    b_seq = x_dbl[..., dt_rank:dt_rank + d_state]
    c_seq = x_dbl[..., dt_rank + d_state:]
    dt = jax.nn.softplus(
        jnp.einsum("blr,dr->bld", dt_in, p["dt_proj_w"]) + p["dt_proj_b"])
    a_mat = -jnp.exp(p["A_log"])                              # (d_inner, d_state)

    h = jnp.zeros((bsz, d_inner, d_state), jnp.float32)
    ys = []
    for t in range(seq_len):
        da = jnp.exp(dt[:, t, :, None] * a_mat[None])
        dbx = dt[:, t, :, None] * b_seq[:, t, None, :] * xc[:, t, :, None]
        h = da * h + dbx
        ys.append(jnp.einsum("bds,bs->bd", h, c_seq[:, t]))
    y = jnp.stack(ys, axis=1) + xc * p["D"]
    y = y * jax.nn.silu(z)
    return jnp.einsum("bld,ed->ble", y, p["out_proj_w"])


def reference_forward(x, feature_list, lin_ws, lin_bs, p1, p2):
    feats = [x[:, jnp.asarray(idx)] @ w.T + b
             for idx, w, b in zip(feature_list, lin_ws, lin_bs)]
    seq = jnp.stack(feats, axis=1)                            # (B, G, D)
    seq = mamba_ref(seq, p1)                                  # mamba_1
    return mamba_ref(seq, p2) + seq                           # mamba_2 + residual


# ---------------------------------------------------------------------------
if __name__ == "__main__":
    dim_embedding = 32
    d_state, d_conv, expand = 64, 4, 2
    d_inner = expand * dim_embedding
    dt_rank = -(-dim_embedding // 16)            # ceil(d_model / 16) = 2

    feature_list = [[0, 1, 2, 3], [4, 5, 6], [7, 8, 9, 10, 11], [12, 13, 14, 15]]
    n_features = 16
    num_groups = len(feature_list)
    batch = 4

    key = jax.random.PRNGKey(0)
    keys = iter(jax.random.split(key, 32))

    x_in = jax.random.normal(next(keys), (batch, n_features), jnp.float32)

    lin_ws = [0.3 * jax.random.normal(next(keys), (dim_embedding, len(idx)), jnp.float32)
              for idx in feature_list]
    lin_bs = [0.1 * jax.random.normal(next(keys), (dim_embedding,), jnp.float32)
              for _ in feature_list]

    def make_mamba_raw(kit):
        return dict(
            in_proj_w=0.2 * jax.random.normal(next(kit), (2 * d_inner, dim_embedding), jnp.float32),
            conv_w=0.3 * jax.random.normal(next(kit), (d_inner, d_conv), jnp.float32),
            conv_b=0.1 * jax.random.normal(next(kit), (d_inner,), jnp.float32),
            x_proj_w=0.2 * jax.random.normal(next(kit), (dt_rank + 2 * d_state, d_inner), jnp.float32),
            dt_proj_w=0.5 * jax.random.normal(next(kit), (d_inner, dt_rank), jnp.float32),
            dt_proj_b=0.1 * jax.random.normal(next(kit), (d_inner,), jnp.float32) - 4.0,
            A_log=jnp.log(0.5 + 4.0 * jax.random.uniform(next(kit), (d_inner, d_state), jnp.float32)),
            D=jnp.ones((d_inner,), jnp.float32),
            out_proj_w=0.2 * jax.random.normal(next(kit), (dim_embedding, d_inner), jnp.float32),
        )

    p1 = make_mamba_raw(keys)
    p2 = make_mamba_raw(keys)

    w_emb, b_emb = prepare_embed_params(feature_list, lin_ws, lin_bs)
    wm1, cm1 = prepare_mamba_params(p1)
    wm2, cm2 = prepare_mamba_params(p2)

    out = multimodal_ssm_forward(
        x_in, feature_list, w_emb, b_emb, wm1, cm1, wm2, cm2,
        dim_embedding, d_inner, d_state, d_conv, num_blocks=2)
    out = jax.block_until_ready(out)

    ref = reference_forward(x_in, feature_list, lin_ws, lin_bs, p1, p2)
    ref = jax.block_until_ready(ref)

    assert out.shape == (batch, num_groups, dim_embedding)
    max_err = jnp.max(jnp.abs(out - ref))
    # bf16 MXU operands (f32 accumulate) -> relaxed tolerance vs f32 reference.
    assert jnp.allclose(out, ref, atol=2e-2, rtol=2e-2), (
        f"mismatch vs reference, max abs err = {max_err}")

    print("KERNEL_OK")
</pallas_src>

<mosaic_0001>
module attributes {stable_mosaic.version = 11 : i64} {
  func.func @kernel(%arg0: i32, %arg1: memref<8x16xf32, #tpu.memory_space<vmem>>, %arg2: memref<16x32xbf16, #tpu.memory_space<vmem>>, %arg3: memref<8x32xf32, #tpu.memory_space<vmem>>, %arg4: memref<320x64xbf16, #tpu.memory_space<vmem>>, %arg5: memref<72x64xf32, #tpu.memory_space<vmem>>, %arg6: memref<320x64xbf16, #tpu.memory_space<vmem>>, %arg7: memref<72x64xf32, #tpu.memory_space<vmem>>, %arg8: memref<8x32xf32, #tpu.memory_space<vmem>>) attributes {dimension_semantics = [#tpu.dimension_semantics<parallel>], iteration_bounds = array<i64: 2>, scalar_prefetch = 0 : i64, scratch_operands = 0 : i64, tpu.core_type = #tpu.core_type<tc>, window_params = [{transform_indices = @transform_0, window_bounds = array<i64: 8, 16>}, {pipeline_mode = #tpu.pipeline_mode<synchronous>, transform_indices = @transform_1, window_bounds = array<i64: 16, 32>}, {pipeline_mode = #tpu.pipeline_mode<synchronous>, transform_indices = @transform_2, window_bounds = array<i64: 8, 32>}, {pipeline_mode = #tpu.pipeline_mode<synchronous>, transform_indices = @transform_3, window_bounds = array<i64: 320, 64>}, {pipeline_mode = #tpu.pipeline_mode<synchronous>, transform_indices = @transform_4, window_bounds = array<i64: 72, 64>}, {pipeline_mode = #tpu.pipeline_mode<synchronous>, transform_indices = @transform_5, window_bounds = array<i64: 320, 64>}, {pipeline_mode = #tpu.pipeline_mode<synchronous>, transform_indices = @transform_6, window_bounds = array<i64: 72, 64>}, {transform_indices = @transform_7, window_bounds = array<i64: 8, 32>}]} {
    %c0 = arith.constant 0 : index
    %c0_0 = arith.constant 0 : index
    %0 = vector.load %arg1[%c0, %c0_0] : memref<8x16xf32, #tpu.memory_space<vmem>>, vector<8x16xf32>
    %1 = arith.truncf %0 : vector<8x16xf32> to vector<8x16xbf16>
    %c0_1 = arith.constant 0 : index
    %c0_2 = arith.constant 0 : index
    %2 = vector.load %arg2[%c0_1, %c0_2] : memref<16x32xbf16, #tpu.memory_space<vmem>>, vector<16x32xbf16>
    %cst = arith.constant dense<0.000000e+00> : vector<8x32xf32>
    %3 = tpu.matmul %1, %2, %cst {dimension_numbers = #tpu.dot_dimension_numbers<[1], [0], [0], [1], [0, 0, 1, 1], [], []>} : vector<8x16xbf16>, vector<16x32xbf16>, vector<8x32xf32> -> vector<8x32xf32>
    %c0_3 = arith.constant 0 : index
    %c0_4 = arith.constant 0 : index
    %4 = vector.load %arg3[%c0_3, %c0_4] : memref<8x32xf32, #tpu.memory_space<vmem>>, vector<8x32xf32>
    %5 = arith.addf %3, %4 : vector<8x32xf32>
    %c0_5 = arith.constant 0 : index
    %c0_6 = arith.constant 0 : index
    %6 = vector.load %arg5[%c0_5, %c0_6] : memref<72x64xf32, #tpu.memory_space<vmem>>, vector<72x64xf32>
    %7 = vector.extract_strided_slice %6 {offsets = [0, 0], sizes = [64, 64], strides = [1, 1]} : vector<72x64xf32> to vector<64x64xf32>
    %8 = vector.extract_strided_slice %6 {offsets = [64, 0], sizes = [4, 64], strides = [1, 1]} : vector<72x64xf32> to vector<4x64xf32>
    %9 = vector.extract_strided_slice %6 {offsets = [68, 0], sizes = [1, 64], strides = [1, 1]} : vector<72x64xf32> to vector<1x64xf32>
    %10 = vector.extract_strided_slice %6 {offsets = [69, 0], sizes = [1, 64], strides = [1, 1]} : vector<72x64xf32> to vector<1x64xf32>
    %11 = vector.extract_strided_slice %6 {offsets = [70, 0], sizes = [1, 64], strides = [1, 1]} : vector<72x64xf32> to vector<1x64xf32>
    %c0_7 = arith.constant 0 : index
    %c0_8 = arith.constant 0 : index
    %12 = vector.load %arg4[%c0_7, %c0_8] : memref<320x64xbf16, #tpu.memory_space<vmem>>, vector<32x64xbf16>
    %c32 = arith.constant 32 : index
    %c0_9 = arith.constant 0 : index
    %13 = vector.load %arg4[%c32, %c0_9] : memref<320x64xbf16, #tpu.memory_space<vmem>>, vector<32x64xbf16>
    %c64 = arith.constant 64 : index
    %c0_10 = arith.constant 0 : index
    %14 = vector.load %arg4[%c64, %c0_10] : memref<320x64xbf16, #tpu.memory_space<vmem>>, vector<64x64xbf16>
    %c128 = arith.constant 128 : index
    %c0_11 = arith.constant 0 : index
    %15 = vector.load %arg4[%c128, %c0_11] : memref<320x64xbf16, #tpu.memory_space<vmem>>, vector<64x64xbf16>
    %c192 = arith.constant 192 : index
    %c0_12 = arith.constant 0 : index
    %16 = vector.load %arg4[%c192, %c0_12] : memref<320x64xbf16, #tpu.memory_space<vmem>>, vector<64x64xbf16>
    %c256 = arith.constant 256 : index
    %c0_13 = arith.constant 0 : index
    %17 = vector.load %arg4[%c256, %c0_13] : memref<320x64xbf16, #tpu.memory_space<vmem>>, vector<64x32xbf16>
    %18 = arith.truncf %5 : vector<8x32xf32> to vector<8x32xbf16>
    %cst_14 = arith.constant dense<0.000000e+00> : vector<8x64xf32>
    %19 = tpu.matmul %18, %12, %cst_14 {dimension_numbers = #tpu.dot_dimension_numbers<[1], [0], [0], [1], [0, 0, 1, 1], [], []>} : vector<8x32xbf16>, vector<32x64xbf16>, vector<8x64xf32> -> vector<8x64xf32>
    %cst_15 = arith.constant dense<0.000000e+00> : vector<8x64xf32>
    %20 = tpu.matmul %18, %13, %cst_15 {dimension_numbers = #tpu.dot_dimension_numbers<[1], [0], [0], [1], [0, 0, 1, 1], [], []>} : vector<8x32xbf16>, vector<32x64xbf16>, vector<8x64xf32> -> vector<8x64xf32>
    %21 = vector.extract_strided_slice %19 {offsets = [0, 0], sizes = [4, 64], strides = [1, 1]} : vector<8x64xf32> to vector<4x64xf32>
    %cst_16 = arith.constant 0.000000e+00 : f32
    %22 = vector.broadcast %cst_16 : f32 to vector<3x64xf32>
    %23 = tpu.concatenate %22, %21 in 0 : vector<3x64xf32>, vector<4x64xf32> -> vector<7x64xf32>
    %24 = vector.extract_strided_slice %23 {offsets = [0, 0], sizes = [4, 64], strides = [1, 1]} : vector<7x64xf32> to vector<4x64xf32>
    %25 = vector.extract_strided_slice %8 {offsets = [0, 0], sizes = [1, 64], strides = [1, 1]} : vector<4x64xf32> to vector<1x64xf32>
    %26 = vector.broadcast %25 : vector<1x64xf32> to vector<4x64xf32>
    %27 = arith.mulf %24, %26 : vector<4x64xf32>
    %28 = vector.extract_strided_slice %23 {offsets = [1, 0], sizes = [4, 64], strides = [1, 1]} : vector<7x64xf32> to vector<4x64xf32>
    %29 = vector.extract_strided_slice %8 {offsets = [1, 0], sizes = [1, 64], strides = [1, 1]} : vector<4x64xf32> to vector<1x64xf32>
    %30 = vector.broadcast %29 : vector<1x64xf32> to vector<4x64xf32>
    %31 = arith.mulf %28, %30 : vector<4x64xf32>
    %32 = arith.addf %27, %31 : vector<4x64xf32>
    %33 = vector.extract_strided_slice %23 {offsets = [2, 0], sizes = [4, 64], strides = [1, 1]} : vector<7x64xf32> to vector<4x64xf32>
    %34 = vector.extract_strided_slice %8 {offsets = [2, 0], sizes = [1, 64], strides = [1, 1]} : vector<4x64xf32> to vector<1x64xf32>
    %35 = vector.broadcast %34 : vector<1x64xf32> to vector<4x64xf32>
    %36 = arith.mulf %33, %35 : vector<4x64xf32>
    %37 = arith.addf %32, %36 : vector<4x64xf32>
    %38 = vector.extract_strided_slice %23 {offsets = [3, 0], sizes = [4, 64], strides = [1, 1]} : vector<7x64xf32> to vector<4x64xf32>
    %39 = vector.extract_strided_slice %8 {offsets = [3, 0], sizes = [1, 64], strides = [1, 1]} : vector<4x64xf32> to vector<1x64xf32>
    %40 = vector.broadcast %39 : vector<1x64xf32> to vector<4x64xf32>
    %41 = arith.mulf %38, %40 : vector<4x64xf32>
    %42 = arith.addf %37, %41 : vector<4x64xf32>
    %43 = vector.extract_strided_slice %19 {offsets = [4, 0], sizes = [4, 64], strides = [1, 1]} : vector<8x64xf32> to vector<4x64xf32>
    %cst_17 = arith.constant 0.000000e+00 : f32
    %44 = vector.broadcast %cst_17 : f32 to vector<3x64xf32>
    %45 = tpu.concatenate %44, %43 in 0 : vector<3x64xf32>, vector<4x64xf32> -> vector<7x64xf32>
    %46 = vector.extract_strided_slice %45 {offsets = [0, 0], sizes = [4, 64], strides = [1, 1]} : vector<7x64xf32> to vector<4x64xf32>
    %47 = vector.extract_strided_slice %8 {offsets = [0, 0], sizes = [1, 64], strides = [1, 1]} : vector<4x64xf32> to vector<1x64xf32>
    %48 = vector.broadcast %47 : vector<1x64xf32> to vector<4x64xf32>
    %49 = arith.mulf %46, %48 : vector<4x64xf32>
    %50 = vector.extract_strided_slice %45 {offsets = [1, 0], sizes = [4, 64], strides = [1, 1]} : vector<7x64xf32> to vector<4x64xf32>
    %51 = vector.extract_strided_slice %8 {offsets = [1, 0], sizes = [1, 64], strides = [1, 1]} : vector<4x64xf32> to vector<1x64xf32>
    %52 = vector.broadcast %51 : vector<1x64xf32> to vector<4x64xf32>
    %53 = arith.mulf %50, %52 : vector<4x64xf32>
    %54 = arith.addf %49, %53 : vector<4x64xf32>
    %55 = vector.extract_strided_slice %45 {offsets = [2, 0], sizes = [4, 64], strides = [1, 1]} : vector<7x64xf32> to vector<4x64xf32>
    %56 = vector.extract_strided_slice %8 {offsets = [2, 0], sizes = [1, 64], strides = [1, 1]} : vector<4x64xf32> to vector<1x64xf32>
    %57 = vector.broadcast %56 : vector<1x64xf32> to vector<4x64xf32>
    %58 = arith.mulf %55, %57 : vector<4x64xf32>
    %59 = arith.addf %54, %58 : vector<4x64xf32>
    %60 = vector.extract_strided_slice %45 {offsets = [3, 0], sizes = [4, 64], strides = [1, 1]} : vector<7x64xf32> to vector<4x64xf32>
    %61 = vector.extract_strided_slice %8 {offsets = [3, 0], sizes = [1, 64], strides = [1, 1]} : vector<4x64xf32> to vector<1x64xf32>
    %62 = vector.broadcast %61 : vector<1x64xf32> to vector<4x64xf32>
    %63 = arith.mulf %60, %62 : vector<4x64xf32>
    %64 = arith.addf %59, %63 : vector<4x64xf32>
    %65 = tpu.concatenate %42, %64 in 0 : vector<4x64xf32>, vector<4x64xf32> -> vector<8x64xf32>
    %66 = vector.broadcast %9 : vector<1x64xf32> to vector<8x64xf32>
    %67 = arith.addf %65, %66 : vector<8x64xf32>
    %68 = arith.negf %67 : vector<8x64xf32>
    %69 = math.exp %68 : vector<8x64xf32>
    %cst_18 = arith.constant 1.000000e+00 : f32
    %70 = vector.broadcast %cst_18 : f32 to vector<8x64xf32>
    %71 = arith.addf %70, %69 : vector<8x64xf32>
    %72 = arith.divf %70, %71 : vector<8x64xf32>
    %73 = arith.mulf %67, %72 : vector<8x64xf32>
    %74 = arith.truncf %73 : vector<8x64xf32> to vector<8x64xbf16>
    %cst_19 = arith.constant dense<0.000000e+00> : vector<8x64xf32>
    %75 = tpu.matmul %74, %14, %cst_19 {dimension_numbers = #tpu.dot_dimension_numbers<[1], [0], [0], [1], [0, 0, 1, 1], [], []>} : vector<8x64xbf16>, vector<64x64xbf16>, vector<8x64xf32> -> vector<8x64xf32>
    %76 = vector.broadcast %10 : vector<1x64xf32> to vector<8x64xf32>
    %77 = arith.addf %75, %76 : vector<8x64xf32>
    %cst_20 = arith.constant 0.000000e+00 : f32
    %78 = vector.broadcast %cst_20 : f32 to vector<8x64xf32>
    %79 = arith.maximumf %77, %78 : vector<8x64xf32>
    %80 = vector.broadcast %cst_20 : f32 to vector<8x64xf32>
    %81 = arith.subf %77, %80 : vector<8x64xf32>
    %82 = arith.cmpf one, %81, %81 : vector<8x64xf32>
    %83 = vector.broadcast %cst_20 : f32 to vector<8x64xf32>
    %84 = arith.addf %77, %83 : vector<8x64xf32>
    %85 = math.absf %81 : vector<8x64xf32>
    %cst_21 = arith.constant 0.000000e+00 : f32
    %86 = vector.broadcast %cst_21 : f32 to vector<8x64xf32>
    %87 = arith.subf %86, %85 : vector<8x64xf32>
    %88 = math.exp %87 : vector<8x64xf32>
    %89 = math.log1p %88 : vector<8x64xf32>
    %90 = arith.addf %79, %89 : vector<8x64xf32>
    %91 = arith.select %82, %84, %90 : vector<8x64xi1>, vector<8x64xf32>
    %cst_22 = arith.constant dense<0.000000e+00> : vector<8x64xf32>
    %92 = tpu.matmul %74, %15, %cst_22 {dimension_numbers = #tpu.dot_dimension_numbers<[1], [0], [0], [1], [0, 0, 1, 1], [], []>} : vector<8x64xbf16>, vector<64x64xbf16>, vector<8x64xf32> -> vector<8x64xf32>
    %cst_23 = arith.constant dense<0.000000e+00> : vector<8x64xf32>
    %93 = tpu.matmul %74, %16, %cst_23 {dimension_numbers = #tpu.dot_dimension_numbers<[1], [0], [0], [1], [0, 0, 1, 1], [], []>} : vector<8x64xbf16>, vector<64x64xbf16>, vector<8x64xf32> -> vector<8x64xf32>
    %94 = arith.mulf %91, %73 : vector<8x64xf32>
    %95 = vector.extract_strided_slice %92 {offsets = [0, 0], sizes = [4, 64], strides = [1, 1]} : vector<8x64xf32> to vector<4x64xf32>
    %96 = tpu.transpose %95, [1, 0] : vector<4x64xf32> -> vector<64x4xf32>
    %97 = vector.extract_strided_slice %93 {offsets = [0, 0], sizes = [4, 64], strides = [1, 1]} : vector<8x64xf32> to vector<4x64xf32>
    %98 = tpu.transpose %97, [1, 0] : vector<4x64xf32> -> vector<64x4xf32>
    %99 = vector.extract_strided_slice %91 {offsets = [0, 0], sizes = [1, 64], strides = [1, 1]} : vector<8x64xf32> to vector<1x64xf32>
    %100 = vector.broadcast %99 : vector<1x64xf32> to vector<64x64xf32>
    %101 = arith.mulf %100, %7 : vector<64x64xf32>
    %102 = math.exp %101 : vector<64x64xf32>
    %103 = vector.extract_strided_slice %91 {offsets = [1, 0], sizes = [1, 64], strides = [1, 1]} : vector<8x64xf32> to vector<1x64xf32>
    %104 = vector.broadcast %103 : vector<1x64xf32> to vector<64x64xf32>
    %105 = arith.mulf %104, %7 : vector<64x64xf32>
    %106 = math.exp %105 : vector<64x64xf32>
    %107 = vector.extract_strided_slice %91 {offsets = [2, 0], sizes = [1, 64], strides = [1, 1]} : vector<8x64xf32> to vector<1x64xf32>
    %108 = vector.broadcast %107 : vector<1x64xf32> to vector<64x64xf32>
    %109 = arith.mulf %108, %7 : vector<64x64xf32>
    %110 = math.exp %109 : vector<64x64xf32>
    %111 = vector.extract_strided_slice %91 {offsets = [3, 0], sizes = [1, 64], strides = [1, 1]} : vector<8x64xf32> to vector<1x64xf32>
    %112 = vector.broadcast %111 : vector<1x64xf32> to vector<64x64xf32>
    %113 = arith.mulf %112, %7 : vector<64x64xf32>
    %114 = math.exp %113 : vector<64x64xf32>
    %115 = vector.extract_strided_slice %96 {offsets = [0, 0], sizes = [64, 1], strides = [1, 1]} : vector<64x4xf32> to vector<64x1xf32>
    %116 = vector.extract_strided_slice %94 {offsets = [0, 0], sizes = [1, 64], strides = [1, 1]} : vector<8x64xf32> to vector<1x64xf32>
    %117 = vector.broadcast %115 : vector<64x1xf32> to vector<64x64xf32>
    %118 = vector.broadcast %116 : vector<1x64xf32> to vector<64x64xf32>
    %119 = arith.mulf %117, %118 : vector<64x64xf32>
    %120 = vector.extract_strided_slice %96 {offsets = [0, 1], sizes = [64, 1], strides = [1, 1]} : vector<64x4xf32> to vector<64x1xf32>
    %121 = vector.extract_strided_slice %94 {offsets = [1, 0], sizes = [1, 64], strides = [1, 1]} : vector<8x64xf32> to vector<1x64xf32>
    %122 = vector.broadcast %120 : vector<64x1xf32> to vector<64x64xf32>
    %123 = vector.broadcast %121 : vector<1x64xf32> to vector<64x64xf32>
    %124 = arith.mulf %122, %123 : vector<64x64xf32>
    %125 = vector.extract_strided_slice %96 {offsets = [0, 2], sizes = [64, 1], strides = [1, 1]} : vector<64x4xf32> to vector<64x1xf32>
    %126 = vector.extract_strided_slice %94 {offsets = [2, 0], sizes = [1, 64], strides = [1, 1]} : vector<8x64xf32> to vector<1x64xf32>
    %127 = vector.broadcast %125 : vector<64x1xf32> to vector<64x64xf32>
    %128 = vector.broadcast %126 : vector<1x64xf32> to vector<64x64xf32>
    %129 = arith.mulf %127, %128 : vector<64x64xf32>
    %130 = vector.extract_strided_slice %96 {offsets = [0, 3], sizes = [64, 1], strides = [1, 1]} : vector<64x4xf32> to vector<64x1xf32>
    %131 = vector.extract_strided_slice %94 {offsets = [3, 0], sizes = [1, 64], strides = [1, 1]} : vector<8x64xf32> to vector<1x64xf32>
    %132 = vector.broadcast %130 : vector<64x1xf32> to vector<64x64xf32>
    %133 = vector.broadcast %131 : vector<1x64xf32> to vector<64x64xf32>
    %134 = arith.mulf %132, %133 : vector<64x64xf32>
    %cst_24 = arith.constant 0.000000e+00 : f32
    %135 = vector.broadcast %cst_24 : f32 to vector<64x64xf32>
    %136 = arith.mulf %102, %135 : vector<64x64xf32>
    %137 = arith.addf %136, %119 : vector<64x64xf32>
    %138 = vector.extract_strided_slice %98 {offsets = [0, 0], sizes = [64, 1], strides = [1, 1]} : vector<64x4xf32> to vector<64x1xf32>
    %139 = vector.broadcast %138 : vector<64x1xf32> to vector<64x64xf32>
    %140 = arith.mulf %139, %137 : vector<64x64xf32>
    %cst_25 = arith.constant dense<0.000000e+00> : vector<64xf32>
    %141 = vector.multi_reduction <add>, %140, %cst_25 [0] : vector<64x64xf32> to vector<64xf32>
    %142 = vector.shape_cast %141 : vector<64xf32> to vector<1x64xf32>
    %143 = arith.mulf %106, %137 : vector<64x64xf32>
    %144 = arith.addf %143, %124 : vector<64x64xf32>
    %145 = vector.extract_strided_slice %98 {offsets = [0, 1], sizes = [64, 1], strides = [1, 1]} : vector<64x4xf32> to vector<64x1xf32>
    %146 = vector.broadcast %145 : vector<64x1xf32> to vector<64x64xf32>
    %147 = arith.mulf %146, %144 : vector<64x64xf32>
    %cst_26 = arith.constant dense<0.000000e+00> : vector<64xf32>
    %148 = vector.multi_reduction <add>, %147, %cst_26 [0] : vector<64x64xf32> to vector<64xf32>
    %149 = vector.shape_cast %148 : vector<64xf32> to vector<1x64xf32>
    %150 = arith.mulf %110, %144 : vector<64x64xf32>
    %151 = arith.addf %150, %129 : vector<64x64xf32>
    %152 = vector.extract_strided_slice %98 {offsets = [0, 2], sizes = [64, 1], strides = [1, 1]} : vector<64x4xf32> to vector<64x1xf32>
    %153 = vector.broadcast %152 : vector<64x1xf32> to vector<64x64xf32>
    %154 = arith.mulf %153, %151 : vector<64x64xf32>
    %cst_27 = arith.constant dense<0.000000e+00> : vector<64xf32>
    %155 = vector.multi_reduction <add>, %154, %cst_27 [0] : vector<64x64xf32> to vector<64xf32>
    %156 = vector.shape_cast %155 : vector<64xf32> to vector<1x64xf32>
    %157 = arith.mulf %114, %151 : vector<64x64xf32>
    %158 = arith.addf %157, %134 : vector<64x64xf32>
    %159 = vector.extract_strided_slice %98 {offsets = [0, 3], sizes = [64, 1], strides = [1, 1]} : vector<64x4xf32> to vector<64x1xf32>
    %160 = vector.broadcast %159 : vector<64x1xf32> to vector<64x64xf32>
    %161 = arith.mulf %160, %158 : vector<64x64xf32>
    %cst_28 = arith.constant dense<0.000000e+00> : vector<64xf32>
    %162 = vector.multi_reduction <add>, %161, %cst_28 [0] : vector<64x64xf32> to vector<64xf32>
    %163 = vector.shape_cast %162 : vector<64xf32> to vector<1x64xf32>
    %164 = vector.extract_strided_slice %92 {offsets = [4, 0], sizes = [4, 64], strides = [1, 1]} : vector<8x64xf32> to vector<4x64xf32>
    %165 = tpu.transpose %164, [1, 0] : vector<4x64xf32> -> vector<64x4xf32>
    %166 = vector.extract_strided_slice %93 {offsets = [4, 0], sizes = [4, 64], strides = [1, 1]} : vector<8x64xf32> to vector<4x64xf32>
    %167 = tpu.transpose %166, [1, 0] : vector<4x64xf32> -> vector<64x4xf32>
    %168 = vector.extract_strided_slice %91 {offsets = [4, 0], sizes = [1, 64], strides = [1, 1]} : vector<8x64xf32> to vector<1x64xf32>
    %169 = vector.broadcast %168 : vector<1x64xf32> to vector<64x64xf32>
    %170 = arith.mulf %169, %7 : vector<64x64xf32>
    %171 = math.exp %170 : vector<64x64xf32>
    %172 = vector.extract_strided_slice %91 {offsets = [5, 0], sizes = [1, 64], strides = [1, 1]} : vector<8x64xf32> to vector<1x64xf32>
    %173 = vector.broadcast %172 : vector<1x64xf32> to vector<64x64xf32>
    %174 = arith.mulf %173, %7 : vector<64x64xf32>
    %175 = math.exp %174 : vector<64x64xf32>
    %176 = vector.extract_strided_slice %91 {offsets = [6, 0], sizes = [1, 64], strides = [1, 1]} : vector<8x64xf32> to vector<1x64xf32>
    %177 = vector.broadcast %176 : vector<1x64xf32> to vector<64x64xf32>
    %178 = arith.mulf %177, %7 : vector<64x64xf32>
    %179 = math.exp %178 : vector<64x64xf32>
    %180 = vector.extract_strided_slice %91 {offsets = [7, 0], sizes = [1, 64], strides = [1, 1]} : vector<8x64xf32> to vector<1x64xf32>
    %181 = vector.broadcast %180 : vector<1x64xf32> to vector<64x64xf32>
    %182 = arith.mulf %181, %7 : vector<64x64xf32>
    %183 = math.exp %182 : vector<64x64xf32>
    %184 = vector.extract_strided_slice %165 {offsets = [0, 0], sizes = [64, 1], strides = [1, 1]} : vector<64x4xf32> to vector<64x1xf32>
    %185 = vector.extract_strided_slice %94 {offsets = [4, 0], sizes = [1, 64], strides = [1, 1]} : vector<8x64xf32> to vector<1x64xf32>
    %186 = vector.broadcast %184 : vector<64x1xf32> to vector<64x64xf32>
    %187 = vector.broadcast %185 : vector<1x64xf32> to vector<64x64xf32>
    %188 = arith.mulf %186, %187 : vector<64x64xf32>
    %189 = vector.extract_strided_slice %165 {offsets = [0, 1], sizes = [64, 1], strides = [1, 1]} : vector<64x4xf32> to vector<64x1xf32>
    %190 = vector.extract_strided_slice %94 {offsets = [5, 0], sizes = [1, 64], strides = [1, 1]} : vector<8x64xf32> to vector<1x64xf32>
    %191 = vector.broadcast %189 : vector<64x1xf32> to vector<64x64xf32>
    %192 = vector.broadcast %190 : vector<1x64xf32> to vector<64x64xf32>
    %193 = arith.mulf %191, %192 : vector<64x64xf32>
    %194 = vector.extract_strided_slice %165 {offsets = [0, 2], sizes = [64, 1], strides = [1, 1]} : vector<64x4xf32> to vector<64x1xf32>
    %195 = vector.extract_strided_slice %94 {offsets = [6, 0], sizes = [1, 64], strides = [1, 1]} : vector<8x64xf32> to vector<1x64xf32>
    %196 = vector.broadcast %194 : vector<64x1xf32> to vector<64x64xf32>
    %197 = vector.broadcast %195 : vector<1x64xf32> to vector<64x64xf32>
    %198 = arith.mulf %196, %197 : vector<64x64xf32>
    %199 = vector.extract_strided_slice %165 {offsets = [0, 3], sizes = [64, 1], strides = [1, 1]} : vector<64x4xf32> to vector<64x1xf32>
    %200 = vector.extract_strided_slice %94 {offsets = [7, 0], sizes = [1, 64], strides = [1, 1]} : vector<8x64xf32> to vector<1x64xf32>
    %201 = vector.broadcast %199 : vector<64x1xf32> to vector<64x64xf32>
    %202 = vector.broadcast %200 : vector<1x64xf32> to vector<64x64xf32>
    %203 = arith.mulf %201, %202 : vector<64x64xf32>
    %cst_29 = arith.constant 0.000000e+00 : f32
    %204 = vector.broadcast %cst_29 : f32 to vector<64x64xf32>
    %205 = arith.mulf %171, %204 : vector<64x64xf32>
    %206 = arith.addf %205, %188 : vector<64x64xf32>
    %207 = vector.extract_strided_slice %167 {offsets = [0, 0], sizes = [64, 1], strides = [1, 1]} : vector<64x4xf32> to vector<64x1xf32>
    %208 = vector.broadcast %207 : vector<64x1xf32> to vector<64x64xf32>
    %209 = arith.mulf %208, %206 : vector<64x64xf32>
    %cst_30 = arith.constant dense<0.000000e+00> : vector<64xf32>
    %210 = vector.multi_reduction <add>, %209, %cst_30 [0] : vector<64x64xf32> to vector<64xf32>
    %211 = vector.shape_cast %210 : vector<64xf32> to vector<1x64xf32>
    %212 = arith.mulf %175, %206 : vector<64x64xf32>
    %213 = arith.addf %212, %193 : vector<64x64xf32>
    %214 = vector.extract_strided_slice %167 {offsets = [0, 1], sizes = [64, 1], strides = [1, 1]} : vector<64x4xf32> to vector<64x1xf32>
    %215 = vector.broadcast %214 : vector<64x1xf32> to vector<64x64xf32>
    %216 = arith.mulf %215, %213 : vector<64x64xf32>
    %cst_31 = arith.constant dense<0.000000e+00> : vector<64xf32>
    %217 = vector.multi_reduction <add>, %216, %cst_31 [0] : vector<64x64xf32> to vector<64xf32>
    %218 = vector.shape_cast %217 : vector<64xf32> to vector<1x64xf32>
    %219 = arith.mulf %179, %213 : vector<64x64xf32>
    %220 = arith.addf %219, %198 : vector<64x64xf32>
    %221 = vector.extract_strided_slice %167 {offsets = [0, 2], sizes = [64, 1], strides = [1, 1]} : vector<64x4xf32> to vector<64x1xf32>
    %222 = vector.broadcast %221 : vector<64x1xf32> to vector<64x64xf32>
    %223 = arith.mulf %222, %220 : vector<64x64xf32>
    %cst_32 = arith.constant dense<0.000000e+00> : vector<64xf32>
    %224 = vector.multi_reduction <add>, %223, %cst_32 [0] : vector<64x64xf32> to vector<64xf32>
    %225 = vector.shape_cast %224 : vector<64xf32> to vector<1x64xf32>
    %226 = arith.mulf %183, %220 : vector<64x64xf32>
    %227 = arith.addf %226, %203 : vector<64x64xf32>
    %228 = vector.extract_strided_slice %167 {offsets = [0, 3], sizes = [64, 1], strides = [1, 1]} : vector<64x4xf32> to vector<64x1xf32>
    %229 = vector.broadcast %228 : vector<64x1xf32> to vector<64x64xf32>
    %230 = arith.mulf %229, %227 : vector<64x64xf32>
    %cst_33 = arith.constant dense<0.000000e+00> : vector<64xf32>
    %231 = vector.multi_reduction <add>, %230, %cst_33 [0] : vector<64x64xf32> to vector<64xf32>
    %232 = vector.shape_cast %231 : vector<64xf32> to vector<1x64xf32>
    %233 = tpu.concatenate %142, %149, %156, %163, %211, %218, %225, %232 in 0 : vector<1x64xf32>, vector<1x64xf32>, vector<1x64xf32>, vector<1x64xf32>, vector<1x64xf32>, vector<1x64xf32>, vector<1x64xf32>, vector<1x64xf32> -> vector<8x64xf32>
    %234 = vector.broadcast %11 : vector<1x64xf32> to vector<8x64xf32>
    %235 = arith.mulf %234, %73 : vector<8x64xf32>
    %236 = arith.addf %233, %235 : vector<8x64xf32>
    %237 = arith.negf %20 : vector<8x64xf32>
    %238 = math.exp %237 : vector<8x64xf32>
    %cst_34 = arith.constant 1.000000e+00 : f32
    %239 = vector.broadcast %cst_34 : f32 to vector<8x64xf32>
    %240 = arith.addf %239, %238 : vector<8x64xf32>
    %241 = arith.divf %239, %240 : vector<8x64xf32>
    %242 = arith.mulf %20, %241 : vector<8x64xf32>
    %243 = arith.mulf %236, %242 : vector<8x64xf32>
    %244 = arith.truncf %243 : vector<8x64xf32> to vector<8x64xbf16>
    %cst_35 = arith.constant dense<0.000000e+00> : vector<8x32xf32>
    %245 = tpu.matmul %244, %17, %cst_35 {dimension_numbers = #tpu.dot_dimension_numbers<[1], [0], [0], [1], [0, 0, 1, 1], [], []>} : vector<8x64xbf16>, vector<64x32xbf16>, vector<8x32xf32> -> vector<8x32xf32>
    %c0_36 = arith.constant 0 : index
    %c0_37 = arith.constant 0 : index
    %246 = vector.load %arg7[%c0_36, %c0_37] : memref<72x64xf32, #tpu.memory_space<vmem>>, vector<72x64xf32>
    %247 = vector.extract_strided_slice %246 {offsets = [0, 0], sizes = [64, 64], strides = [1, 1]} : vector<72x64xf32> to vector<64x64xf32>
    %248 = vector.extract_strided_slice %246 {offsets = [64, 0], sizes = [4, 64], strides = [1, 1]} : vector<72x64xf32> to vector<4x64xf32>
    %249 = vector.extract_strided_slice %246 {offsets = [68, 0], sizes = [1, 64], strides = [1, 1]} : vector<72x64xf32> to vector<1x64xf32>
    %250 = vector.extract_strided_slice %246 {offsets = [69, 0], sizes = [1, 64], strides = [1, 1]} : vector<72x64xf32> to vector<1x64xf32>
    %251 = vector.extract_strided_slice %246 {offsets = [70, 0], sizes = [1, 64], strides = [1, 1]} : vector<72x64xf32> to vector<1x64xf32>
    %c0_38 = arith.constant 0 : index
    %c0_39 = arith.constant 0 : index
    %252 = vector.load %arg6[%c0_38, %c0_39] : memref<320x64xbf16, #tpu.memory_space<vmem>>, vector<32x64xbf16>
    %c32_40 = arith.constant 32 : index
    %c0_41 = arith.constant 0 : index
    %253 = vector.load %arg6[%c32_40, %c0_41] : memref<320x64xbf16, #tpu.memory_space<vmem>>, vector<32x64xbf16>
    %c64_42 = arith.constant 64 : index
    %c0_43 = arith.constant 0 : index
    %254 = vector.load %arg6[%c64_42, %c0_43] : memref<320x64xbf16, #tpu.memory_space<vmem>>, vector<64x64xbf16>
    %c128_44 = arith.constant 128 : index
    %c0_45 = arith.constant 0 : index
    %255 = vector.load %arg6[%c128_44, %c0_45] : memref<320x64xbf16, #tpu.memory_space<vmem>>, vector<64x64xbf16>
    %c192_46 = arith.constant 192 : index
    %c0_47 = arith.constant 0 : index
    %256 = vector.load %arg6[%c192_46, %c0_47] : memref<320x64xbf16, #tpu.memory_space<vmem>>, vector<64x64xbf16>
    %c256_48 = arith.constant 256 : index
    %c0_49 = arith.constant 0 : index
    %257 = vector.load %arg6[%c256_48, %c0_49] : memref<320x64xbf16, #tpu.memory_space<vmem>>, vector<64x32xbf16>
    %258 = arith.truncf %245 : vector<8x32xf32> to vector<8x32xbf16>
    %cst_50 = arith.constant dense<0.000000e+00> : vector<8x64xf32>
    %259 = tpu.matmul %258, %252, %cst_50 {dimension_numbers = #tpu.dot_dimension_numbers<[1], [0], [0], [1], [0, 0, 1, 1], [], []>} : vector<8x32xbf16>, vector<32x64xbf16>, vector<8x64xf32> -> vector<8x64xf32>
    %cst_51 = arith.constant dense<0.000000e+00> : vector<8x64xf32>
    %260 = tpu.matmul %258, %253, %cst_51 {dimension_numbers = #tpu.dot_dimension_numbers<[1], [0], [0], [1], [0, 0, 1, 1], [], []>} : vector<8x32xbf16>, vector<32x64xbf16>, vector<8x64xf32> -> vector<8x64xf32>
    %261 = vector.extract_strided_slice %259 {offsets = [0, 0], sizes = [4, 64], strides = [1, 1]} : vector<8x64xf32> to vector<4x64xf32>
    %cst_52 = arith.constant 0.000000e+00 : f32
    %262 = vector.broadcast %cst_52 : f32 to vector<3x64xf32>
    %263 = tpu.concatenate %262, %261 in 0 : vector<3x64xf32>, vector<4x64xf32> -> vector<7x64xf32>
    %264 = vector.extract_strided_slice %263 {offsets = [0, 0], sizes = [4, 64], strides = [1, 1]} : vector<7x64xf32> to vector<4x64xf32>
    %265 = vector.extract_strided_slice %248 {offsets = [0, 0], sizes = [1, 64], strides = [1, 1]} : vector<4x64xf32> to vector<1x64xf32>
    %266 = vector.broadcast %265 : vector<1x64xf32> to vector<4x64xf32>
    %267 = arith.mulf %264, %266 : vector<4x64xf32>
    %268 = vector.extract_strided_slice %263 {offsets = [1, 0], sizes = [4, 64], strides = [1, 1]} : vector<7x64xf32> to vector<4x64xf32>
    %269 = vector.extract_strided_slice %248 {offsets = [1, 0], sizes = [1, 64], strides = [1, 1]} : vector<4x64xf32> to vector<1x64xf32>
    %270 = vector.broadcast %269 : vector<1x64xf32> to vector<4x64xf32>
    %271 = arith.mulf %268, %270 : vector<4x64xf32>
    %272 = arith.addf %267, %271 : vector<4x64xf32>
    %273 = vector.extract_strided_slice %263 {offsets = [2, 0], sizes = [4, 64], strides = [1, 1]} : vector<7x64xf32> to vector<4x64xf32>
    %274 = vector.extract_strided_slice %248 {offsets = [2, 0], sizes = [1, 64], strides = [1, 1]} : vector<4x64xf32> to vector<1x64xf32>
    %275 = vector.broadcast %274 : vector<1x64xf32> to vector<4x64xf32>
    %276 = arith.mulf %273, %275 : vector<4x64xf32>
    %277 = arith.addf %272, %276 : vector<4x64xf32>
    %278 = vector.extract_strided_slice %263 {offsets = [3, 0], sizes = [4, 64], strides = [1, 1]} : vector<7x64xf32> to vector<4x64xf32>
    %279 = vector.extract_strided_slice %248 {offsets = [3, 0], sizes = [1, 64], strides = [1, 1]} : vector<4x64xf32> to vector<1x64xf32>
    %280 = vector.broadcast %279 : vector<1x64xf32> to vector<4x64xf32>
    %281 = arith.mulf %278, %280 : vector<4x64xf32>
    %282 = arith.addf %277, %281 : vector<4x64xf32>
    %283 = vector.extract_strided_slice %259 {offsets = [4, 0], sizes = [4, 64], strides = [1, 1]} : vector<8x64xf32> to vector<4x64xf32>
    %cst_53 = arith.constant 0.000000e+00 : f32
    %284 = vector.broadcast %cst_53 : f32 to vector<3x64xf32>
    %285 = tpu.concatenate %284, %283 in 0 : vector<3x64xf32>, vector<4x64xf32> -> vector<7x64xf32>
    %286 = vector.extract_strided_slice %285 {offsets = [0, 0], sizes = [4, 64], strides = [1, 1]} : vector<7x64xf32> to vector<4x64xf32>
    %287 = vector.extract_strided_slice %248 {offsets = [0, 0], sizes = [1, 64], strides = [1, 1]} : vector<4x64xf32> to vector<1x64xf32>
    %288 = vector.broadcast %287 : vector<1x64xf32> to vector<4x64xf32>
    %289 = arith.mulf %286, %288 : vector<4x64xf32>
    %290 = vector.extract_strided_slice %285 {offsets = [1, 0], sizes = [4, 64], strides = [1, 1]} : vector<7x64xf32> to vector<4x64xf32>
    %291 = vector.extract_strided_slice %248 {offsets = [1, 0], sizes = [1, 64], strides = [1, 1]} : vector<4x64xf32> to vector<1x64xf32>
    %292 = vector.broadcast %291 : vector<1x64xf32> to vector<4x64xf32>
    %293 = arith.mulf %290, %292 : vector<4x64xf32>
    %294 = arith.addf %289, %293 : vector<4x64xf32>
    %295 = vector.extract_strided_slice %285 {offsets = [2, 0], sizes = [4, 64], strides = [1, 1]} : vector<7x64xf32> to vector<4x64xf32>
    %296 = vector.extract_strided_slice %248 {offsets = [2, 0], sizes = [1, 64], strides = [1, 1]} : vector<4x64xf32> to vector<1x64xf32>
    %297 = vector.broadcast %296 : vector<1x64xf32> to vector<4x64xf32>
    %298 = arith.mulf %295, %297 : vector<4x64xf32>
    %299 = arith.addf %294, %298 : vector<4x64xf32>
    %300 = vector.extract_strided_slice %285 {offsets = [3, 0], sizes = [4, 64], strides = [1, 1]} : vector<7x64xf32> to vector<4x64xf32>
    %301 = vector.extract_strided_slice %248 {offsets = [3, 0], sizes = [1, 64], strides = [1, 1]} : vector<4x64xf32> to vector<1x64xf32>
    %302 = vector.broadcast %301 : vector<1x64xf32> to vector<4x64xf32>
    %303 = arith.mulf %300, %302 : vector<4x64xf32>
    %304 = arith.addf %299, %303 : vector<4x64xf32>
    %305 = tpu.concatenate %282, %304 in 0 : vector<4x64xf32>, vector<4x64xf32> -> vector<8x64xf32>
    %306 = vector.broadcast %249 : vector<1x64xf32> to vector<8x64xf32>
    %307 = arith.addf %305, %306 : vector<8x64xf32>
    %308 = arith.negf %307 : vector<8x64xf32>
    %309 = math.exp %308 : vector<8x64xf32>
    %cst_54 = arith.constant 1.000000e+00 : f32
    %310 = vector.broadcast %cst_54 : f32 to vector<8x64xf32>
    %311 = arith.addf %310, %309 : vector<8x64xf32>
    %312 = arith.divf %310, %311 : vector<8x64xf32>
    %313 = arith.mulf %307, %312 : vector<8x64xf32>
    %314 = arith.truncf %313 : vector<8x64xf32> to vector<8x64xbf16>
    %cst_55 = arith.constant dense<0.000000e+00> : vector<8x64xf32>
    %315 = tpu.matmul %314, %254, %cst_55 {dimension_numbers = #tpu.dot_dimension_numbers<[1], [0], [0], [1], [0, 0, 1, 1], [], []>} : vector<8x64xbf16>, vector<64x64xbf16>, vector<8x64xf32> -> vector<8x64xf32>
    %316 = vector.broadcast %250 : vector<1x64xf32> to vector<8x64xf32>
    %317 = arith.addf %315, %316 : vector<8x64xf32>
    %cst_56 = arith.constant 0.000000e+00 : f32
    %318 = vector.broadcast %cst_56 : f32 to vector<8x64xf32>
    %319 = arith.maximumf %317, %318 : vector<8x64xf32>
    %320 = vector.broadcast %cst_56 : f32 to vector<8x64xf32>
    %321 = arith.subf %317, %320 : vector<8x64xf32>
    %322 = arith.cmpf one, %321, %321 : vector<8x64xf32>
    %323 = vector.broadcast %cst_56 : f32 to vector<8x64xf32>
    %324 = arith.addf %317, %323 : vector<8x64xf32>
    %325 = math.absf %321 : vector<8x64xf32>
    %cst_57 = arith.constant 0.000000e+00 : f32
    %326 = vector.broadcast %cst_57 : f32 to vector<8x64xf32>
    %327 = arith.subf %326, %325 : vector<8x64xf32>
    %328 = math.exp %327 : vector<8x64xf32>
    %329 = math.log1p %328 : vector<8x64xf32>
    %330 = arith.addf %319, %329 : vector<8x64xf32>
    %331 = arith.select %322, %324, %330 : vector<8x64xi1>, vector<8x64xf32>
    %cst_58 = arith.constant dense<0.000000e+00> : vector<8x64xf32>
    %332 = tpu.matmul %314, %255, %cst_58 {dimension_numbers = #tpu.dot_dimension_numbers<[1], [0], [0], [1], [0, 0, 1, 1], [], []>} : vector<8x64xbf16>, vector<64x64xbf16>, vector<8x64xf32> -> vector<8x64xf32>
    %cst_59 = arith.constant dense<0.000000e+00> : vector<8x64xf32>
    %333 = tpu.matmul %314, %256, %cst_59 {dimension_numbers = #tpu.dot_dimension_numbers<[1], [0], [0], [1], [0, 0, 1, 1], [], []>} : vector<8x64xbf16>, vector<64x64xbf16>, vector<8x64xf32> -> vector<8x64xf32>
    %334 = arith.mulf %331, %313 : vector<8x64xf32>
    %335 = vector.extract_strided_slice %332 {offsets = [0, 0], sizes = [4, 64], strides = [1, 1]} : vector<8x64xf32> to vector<4x64xf32>
    %336 = tpu.transpose %335, [1, 0] : vector<4x64xf32> -> vector<64x4xf32>
    %337 = vector.extract_strided_slice %333 {offsets = [0, 0], sizes = [4, 64], strides = [1, 1]} : vector<8x64xf32> to vector<4x64xf32>
    %338 = tpu.transpose %337, [1, 0] : vector<4x64xf32> -> vector<64x4xf32>
    %339 = vector.extract_strided_slice %331 {offsets = [0, 0], sizes = [1, 64], strides = [1, 1]} : vector<8x64xf32> to vector<1x64xf32>
    %340 = vector.broadcast %339 : vector<1x64xf32> to vector<64x64xf32>
    %341 = arith.mulf %340, %247 : vector<64x64xf32>
    %342 = math.exp %341 : vector<64x64xf32>
    %343 = vector.extract_strided_slice %331 {offsets = [1, 0], sizes = [1, 64], strides = [1, 1]} : vector<8x64xf32> to vector<1x64xf32>
    %344 = vector.broadcast %343 : vector<1x64xf32> to vector<64x64xf32>
    %345 = arith.mulf %344, %247 : vector<64x64xf32>
    %346 = math.exp %345 : vector<64x64xf32>
    %347 = vector.extract_strided_slice %331 {offsets = [2, 0], sizes = [1, 64], strides = [1, 1]} : vector<8x64xf32> to vector<1x64xf32>
    %348 = vector.broadcast %347 : vector<1x64xf32> to vector<64x64xf32>
    %349 = arith.mulf %348, %247 : vector<64x64xf32>
    %350 = math.exp %349 : vector<64x64xf32>
    %351 = vector.extract_strided_slice %331 {offsets = [3, 0], sizes = [1, 64], strides = [1, 1]} : vector<8x64xf32> to vector<1x64xf32>
    %352 = vector.broadcast %351 : vector<1x64xf32> to vector<64x64xf32>
    %353 = arith.mulf %352, %247 : vector<64x64xf32>
    %354 = math.exp %353 : vector<64x64xf32>
    %355 = vector.extract_strided_slice %336 {offsets = [0, 0], sizes = [64, 1], strides = [1, 1]} : vector<64x4xf32> to vector<64x1xf32>
    %356 = vector.extract_strided_slice %334 {offsets = [0, 0], sizes = [1, 64], strides = [1, 1]} : vector<8x64xf32> to vector<1x64xf32>
    %357 = vector.broadcast %355 : vector<64x1xf32> to vector<64x64xf32>
    %358 = vector.broadcast %356 : vector<1x64xf32> to vector<64x64xf32>
    %359 = arith.mulf %357, %358 : vector<64x64xf32>
    %360 = vector.extract_strided_slice %336 {offsets = [0, 1], sizes = [64, 1], strides = [1, 1]} : vector<64x4xf32> to vector<64x1xf32>
    %361 = vector.extract_strided_slice %334 {offsets = [1, 0], sizes = [1, 64], strides = [1, 1]} : vector<8x64xf32> to vector<1x64xf32>
    %362 = vector.broadcast %360 : vector<64x1xf32> to vector<64x64xf32>
    %363 = vector.broadcast %361 : vector<1x64xf32> to vector<64x64xf32>
    %364 = arith.mulf %362, %363 : vector<64x64xf32>
    %365 = vector.extract_strided_slice %336 {offsets = [0, 2], sizes = [64, 1], strides = [1, 1]} : vector<64x4xf32> to vector<64x1xf32>
    %366 = vector.extract_strided_slice %334 {offsets = [2, 0], sizes = [1, 64], strides = [1, 1]} : vector<8x64xf32> to vector<1x64xf32>
    %367 = vector.broadcast %365 : vector<64x1xf32> to vector<64x64xf32>
    %368 = vector.broadcast %366 : vector<1x64xf32> to vector<64x64xf32>
    %369 = arith.mulf %367, %368 : vector<64x64xf32>
    %370 = vector.extract_strided_slice %336 {offsets = [0, 3], sizes = [64, 1], strides = [1, 1]} : vector<64x4xf32> to vector<64x1xf32>
    %371 = vector.extract_strided_slice %334 {offsets = [3, 0], sizes = [1, 64], strides = [1, 1]} : vector<8x64xf32> to vector<1x64xf32>
    %372 = vector.broadcast %370 : vector<64x1xf32> to vector<64x64xf32>
    %373 = vector.broadcast %371 : vector<1x64xf32> to vector<64x64xf32>
    %374 = arith.mulf %372, %373 : vector<64x64xf32>
    %cst_60 = arith.constant 0.000000e+00 : f32
    %375 = vector.broadcast %cst_60 : f32 to vector<64x64xf32>
    %376 = arith.mulf %342, %375 : vector<64x64xf32>
    %377 = arith.addf %376, %359 : vector<64x64xf32>
    %378 = vector.extract_strided_slice %338 {offsets = [0, 0], sizes = [64, 1], strides = [1, 1]} : vector<64x4xf32> to vector<64x1xf32>
    %379 = vector.broadcast %378 : vector<64x1xf32> to vector<64x64xf32>
    %380 = arith.mulf %379, %377 : vector<64x64xf32>
    %cst_61 = arith.constant dense<0.000000e+00> : vector<64xf32>
    %381 = vector.multi_reduction <add>, %380, %cst_61 [0] : vector<64x64xf32> to vector<64xf32>
    %382 = vector.shape_cast %381 : vector<64xf32> to vector<1x64xf32>
    %383 = arith.mulf %346, %377 : vector<64x64xf32>
    %384 = arith.addf %383, %364 : vector<64x64xf32>
    %385 = vector.extract_strided_slice %338 {offsets = [0, 1], sizes = [64, 1], strides = [1, 1]} : vector<64x4xf32> to vector<64x1xf32>
    %386 = vector.broadcast %385 : vector<64x1xf32> to vector<64x64xf32>
    %387 = arith.mulf %386, %384 : vector<64x64xf32>
    %cst_62 = arith.constant dense<0.000000e+00> : vector<64xf32>
    %388 = vector.multi_reduction <add>, %387, %cst_62 [0] : vector<64x64xf32> to vector<64xf32>
    %389 = vector.shape_cast %388 : vector<64xf32> to vector<1x64xf32>
    %390 = arith.mulf %350, %384 : vector<64x64xf32>
    %391 = arith.addf %390, %369 : vector<64x64xf32>
    %392 = vector.extract_strided_slice %338 {offsets = [0, 2], sizes = [64, 1], strides = [1, 1]} : vector<64x4xf32> to vector<64x1xf32>
    %393 = vector.broadcast %392 : vector<64x1xf32> to vector<64x64xf32>
    %394 = arith.mulf %393, %391 : vector<64x64xf32>
    %cst_63 = arith.constant dense<0.000000e+00> : vector<64xf32>
    %395 = vector.multi_reduction <add>, %394, %cst_63 [0] : vector<64x64xf32> to vector<64xf32>
    %396 = vector.shape_cast %395 : vector<64xf32> to vector<1x64xf32>
    %397 = arith.mulf %354, %391 : vector<64x64xf32>
    %398 = arith.addf %397, %374 : vector<64x64xf32>
    %399 = vector.extract_strided_slice %338 {offsets = [0, 3], sizes = [64, 1], strides = [1, 1]} : vector<64x4xf32> to vector<64x1xf32>
    %400 = vector.broadcast %399 : vector<64x1xf32> to vector<64x64xf32>
    %401 = arith.mulf %400, %398 : vector<64x64xf32>
    %cst_64 = arith.constant dense<0.000000e+00> : vector<64xf32>
    %402 = vector.multi_reduction <add>, %401, %cst_64 [0] : vector<64x64xf32> to vector<64xf32>
    %403 = vector.shape_cast %402 : vector<64xf32> to vector<1x64xf32>
    %404 = vector.extract_strided_slice %332 {offsets = [4, 0], sizes = [4, 64], strides = [1, 1]} : vector<8x64xf32> to vector<4x64xf32>
    %405 = tpu.transpose %404, [1, 0] : vector<4x64xf32> -> vector<64x4xf32>
    %406 = vector.extract_strided_slice %333 {offsets = [4, 0], sizes = [4, 64], strides = [1, 1]} : vector<8x64xf32> to vector<4x64xf32>
    %407 = tpu.transpose %406, [1, 0] : vector<4x64xf32> -> vector<64x4xf32>
    %408 = vector.extract_strided_slice %331 {offsets = [4, 0], sizes = [1, 64], strides = [1, 1]} : vector<8x64xf32> to vector<1x64xf32>
    %409 = vector.broadcast %408 : vector<1x64xf32> to vector<64x64xf32>
    %410 = arith.mulf %409, %247 : vector<64x64xf32>
    %411 = math.exp %410 : vector<64x64xf32>
    %412 = vector.extract_strided_slice %331 {offsets = [5, 0], sizes = [1, 64], strides = [1, 1]} : vector<8x64xf32> to vector<1x64xf32>
    %413 = vector.broadcast %412 : vector<1x64xf32> to vector<64x64xf32>
    %414 = arith.mulf %413, %247 : vector<64x64xf32>
    %415 = math.exp %414 : vector<64x64xf32>
    %416 = vector.extract_strided_slice %331 {offsets = [6, 0], sizes = [1, 64], strides = [1, 1]} : vector<8x64xf32> to vector<1x64xf32>
    %417 = vector.broadcast %416 : vector<1x64xf32> to vector<64x64xf32>
    %418 = arith.mulf %417, %247 : vector<64x64xf32>
    %419 = math.exp %418 : vector<64x64xf32>
    %420 = vector.extract_strided_slice %331 {offsets = [7, 0], sizes = [1, 64], strides = [1, 1]} : vector<8x64xf32> to vector<1x64xf32>
    %421 = vector.broadcast %420 : vector<1x64xf32> to vector<64x64xf32>
    %422 = arith.mulf %421, %247 : vector<64x64xf32>
    %423 = math.exp %422 : vector<64x64xf32>
    %424 = vector.extract_strided_slice %405 {offsets = [0, 0], sizes = [64, 1], strides = [1, 1]} : vector<64x4xf32> to vector<64x1xf32>
    %425 = vector.extract_strided_slice %334 {offsets = [4, 0], sizes = [1, 64], strides = [1, 1]} : vector<8x64xf32> to vector<1x64xf32>
    %426 = vector.broadcast %424 : vector<64x1xf32> to vector<64x64xf32>
    %427 = vector.broadcast %425 : vector<1x64xf32> to vector<64x64xf32>
    %428 = arith.mulf %426, %427 : vector<64x64xf32>
    %429 = vector.extract_strided_slice %405 {offsets = [0, 1], sizes = [64, 1], strides = [1, 1]} : vector<64x4xf32> to vector<64x1xf32>
    %430 = vector.extract_strided_slice %334 {offsets = [5, 0], sizes = [1, 64], strides = [1, 1]} : vector<8x64xf32> to vector<1x64xf32>
    %431 = vector.broadcast %429 : vector<64x1xf32> to vector<64x64xf32>
    %432 = vector.broadcast %430 : vector<1x64xf32> to vector<64x64xf32>
    %433 = arith.mulf %431, %432 : vector<64x64xf32>
    %434 = vector.extract_strided_slice %405 {offsets = [0, 2], sizes = [64, 1], strides = [1, 1]} : vector<64x4xf32> to vector<64x1xf32>
    %435 = vector.extract_strided_slice %334 {offsets = [6, 0], sizes = [1, 64], strides = [1, 1]} : vector<8x64xf32> to vector<1x64xf32>
    %436 = vector.broadcast %434 : vector<64x1xf32> to vector<64x64xf32>
    %437 = vector.broadcast %435 : vector<1x64xf32> to vector<64x64xf32>
    %438 = arith.mulf %436, %437 : vector<64x64xf32>
    %439 = vector.extract_strided_slice %405 {offsets = [0, 3], sizes = [64, 1], strides = [1, 1]} : vector<64x4xf32> to vector<64x1xf32>
    %440 = vector.extract_strided_slice %334 {offsets = [7, 0], sizes = [1, 64], strides = [1, 1]} : vector<8x64xf32> to vector<1x64xf32>
    %441 = vector.broadcast %439 : vector<64x1xf32> to vector<64x64xf32>
    %442 = vector.broadcast %440 : vector<1x64xf32> to vector<64x64xf32>
    %443 = arith.mulf %441, %442 : vector<64x64xf32>
    %cst_65 = arith.constant 0.000000e+00 : f32
    %444 = vector.broadcast %cst_65 : f32 to vector<64x64xf32>
    %445 = arith.mulf %411, %444 : vector<64x64xf32>
    %446 = arith.addf %445, %428 : vector<64x64xf32>
    %447 = vector.extract_strided_slice %407 {offsets = [0, 0], sizes = [64, 1], strides = [1, 1]} : vector<64x4xf32> to vector<64x1xf32>
    %448 = vector.broadcast %447 : vector<64x1xf32> to vector<64x64xf32>
    %449 = arith.mulf %448, %446 : vector<64x64xf32>
    %cst_66 = arith.constant dense<0.000000e+00> : vector<64xf32>
    %450 = vector.multi_reduction <add>, %449, %cst_66 [0] : vector<64x64xf32> to vector<64xf32>
    %451 = vector.shape_cast %450 : vector<64xf32> to vector<1x64xf32>
    %452 = arith.mulf %415, %446 : vector<64x64xf32>
    %453 = arith.addf %452, %433 : vector<64x64xf32>
    %454 = vector.extract_strided_slice %407 {offsets = [0, 1], sizes = [64, 1], strides = [1, 1]} : vector<64x4xf32> to vector<64x1xf32>
    %455 = vector.broadcast %454 : vector<64x1xf32> to vector<64x64xf32>
    %456 = arith.mulf %455, %453 : vector<64x64xf32>
    %cst_67 = arith.constant dense<0.000000e+00> : vector<64xf32>
    %457 = vector.multi_reduction <add>, %456, %cst_67 [0] : vector<64x64xf32> to vector<64xf32>
    %458 = vector.shape_cast %457 : vector<64xf32> to vector<1x64xf32>
    %459 = arith.mulf %419, %453 : vector<64x64xf32>
    %460 = arith.addf %459, %438 : vector<64x64xf32>
    %461 = vector.extract_strided_slice %407 {offsets = [0, 2], sizes = [64, 1], strides = [1, 1]} : vector<64x4xf32> to vector<64x1xf32>
    %462 = vector.broadcast %461 : vector<64x1xf32> to vector<64x64xf32>
    %463 = arith.mulf %462, %460 : vector<64x64xf32>
    %cst_68 = arith.constant dense<0.000000e+00> : vector<64xf32>
    %464 = vector.multi_reduction <add>, %463, %cst_68 [0] : vector<64x64xf32> to vector<64xf32>
    %465 = vector.shape_cast %464 : vector<64xf32> to vector<1x64xf32>
    %466 = arith.mulf %423, %460 : vector<64x64xf32>
    %467 = arith.addf %466, %443 : vector<64x64xf32>
    %468 = vector.extract_strided_slice %407 {offsets = [0, 3], sizes = [64, 1], strides = [1, 1]} : vector<64x4xf32> to vector<64x1xf32>
    %469 = vector.broadcast %468 : vector<64x1xf32> to vector<64x64xf32>
    %470 = arith.mulf %469, %467 : vector<64x64xf32>
    %cst_69 = arith.constant dense<0.000000e+00> : vector<64xf32>
    %471 = vector.multi_reduction <add>, %470, %cst_69 [0] : vector<64x64xf32> to vector<64xf32>
    %472 = vector.shape_cast %471 : vector<64xf32> to vector<1x64xf32>
    %473 = tpu.concatenate %382, %389, %396, %403, %451, %458, %465, %472 in 0 : vector<1x64xf32>, vector<1x64xf32>, vector<1x64xf32>, vector<1x64xf32>, vector<1x64xf32>, vector<1x64xf32>, vector<1x64xf32>, vector<1x64xf32> -> vector<8x64xf32>
    %474 = vector.broadcast %251 : vector<1x64xf32> to vector<8x64xf32>
    %475 = arith.mulf %474, %313 : vector<8x64xf32>
    %476 = arith.addf %473, %475 : vector<8x64xf32>
    %477 = arith.negf %260 : vector<8x64xf32>
    %478 = math.exp %477 : vector<8x64xf32>
    %cst_70 = arith.constant 1.000000e+00 : f32
    %479 = vector.broadcast %cst_70 : f32 to vector<8x64xf32>
    %480 = arith.addf %479, %478 : vector<8x64xf32>
    %481 = arith.divf %479, %480 : vector<8x64xf32>
    %482 = arith.mulf %260, %481 : vector<8x64xf32>
    %483 = arith.mulf %476, %482 : vector<8x64xf32>
    %484 = arith.truncf %483 : vector<8x64xf32> to vector<8x64xbf16>
    %cst_71 = arith.constant dense<0.000000e+00> : vector<8x32xf32>
    %485 = tpu.matmul %484, %257, %cst_71 {dimension_numbers = #tpu.dot_dimension_numbers<[1], [0], [0], [1], [0, 0, 1, 1], [], []>} : vector<8x64xbf16>, vector<64x32xbf16>, vector<8x32xf32> -> vector<8x32xf32>
    %486 = arith.addf %485, %245 : vector<8x32xf32>
    %c0_72 = arith.constant 0 : index
    %c0_73 = arith.constant 0 : index
    %487 = vector.load %arg8[%c0_72, %c0_73] : memref<8x32xf32, #tpu.memory_space<vmem>>, vector<8x32xf32>
    tpu.vector_store %arg8[%c0_72, %c0_73], %486 {strides = array<i32>} : memref<8x32xf32, #tpu.memory_space<vmem>>, vector<8x32xf32>,
    return
  }
  func.func @transform_0(%arg0: i32) -> (i32, i32) {
    %c0_i32 = arith.constant 0 : i32
    %c0_i32_0 = arith.constant 0 : i32
    return %arg0, %c0_i32 : i32, i32
  }
  func.func @transform_1(%arg0: i32) -> (i32, i32) {
    %c0_i32 = arith.constant 0 : i32
    %c0_i32_0 = arith.constant 0 : i32
    %c0_i32_1 = arith.constant 0 : i32
    return %c0_i32, %c0_i32_0 : i32, i32
  }
  func.func @transform_2(%arg0: i32) -> (i32, i32) {
    %c0_i32 = arith.constant 0 : i32
    %c0_i32_0 = arith.constant 0 : i32
    %c0_i32_1 = arith.constant 0 : i32
    return %c0_i32, %c0_i32_0 : i32, i32
  }
  func.func @transform_3(%arg0: i32) -> (i32, i32) {
    %c0_i32 = arith.constant 0 : i32
    %c0_i32_0 = arith.constant 0 : i32
    %c0_i32_1 = arith.constant 0 : i32
    return %c0_i32, %c0_i32_0 : i32, i32
  }
  func.func @transform_4(%arg0: i32) -> (i32, i32) {
    %c0_i32 = arith.constant 0 : i32
    %c0_i32_0 = arith.constant 0 : i32
    %c0_i32_1 = arith.constant 0 : i32
    return %c0_i32, %c0_i32_0 : i32, i32
  }
  func.func @transform_5(%arg0: i32) -> (i32, i32) {
    %c0_i32 = arith.constant 0 : i32
    %c0_i32_0 = arith.constant 0 : i32
    %c0_i32_1 = arith.constant 0 : i32
    return %c0_i32, %c0_i32_0 : i32, i32
  }
  func.func @transform_6(%arg0: i32) -> (i32, i32) {
    %c0_i32 = arith.constant 0 : i32
    %c0_i32_0 = arith.constant 0 : i32
    %c0_i32_1 = arith.constant 0 : i32
    return %c0_i32, %c0_i32_0 : i32, i32
  }
  func.func @transform_7(%arg0: i32) -> (i32, i32) {
    %c0_i32 = arith.constant 0 : i32
    %c0_i32_0 = arith.constant 0 : i32
    return %arg0, %c0_i32 : i32, i32
  }
}

</mosaic_0001>

<bundles_post_ra>
// kernel: tpu_custom_call.1
= control target key start
LH: loop header
LB: loop body
LE: loop exit
PB: predicated region body
PF: predicated region fallthrough
CT: control target
= control target key end

     0   :  { %12 = vsyncpa [#allocation3], 0  ;;  %s7726_s0 = inlined_call_operand.vmem [shape: f32[16,16], index: 0, kind: input, shape index: {}]   ;;  %s7727_s1 = inlined_call_operand.vmem [shape: bf16[16,32], index: 1, kind: input, shape index: {}]   ;;  %s7728_s2 = inlined_call_operand.vmem [shape: f32[8,32], index: 2, kind: input, shape index: {}]   ;;  %s7729_s3 = inlined_call_operand.vmem [shape: bf16[320,64], index: 3, kind: input, shape index: {}]   ;;  %s7730_s4 = inlined_call_operand.vmem [shape: f32[72,64], index: 4, kind: input, shape index: {}]   ;;  %s7731_s5 = inlined_call_operand.vmem [shape: bf16[320,64], index: 5, kind: input, shape index: {}]   ;;  %s7732_s6 = inlined_call_operand.vmem [shape: f32[72,64], index: 6, kind: input, shape index: {}]   ;;  %s7733_s7 = inlined_call_operand.hbm [shape: f32[16,32], index: 7, kind: output, shape index: {}]  }
   0x1   :  { %14 = vsyncpa [#allocation3 + $0x1], 0  ;;  %s5182_s24 = smov 0   ;;  %s5184_s25 = smov 0  }
   0x2   :  { %s5186_s26 = smov 0   ;;  %s5188_s27 = smov 0  }
   0x3 LB: > { %s5203_s28 = sadd.s32 4294967295, %s5133_s27   ;;  %s4201_s29 = sadd.s32 4294967294, %s5133_s27   ;;  %s5133_s27 = sphi %s5188_s27, %s8069_s27   ;;  %s5129_s26 = sphi %s5186_s26, %s8068_s26   ;;  %s5125_s25 = sphi %s5184_s25, %s8067_s25   ;;  %s5121_s24 = sphi %s5182_s24, %s8066_s24  }
   0x4   : > { %s5207_s30 = sadd.s32 1, %s5133_s27   ;;  %s179_s8 = sadd.s32 1, %s5129_s26 }
   0x5   : > { %s176_s9 = ssub.s32 %s5133_s27, %s5207_s30  ;;  %p189_p0 = scmp.ne.s32.totalorder %s5129_s26, %s5125_s25 }
   0x6   : > { %p177_p1 = scmp.eq.s32.totalorder %s176_s9, 0  ;;  %p190_p2 = scmp.eq.s32.totalorder %s5203_s28, 1 }
   0x7   : > { %p195_p3 = scmp.ne.s32.totalorder %s5125_s25, %s5121_s24  ;;  %p196_p4 = scmp.eq.s32.totalorder %s4201_s29, 1 }
   0x8   : > { %s5218_s10 = scalar_select %p177_p1, %s5129_s26, %s179_s8  }
   0x9   : > { %p5220_p5 = por %p190_p2, %p189_p0  ;;  %p5224_p6 = por %p196_p4, %p195_p3 }
   0xa   : > { %p4204_p7 = scmp.ge.s32.totalorder %s5133_s27, 1  ;;  %p239_p8 = scmp.lt.s32.totalorder %s5133_s27, 3 }
   0xc   : > { %p240_p9 = pnand %p4204_p7, %p239_p8 }
   0xe   : > { %243 = sbr.rel (%p240_p9) target bundleno = 2870 (0xb36), region = 48 }
  0x13   : > { %v4748_v0 = vld [vmem:[%s7727_s1] sm:$0xff]   ;;  %v7734_v1 = vmov 0.0   ;;  %p270_p10 = scmp.lt.s32.totalorder %s5203_s28, 1  ;;  %v4749_v2 = vld [vmem:[%s7729_s3 + $0x8] sm:$0xff]   ;;  %vm5136_vm0 = vmmov 0   ;;  %v4750_v3 = vld [vmem:[%s7729_s3 + $0x18] sm:$0xff]   ;;  %v493_v23 = vlaneseq }
  0x14   : > { %4323 = vmatprep.subr.bf16.mxu0 %v7734_v1  ;;  %4329 = vmatprep.subr.bf16.mxu1 %v7734_v1  ;;  %vm286_vm1 = vcmask 130048   ;;  %v4751_v6 = vld [vmem:[%s7729_s3] sm:$0xff]   ;;  %v4752_v7 = vld [vmem:[%s7729_s3 + $0x10] sm:$0xff]   ;;  %vm392_vm2 = vcmask 261120   ;;  %v4753_v15 = vld [vmem:[%s7729_s3 + $0x38] sm:$0xff]   ;;  %vm491_vm3 = vcmask 1042432  }
  0x15   : > { %4324 = vmatpush3.bf16.msra.mxu0 %v4748_v0  ;;  %4325 = vmatprep.mubr.msk.bf16.mxu0 %vm5136_vm0, %v7734_v1  ;;  %s271_s17 = scalar_select %p270_p10, %s5203_s28, 1  ;;  %v279_v8 = vld [vmem:[%s7728_s2] sm:$0xff]  ;;  %v4754_v16 = vld [vmem:[%s7729_s3 + $0x58] sm:$0xff]   ;;  %v4755_v17 = vld [vmem:[%s7729_s3 + $0x30] sm:$0xff]   ;;  %v5304_v24 = vshrl.u32 %v493_v23, 7  ;;  %vm547_vm4 = vcmask 1043456  }
  0x16   : > { %4337 = vmatprep.subr.bf16.mxu0 %v7734_v1  ;;  %4330 = vmatpush3.bf16.msra.mxu1 %v4749_v2  ;;  %v4756_v18 = vld [vmem:[%s7729_s3 + $0x50] sm:$0xff]   ;;  %v4757_v19 = vld [vmem:[%s7729_s3 + $0x28] sm:$0xff]   ;;  %v4759_v21 = vld [vmem:[%s7729_s3 + $0x20] sm:$0xff]   ;;  %vm590_vm5 = vcmask 523264   ;;  %vm2139_vm8 = vcmask 1040384   ;;  %vm2141_vm9 = vcmask 1041408  }
  0x17   : > { %4331 = vmatprep.subr.bf16.mxu1 %v7734_v1  ;;  %4333 = vmatprep.mubr.msk.bf16.mxu1 %vm5136_vm0, %v7734_v1  ;;  %s4206_s18 = sshll.u32 %s271_s17, 3  ;;  %v4758_v20 = vld [vmem:[%s7729_s3 + $0x48] sm:$0xff]   ;;  %v4760_v22 = vld [vmem:[%s7729_s3 + $0x40] sm:$0xff]   ;;  %v5307_v25 = vsub.s32 1, %v5304_v24  ;;  %v5315_v27 = vsub.s32 2, %v5304_v24  ;;  %v5318_v28 = vsub.s32 0, %v5304_v24 }
  0x18   : > { %s273_s23 = scalar_lea.vmem %s7726_s0, %s4206_s18  ;;  %v5312_v26 = vld [vmem:[%s7730_s4 + $0x40] sm:$0xff]  ;;  %v5321_v29 = vsub.s32 3, %v5304_v24  ;;  %v5336_v60 = vsub.s32 4, %v5304_v24  ;;  %vm2145_vm10 = vcmask 1044480   ;;  %vm2147_vm11 = vcmask 1045504   ;;  %s267_s20 = sand.u32 1, %s5125_s25  }
  0x19   : > { %v275_v4 = vld [vmem:[%s273_s23] sm:$0xff]  ;;  %7848 = vst [vmem:[#allocation5_spill] sm:$0xff] %v5307_v25  ;;  %7849 = vst [vmem:[#allocation6_spill] sm:$0xff] %v5315_v27  ;;  %v501_v31 = vrot.slane %v5312_v26, %v5307_v25  ;;  %v510_v34 = vrot.slane %v5312_v26, %v5315_v27  ;;  %v496_v36 = vrot.slane %v5312_v26, %v5318_v28  ;;  %vm2149_vm12 = vcmask 1046528   ;;  %s4205_s21 = sshll.u32 %s267_s20, 3  ;;  %s4266_s22 = sshll.u32 %s5203_s28, 7 }
  0x1a   : > { %v276_v5 = vpack.c.bf16 %v275_v4, %v275_v4  ;;  %4332 = vmatpush3.bf16.msra.mxu1 %v4751_v6  ;;  %7850 = vst [vmem:[#allocation7_spill] sm:$0xff] %v5318_v28  ;;  %7851 = vst [vmem:[#allocation8_spill] sm:$0xff] %v5321_v29  ;;  %v519_v40 = vrot.slane %v5312_v26, %v5321_v29  ;;  %s269_s23 = scalar_lea.vmem [#allocation2], %s4205_s21  ;;  %s7684_s13 = scalar_lea.hbm %s7733_s7, %s4266_s22 }
  0x1b   : > { %4345 = vmatprep.subr.bf16.mxu1 %v7734_v1  ;;  %7853 = vst [vmem:[#allocation10_spill] sm:$0xff] %v5336_v60  ;;  %s4142_s29 = sshll.u32 %s269_s23, 4  ;;  %s4129_s28 = scalar_lea.sflag [#allocation3], %s267_s20  ;;  %s7686_s29 = int_to_ptr.vmem [resolvable:$true] %s4142_s29 }
  0x1c   : > { %4326 = vmatmul.mubr.msk.bf16.vlgmr.msra.gmra.mxu0 %vm286_vm1, %v276_v5  ;;  %s5073_s14 = scalar_lea.vmem %s7686_s29, 128  ;;  %s5141_s15 = smov [#allocation2]  }
  0x1d   : > { %4338 = vmatpush3.bf16.msra.mxu0 %v4750_v3  ;;  %4341 = vmatprep.mubr.msk.bf16.mxu0 %vm5136_vm0, %v7734_v1  ;;  %v552_v3 = vrot.slane %v5312_v26, %v5336_v60  ;;  %p5074_p11 = scmp.ne.s32.totalorder %s7686_s29, %s5073_s14  ;;  %s5077_s16 = sshll.u32 %s5141_s15, 4  ;;  %s5078_s16 = int_to_ptr.vmem [resolvable:$false] %s5077_s16 }
  0x1e   : > { %4339 = vmatprep.subr.bf16.mxu0 %v7734_v1  ;;  %s5079_s17 = scalar_lea.vmem %s5078_s16, 256  ;;  %p5080_p0 = scmp.lt.s32.totalorder %s7686_s29, %s5078_s16 }
  0x1f   : > { %p5075_p12 = pnand %p5074_p11, %p5220_p5  ;;  %p5081_p1 = scmp.lt.s32.totalorder %s5079_s17, %s5073_s14 }
  0x21   : > { %4340 = vmatpush3.bf16.msra.mxu0 %v4752_v7  ;;  %p5076_p13 = pneg %p5075_p12  ;;  %p5082_p2 = por %p5081_p1, %p5080_p0 }
  0x22   : > { %4357 = vmatprep.subr.bf16.mxu0 %v7734_v1 }
  0x23   : > { %p5083_p3 = pnand %p5082_p2, %p5076_p13 }
  0xdc   : > { %v324_v9 = vpop.f32.mrf.mxu0 }
  0xdd   : > { %v325_v10 = vadd.f32 %v324_v9, %v279_v8 }
  0xde   : > { %v4327_v11 = vpop.f32.mrf.mxu0 }
  0xdf   : > { %v379_v12 = vpack.c.bf16 %v325_v10, %v325_v10 }
  0xe0   : > { %v327_v13 = vpop.f32.mrf.mxu0 }
  0xe1   : > { %4334 = vmatmul.mubr.msk.bf16.vlgmr.msra.gmra.mxu1 %vm392_vm2, %v379_v12  ;;  %4342 = vmatmul.mubr.msk.bf16.vlgmr.msra.gmra.mxu0 %vm392_vm2, %v379_v12  ;;  %v4761_v13 = vld [vmem:[%s7729_s3 + $0x78] sm:$0xff]  }
  0xe2   : > { %v4328_v14 = vpop.f32.mrf.mxu0  ;;  %4353 = vmatprep.mubr.msk.bf16.mxu1 %vm5136_vm0, %v7734_v1  ;;  %4365 = vmatprep.mubr.msk.bf16.mxu0 %vm5136_vm0, %v7734_v1 }
  0xe3   : > { %4346 = vmatpush3.bf16.msra.mxu1 %v4753_v15  ;;  %4358 = vmatpush3.bf16.msra.mxu0 %v4754_v16  ;;  %v4762_v15 = vld [vmem:[%s7729_s3 + $0x70] sm:$0xff]   ;;  %v4763_v16 = vld [vmem:[%s7729_s3 + $0x68] sm:$0xff]  }
  0xe4   : > { %4347 = vmatprep.subr.bf16.mxu1 %v7734_v1  ;;  %4359 = vmatprep.subr.bf16.mxu0 %v7734_v1 }
  0xe7   : > { %4348 = vmatpush3.bf16.msra.mxu1 %v4755_v17  ;;  %4360 = vmatpush3.bf16.msra.mxu0 %v4756_v18  ;;  %v4764_v17 = vld [vmem:[%s7729_s3 + $0x60] sm:$0xff]  }
  0xe8   : > { %4349 = vmatprep.subr.bf16.mxu1 %v7734_v1  ;;  %4361 = vmatprep.subr.bf16.mxu0 %v7734_v1 }
  0xeb   : > { %4350 = vmatpush3.bf16.msra.mxu1 %v4757_v19  ;;  %4362 = vmatpush3.bf16.msra.mxu0 %v4758_v20 }
  0xec   : > { %4351 = vmatprep.subr.bf16.mxu1 %v7734_v1  ;;  %4363 = vmatprep.subr.bf16.mxu0 %v7734_v1 }
  0xef   : > { %4352 = vmatpush3.bf16.msra.mxu1 %v4759_v21  ;;  %4364 = vmatpush3.bf16.msra.mxu0 %v4760_v22 }
  0xf0   : > { %4369 = vmatprep.subr.bf16.mxu1 %v7734_v1  ;;  %4381 = vmatprep.subr.bf16.mxu0 %v7734_v1 }
 0x1a1   : > { %v430_v30 = vpop.f32.mrf.mxu1  ;;  %v5325_v32 = vpop.f32.mrf.mxu0 }
 0x1a2   : > { %7852 = vst [vmem:[#allocation9_spill] sm:$0xff] %v5325_v32  ;;  %v489_v33 = vrot.slane %v430_v30, 5  ;;  %v525_v35 = vrot.slane %v430_v30, 1 }
 0x1a3   : > { %v4335_v37 = vpop.f32.mrf.mxu1  ;;  %v4343_v38 = vpop.f32.mrf.mxu0 }
 0x1a4   : > { %v492_v39 = vsel %vm491_vm3, 0.0, %v489_v33  ;;  %v527_v41 = vsel %vm491_vm3, 0.0, %v525_v35  ;;  %v7738_v38 = vmov 0  }
 0x1a5   : > { %v502_v42 = vmul.f32 %v501_v31, %v492_v39  ;;  %v433_v43 = vpop.f32.mrf.mxu1  ;;  %v485_v44 = vpop.f32.mrf.mxu0  ;;  %v511_v45 = vmul.f32 %v510_v34, %v492_v39  ;;  %v529_v46 = vmul.f32 %v527_v41, %v501_v31  ;;  %v534_v47 = vmul.f32 %v527_v41, %v510_v34 }
 0x1a6   : > { %v497_v48 = vmul.f32 %v496_v36, %v492_v39  ;;  %v528_v52 = vmul.f32 %v527_v41, %v496_v36  ;;  %v539_v54 = vmul.f32 %v527_v41, %v519_v40  ;;  %v520_v57 = vmul.f32 %v519_v40, %v492_v39 }
 0x1a7   : > { %v504_v49 = vrot.slane %v502_v42, 1  ;;  %v4336_v50 = vpop.f32.mrf.mxu1  ;;  %v4344_v51 = vpop.f32.mrf.mxu0  ;;  %v531_v53 = vrot.slane %v529_v46, 1  ;;  %v513_v56 = vrot.slane %v511_v45, 2  ;;  %v536_v59 = vrot.slane %v534_v47, 2 }
 0x1a8   : > { %v541_v63 = vrot.slane %v539_v54, 3  ;;  %v522_v0 = vrot.slane %v520_v57, 3  ;;  %v7744_v43 = vmov 1   ;;  %v7740_v44 = vmov 2  }
 0x1a9   : > { %v506_v55 = vadd.f32 %v504_v49, %v497_v48  ;;  %v533_v58 = vadd.f32 %v531_v53, %v528_v52  ;;  %v7736_v47 = vmov 3   ;;  %v5391_v51 = vsub.s32 5, %v5304_v24 }
 0x1ab   : > { %v515_v61 = vadd.f32 %v513_v56, %v506_v55  ;;  %v538_v62 = vadd.f32 %v536_v59, %v533_v58  ;;  %7855 = vst [vmem:[#allocation12_spill] sm:$0xff] %v5391_v51  ;;  %v565_v53 = vrot.slane %v5312_v26, %v5391_v51 }
 0x1ad   : > { %v543_v2 = vadd.f32 %v541_v63, %v538_v62  ;;  %v524_v4 = vadd.f32 %v522_v0, %v515_v61 }
 0x1af   : > { %v545_v5 = vrot.slane %v543_v2, 4 }
 0x1b1   : > { %v548_v6 = vsel %vm547_vm4, %v524_v4, %v545_v5 }
 0x1b2   : > { %v553_v7 = vadd.f32 %v552_v3, %v548_v6 }
 0x1b4   : > { %v4215_v8 = vmul.f32 -1.442695, %v553_v7 }
 0x1b6   : > { %4789 = vpow2.f32 %v4215_v8 }
 0x1c3   : > { %v4790_v9 = vpop.eup %4789 }
 0x1c4   : > { %v557_v10 = vadd.f32 1.0, %v4790_v9 }
 0x1c6   : > { %4791 = vrcp.f32 %v557_v10 }
 0x1d3   : > { %v4792_v11 = vpop.eup %4791 }
 0x1d4   : > { %v5341_v12 = vmul.f32 %v4792_v11, %v553_v7 }
 0x1d6   : > { %7854 = vst [vmem:[#allocation11_spill] sm:$0xff] %v5341_v12  ;;  %v561_v14 = vpack.c.bf16 %v5341_v12, %v5341_v12 }
 0x1d8   : > { %4354 = vmatmul.mubr.msk.bf16.vlgmr.msra.gmra.mxu1 %vm590_vm5, %v561_v14  ;;  %4366 = vmatmul.mubr.msk.bf16.vlgmr.msra.gmra.mxu0 %vm590_vm5, %v561_v14 }
 0x1d9   : > { %4370 = vmatpush3.bf16.msra.mxu1 %v4761_v13  ;;  %4377 = vmatprep.mubr.msk.bf16.mxu1 %vm5136_vm0, %v7734_v1 }
 0x1da   : > { %4371 = vmatprep.subr.bf16.mxu1 %v7734_v1  ;;  %4389 = vmatprep.mubr.msk.bf16.mxu0 %vm5136_vm0, %v7734_v1 }
 0x1dd   : > { %4372 = vmatpush3.bf16.msra.mxu1 %v4762_v15 }
 0x1de   : > { %4373 = vmatprep.subr.bf16.mxu1 %v7734_v1 }
 0x1e1   : > { %4374 = vmatpush3.bf16.msra.mxu1 %v4763_v16 }
 0x1e2   : > { %4375 = vmatprep.subr.bf16.mxu1 %v7734_v1 }
 0x1e5   : > { %4376 = vmatpush3.bf16.msra.mxu1 %v4764_v17 }
 0x1e6   : > { %4393 = vmatprep.subr.bf16.mxu1 %v7734_v1 }
 0x1e8   : > { %4378 = vmatmul.mubr.msk.bf16.vlgmr.msra.gmra.mxu1 %vm590_vm5, %v561_v14 }
 0x1e9   : > { %4397 = vmatprep.mubr.msk.bf16.mxu1 %vm5136_vm0, %v7734_v1 }
 0x298   : > { %v628_v18 = vpop.f32.mrf.mxu1  ;;  %v710_v19 = vpop.f32.mrf.mxu0 }
 0x299   : > { %781 = vxpose.xlu0.b32.start.end [1/1] (short) (narrow) %v710_v19, 64  ;;  %v1458_v20 = vrot.slane %v710_v19, 4  ;;  %v5403_v55 = vadd.f32 %v628_v18, %v565_v53 }
 0x29a   : > { %v4355_v21 = vpop.f32.mrf.mxu1  ;;  %v4367_v22 = vpop.f32.mrf.mxu0 }
 0x29b   : > { %1460 = vxpose.xlu1.b32.start.end [1/1] (short) (narrow) %v1458_v20, 64  ;;  %v637_v26 = vand.u32 2147483647, %v5403_v55  ;;  %v634_v19 = vmax.f32 %v5403_v55, 0.0  ;;  %vm635_vm7 = vcmp.ne.f32.partialorder %v5403_v55, %v5403_v55 }
 0x29c   : > { %v631_v23 = vpop.f32.mrf.mxu1  ;;  %v713_v30 = vpop.f32.mrf.mxu0 }
 0x29d   : > { %v638_v59 = vsub.f32 0.0, %v637_v26 }
 0x29e   : > { %v4356_v31 = vpop.f32.mrf.mxu1  ;;  %v4368_v33 = vpop.f32.mrf.mxu0 }
 0x29f   : > { %v639_v62 = vmul.f32 1.442695, %v638_v59  ;;  %v5489_v33 = vld [vmem:[%s7730_s4] sm:$0xff] }
 0x2a1   : > { %4793 = vpow2.f32 %v639_v62  ;;  %v5543_v62 = vsub.s32 7, %v5304_v24 }
 0x2a3   : > { %7870 = vst [vmem:[#allocation27_spill] sm:$0xff] %v5543_v62 }
 0x2a8   : > { %v774_v34 = vpop.f32.mrf.mxu1 }
 0x2a9   : > { %v1493_v39 = vrot.slane %v774_v34, 4 }
 0x2aa   : > { %v4379_v35 = vpop.f32.mrf.mxu1 }
 0x2ac   : > { %v777_v36 = vpop.f32.mrf.mxu1 }
 0x2ae   : > { %v4380_v37 = vpop.f32.mrf.mxu1  ;;  %v4794_v4 = vpop.eup %4793 }
 0x2af   : > { %v641_v6 = vadd.f32 1.0, %v4794_v4  ;;  %v644_v10 = vmul.f32 -0.5, %v4794_v4  ;;  %v647_v14 = vand.u32 2147483647, %v4794_v4 }
 0x2b1   : > { %4795 = vlog2.f32 %v641_v6  ;;  %v645_v13 = vadd.f32 1.0, %v644_v10  ;;  %vm648_vm6 = vcmp.lt.f32.partialorder %v647_v14, 0.0004427343 }
 0x2b3   : > { %v646_v17 = vmul.f32 %v4794_v4, %v645_v13  ;;  %v5549_v4 = vld [vmem:[%s7730_s4 + $0x8] sm:$0xff] }
 0x2b6   : > { %813 = vxpose.xlu0.b32.start.end [1/1] (short) (narrow) %v774_v34, 64 }
 0x2b9   : > { %4502 = vset.pattern.permute.xlu1 %v7738_v38 }
 0x2be   : > { %v4796_v11 = vpop.eup %4795 }
 0x2bf   : > { %v643_v15 = vmul.f32 0.6931472, %v4796_v11 }
 0x2c1   : > { %v649_v18 = vsel %vm648_vm6, %v646_v17, %v643_v15 }
 0x2c2   : > { %v650_v21 = vadd.f32 %v649_v18, %v634_v19 }
 0x2c4   : > { %v5472_v22 = vsel %vm635_vm7, %v5403_v55, %v650_v21 }
 0x2c5   : > { %v5481_v31 = vrot.slane %v5472_v22, %v5336_v60  ;;  %v5499_v36 = vrot.slane %v5472_v22, %v5391_v51  ;;  %v5528_v55 = vmul.f32 %v5472_v22, %v5341_v12  ;;  %v5536_v26 = vrot.slane %v5472_v22, %v5318_v28 }
 0x2c6   : > { %v5564_v11 = vrot.slane %v5472_v22, %v5543_v62  ;;  %v5571_v17 = vrot.slane %v5472_v22, %v5307_v25 }
 0x2c7   : > { %7862 = vst [vmem:[#allocation19_spill] sm:$0xff] %v5481_v31  ;;  %v1531_v35 = vmul.f32 %v5481_v31, %v5489_v33  ;;  %7864 = vst [vmem:[#allocation21_spill] sm:$0xff] %v5499_v36  ;;  %v850_v10 = vmul.f32 %v5536_v26, %v5549_v4 }
 0x2c9   : > { %v1539_v37 = vmul.f32 1.442695, %v1531_v35  ;;  %v859_v35 = vmul.f32 1.442695, %v850_v10 }
 0x2cb   : > { %4797 = vpow2.f32 %v1539_v37 }
 0x2d3   : > { %1495 = vxpose.xlu0.b32.start.end [1/1] (short) (narrow) %v1493_v39, 64 }
 0x2d8   : > { %v4798_v6 = vpop.eup %4797 }
 0x2d9   : > { %v1823_v13 = vmul.f32 0.0, %v4798_v6  ;;  %v1615_v6 = vmul.f32 %v5564_v11, %v5489_v33 }
 0x2fc   : > { %4506 = vset.pattern.permute.xlu0 %v7738_v38 }
 0x315   : > { %v797_v40 = vpop.trf.xlu0 }
 0x316   : > { %959 = vperm.xlu1 %4502, %v797_v40  }
 0x317   : > { %v1476_v41 = vpop.trf.xlu1 }
 0x318   : > { %1641 = vperm.xlu0 %4506, %v1476_v41  }
 0x319   : > { %v798_v42 = vpop.trf.xlu0 }
 0x31a   : > { %4503 = vset.pattern.permute.xlu1 %v7744_v43 }
 0x31b   : > { %1010 = vperm.xlu1 %4503, %v797_v40   ;;  %v1477_v56 = vpop.trf.xlu1 }
 0x31c   : > { %4508 = vset.pattern.permute.xlu0 %v7740_v44 }
 0x31d   : > { %v5374_v45 = vpop.trf.xlu0  ;;  %1736 = vperm.xlu0 %4508, %v1476_v41  }
 0x31f   : > { %4504 = vset.pattern.permute.xlu1 %v7740_v44  ;;  %v1478_v7 = vpop.trf.xlu1 }
 0x320   : > { %1054 = vperm.xlu1 %4504, %v797_v40  }
 0x321   : > { %v5377_v46 = vpop.trf.xlu0  ;;  %4509 = vset.pattern.permute.xlu0 %v7736_v47 }
 0x322   : > { %1780 = vperm.xlu0 %4509, %v1476_v41  }
 0x323   : > { %v5444_v8 = vpop.trf.xlu1 }
 0x324   : > { %4505 = vset.pattern.permute.xlu1 %v7736_v47 }
 0x325   : > { %v5381_v48 = vpop.trf.xlu0  ;;  %1098 = vperm.xlu1 %4505, %v797_v40   ;;  %v1559_v40 = vmul.f32 %v5499_v36, %v5489_v33 }
 0x326   : > { %4511 = vset.pattern.permute.xlu0 %v7744_v43 }
 0x327   : > { %1014 = vperm.xlu0 %4511, %v798_v42   ;;  %v5449_v9 = vpop.trf.xlu1 }
 0x329   : > { %v5384_v49 = vpop.trf.xlu0  ;;  %4507 = vset.pattern.permute.xlu1 %v7744_v43 }
 0x32a   : > { %1692 = vperm.xlu1 %4507, %v1476_v41  }
 0x32b   : > { %4513 = vset.pattern.permute.xlu0 %v7736_v47  ;;  %v5477_v30 = vpop.trf.xlu1 }
 0x32c   : > { %1102 = vperm.xlu0 %4513, %v798_v42  }
 0x32d   : > { %v5388_v50 = vpop.trf.xlu0 }
 0x32e   : > { %4510 = vset.pattern.permute.xlu1 %v7738_v38 }
 0x32f   : > { %964 = vperm.xlu1 %4510, %v798_v42   ;;  %v5511_v41 = vpop.trf.xlu1 }
 0x330   : > { %1106 = vperm.xlu0 %4513, %v5374_v45  }
 0x331   : > { %v5395_v52 = vpop.trf.xlu0 }
 0x332   : > { %7856 = vst [vmem:[#allocation13_spill] sm:$0xff] %v5395_v52 }
 0x333   : > { %4512 = vset.pattern.permute.xlu1 %v7740_v44 }
 0x334   : > { %1058 = vperm.xlu1 %4512, %v798_v42   ;;  %1110 = vperm.xlu0 %4513, %v5377_v46   ;;  %v1567_v42 = vmul.f32 1.442695, %v1559_v40 }
 0x335   : > { %v5401_v54 = vpop.trf.xlu0 }
 0x336   : > { %4799 = vpow2.f32 %v1567_v42 }
 0x337   : > { %4801 = vpow2.f32 %v859_v35  ;;  %v7876_v35 = vmov 2  }
 0x338   : > { %4514 = vset.pattern.permute.xlu1 %v7738_v38  ;;  %4533 = vset.pattern.permute.xlu0 %v7744_v43 }
 0x339   : > { %v5407_v57 = vpop.trf.xlu0  ;;  %1243 = vperm.xlu0 %4533, %v5401_v54   ;;  %1646 = vperm.xlu1 %4514, %v1477_v56  }
 0x33d   : > { %v5411_v58 = vpop.trf.xlu0  ;;  %4534 = vset.pattern.permute.xlu0 %v7740_v44  ;;  %4515 = vset.pattern.permute.xlu1 %v7744_v43 }
 0x33e   : > { %1320 = vperm.xlu0 %4534, %v5401_v54   ;;  %1696 = vperm.xlu1 %4515, %v1477_v56  }
 0x341   : > { %v5416_v61 = vpop.trf.xlu0 }
 0x342   : > { %4535 = vset.pattern.permute.xlu0 %v7736_v47  ;;  %4516 = vset.pattern.permute.xlu1 %v7740_v44 }
 0x343   : > { %1397 = vperm.xlu0 %4535, %v5401_v54   ;;  %1740 = vperm.xlu1 %4516, %v1477_v56   ;;  %v4800_v19 = vpop.eup %4799 }
 0x345   : > { %v5421_v63 = vpop.trf.xlu0 }
 0x346   : > { %7857 = vst [vmem:[#allocation14_spill] sm:$0xff] %v5421_v63 }
 0x347   : > { %1114 = vperm.xlu0 %4535, %v5381_v48   ;;  %4517 = vset.pattern.permute.xlu1 %v7736_v47 }
 0x348   : > { %1784 = vperm.xlu1 %4517, %v1477_v56   ;;  %v5531_v56 = vsub.s32 6, %v5304_v24 }
 0x349   : > { %v5425_v0 = vpop.trf.xlu0 }
 0x34a   : > { %7858 = vst [vmem:[#allocation15_spill] sm:$0xff] %v5425_v0  ;;  %7869 = vst [vmem:[#allocation26_spill] sm:$0xff] %v5531_v56  ;;  %v5540_v59 = vrot.slane %v5472_v22, %v5531_v56  ;;  %v5582_v21 = vrot.slane %v5528_v55, %v5531_v56  ;;  %v5637_v56 = vrot.slane %v5528_v55, %v5318_v28 }
 0x34b   : > { %4538 = vset.pattern.permute.xlu0 %v7738_v38 }
 0x34c   : > { %4518 = vset.pattern.permute.xlu1 %v7738_v38  ;;  %v1587_v15 = vmul.f32 %v5540_v59, %v5489_v33  ;;  %7873 = vst [vmem:[#allocation30_spill] sm:$0xff] %v5582_v21 }
 0x34d   : > { %v5429_v2 = vpop.trf.xlu0  ;;  %969 = vperm.xlu1 %4518, %v5374_v45  }
 0x34e   : > { %7859 = vst [vmem:[#allocation16_spill] sm:$0xff] %v5429_v2  ;;  %v1595_v42 = vmul.f32 1.442695, %v1587_v15  ;;  %v5602_v15 = vrot.slane %v5528_v55, %v5543_v62 }
 0x350   : > { %7874 = vst [vmem:[#allocation31_spill] sm:$0xff] %v5602_v15  ;;  %4803 = vpow2.f32 %v1595_v42 }
 0x351   : > { %v5432_v3 = vpop.trf.xlu0  ;;  %4519 = vset.pattern.permute.xlu1 %v7744_v43 }
 0x352   : > { %7860 = vst [vmem:[#allocation17_spill] sm:$0xff] %v5432_v3  ;;  %1018 = vperm.xlu1 %4519, %v5374_v45  }
 0x355   : > { %v5436_v5 = vpop.trf.xlu0 }
 0x356   : > { %1841 = vperm.xlu0 %4538, %v5436_v5   ;;  %4520 = vset.pattern.permute.xlu1 %v7740_v44 }
 0x357   : > { %1062 = vperm.xlu1 %4520, %v5374_v45  }
 0x359   : > { %v5457_v16 = vpop.trf.xlu0 }
 0x35a   : > { %4540 = vset.pattern.permute.xlu0 %v7740_v44 }
 0x35b   : > { %2002 = vperm.xlu0 %4540, %v5436_v5   ;;  %4521 = vset.pattern.permute.xlu1 %v7738_v38 }
 0x35c   : > { %1651 = vperm.xlu1 %4521, %v1478_v7  }
 0x35d   : > { %v5463_v20 = vpop.trf.xlu0 }
 0x35f   : > { %4541 = vset.pattern.permute.xlu0 %v7736_v47 }
 0x360   : > { %2079 = vperm.xlu0 %4541, %v5436_v5   ;;  %4522 = vset.pattern.permute.xlu1 %v7744_v43 }
 0x361   : > { %1700 = vperm.xlu1 %4522, %v1478_v7   ;;  %v5475_v23 = vpop.trf.xlu0 }
 0x362   : > { %7861 = vst [vmem:[#allocation18_spill] sm:$0xff] %v5475_v23 }
 0x364   : > { %4543 = vset.pattern.permute.xlu0 %v7744_v43 }
 0x365   : > { %4523 = vset.pattern.permute.xlu1 %v7740_v44  ;;  %1708 = vperm.xlu0 %4543, %v5449_v9   ;;  %v5492_v34 = vpop.trf.xlu0 }
 0x366   : > { %1744 = vperm.xlu1 %4523, %v1478_v7   ;;  %7863 = vst [vmem:[#allocation20_spill] sm:$0xff] %v5492_v34 }
 0x369   : > { %4544 = vset.pattern.permute.xlu0 %v7740_v44  ;;  %v5504_v39 = vpop.trf.xlu0 }
 0x36a   : > { %4524 = vset.pattern.permute.xlu1 %v7736_v47  ;;  %1752 = vperm.xlu0 %4544, %v5449_v9   ;;  %7865 = vst [vmem:[#allocation22_spill] sm:$0xff] %v5504_v39 }
 0x36b   : > { %1788 = vperm.xlu1 %4524, %v1478_v7  }
 0x36d   : > { %v5515_v45 = vpop.trf.xlu0 }
 0x36e   : > { %4553 = vset.pattern.permute.xlu0 %v7736_v47  ;;  %7866 = vst [vmem:[#allocation23_spill] sm:$0xff] %v5515_v45 }
 0x36f   : > { %4525 = vset.pattern.permute.xlu1 %v7738_v38  ;;  %1118 = vperm.xlu0 %4553, %v5384_v49  }
 0x370   : > { %974 = vperm.xlu1 %4525, %v5377_v46  }
 0x371   : > { %v5524_v53 = vpop.trf.xlu0 }
 0x372   : > { %7868 = vst [vmem:[#allocation25_spill] sm:$0xff] %v5524_v53 }
 0x373   : > { %4555 = vset.pattern.permute.xlu0 %v7744_v43 }
 0x374   : > { %4526 = vset.pattern.permute.xlu1 %v7744_v43  ;;  %1929 = vperm.xlu0 %4555, %v5457_v16  }
 0x375   : > { %1022 = vperm.xlu1 %4526, %v5377_v46  }
 0x378   : > { %4560 = vset.pattern.permute.xlu0 %v7740_v44 }
 0x379   : > { %4527 = vset.pattern.permute.xlu1 %v7740_v44  ;;  %1756 = vperm.xlu0 %4560, %v5477_v30  }
 0x37a   : > { %1066 = vperm.xlu1 %4527, %v5377_v46   ;;  %v5520_v46 = vpop.trf.xlu1 }
 0x37b   : > { %7867 = vst [vmem:[#allocation24_spill] sm:$0xff] %v5520_v46 }
 0x37d   : > { %4565 = vset.pattern.permute.xlu0 %v7736_v47 }
 0x37e   : > { %4528 = vset.pattern.permute.xlu1 %v7738_v38  ;;  %1405 = vperm.xlu0 %4565, %v5411_v58  }
 0x37f   : > { %1656 = vperm.xlu1 %4528, %v5444_v8  }
 0x382   : > { %1409 = vperm.xlu0 %4565, %v5416_v61  }
 0x383   : > { %4529 = vset.pattern.permute.xlu1 %v7744_v43 }
 0x384   : > { %1704 = vperm.xlu1 %4529, %v5444_v8  }
 0x386   : > { %4585 = vset.pattern.permute.xlu0 %v7738_v38 }
 0x387   : > { %1856 = vperm.xlu0 %4585, %v5475_v23  }
 0x388   : > { %4530 = vset.pattern.permute.xlu1 %v7740_v44 }
 0x389   : > { %1748 = vperm.xlu1 %4530, %v5444_v8  }
 0x38b   : > { %4586 = vset.pattern.permute.xlu0 %v7744_v43 }
 0x38c   : > { %1937 = vperm.xlu0 %4586, %v5475_v23  }
 0x38d   : > { %4531 = vset.pattern.permute.xlu1 %v7736_v47 }
 0x38e   : > { %1792 = vperm.xlu1 %4531, %v5444_v8   ;;  %v5557_v8 = vrot.slane %v5528_v55, %v5336_v60  ;;  %v5627_v60 = vrot.slane %v5528_v55, %v5391_v51  ;;  %v7881_v51 = vmov 3  }
 0x390   : > { %4589 = vset.pattern.permute.xlu0 %v7738_v38  ;;  %7871 = vst [vmem:[#allocation28_spill] sm:$0xff] %v5557_v8  ;;  %7879 = vst [vmem:[#allocation34_spill] sm:$0xff] %v5627_v60 }
 0x391   : > { %1676 = vperm.xlu0 %4589, %v5520_v46   ;;  %v5552_v7 = vpop.permute.xlu1 %959 }
 0x392   : > { %4532 = vset.pattern.permute.xlu1 %v7738_v38 }
 0x393   : > { %v1642_v24 = vpop.permute.xlu0 %1641  ;;  %1159 = vperm.xlu1 %4532, %v5401_v54  }
 0x394   : > { %v1683_v14 = vmul.f32 %v5557_v8, %v1642_v24  ;;  %v5589_v24 = vrot.slane %v5472_v22, %v5315_v27 }
 0x395   : > { %4596 = vset.pattern.permute.xlu0 %v7736_v47 }
 0x396   : > { %v5574_v54 = vadd.f32 %v1823_v13, %v1683_v14  ;;  %1413 = vperm.xlu0 %4596, %v5421_v63   ;;  %v5577_v18 = vpop.permute.xlu1 %1010  ;;  %v878_v14 = vmul.f32 %v5571_v17, %v5549_v4 }
 0x397   : > { %979 = vperm.xlu1 %4532, %v5381_v48  }
 0x398   : > { %7872 = vst [vmem:[#allocation29_spill] sm:$0xff] %v5574_v54  ;;  %v1908_v37 = vmul.f32 %v4800_v19, %v5574_v54  ;;  %v1737_v40 = vpop.permute.xlu0 %1736  ;;  %v1623_v19 = vmul.f32 1.442695, %v1615_v6  ;;  %v887_v47 = vmul.f32 1.442695, %v878_v14  ;;  %v877_v54 = vmul.f32 %v5571_v17, %v5489_v33 }
 0x399   : > { %v1771_v13 = vmul.f32 %v5582_v21, %v1737_v40  ;;  %v5606_v40 = vrot.slane %v5472_v22, %v5321_v29  ;;  %v5618_v22 = vrot.slane %v5528_v55, %v5307_v25 }
 0x39a   : > { %4597 = vset.pattern.permute.xlu0 %v7738_v38  ;;  %v906_v38 = vmul.f32 %v5589_v24, %v5549_v4  ;;  %4805 = vpow2.f32 %v1623_v19  ;;  %v7880_v19 = vmov 1  }
 0x39b   : > { %4536 = vset.pattern.permute.xlu1 %v7744_v43  ;;  %1861 = vperm.xlu0 %4597, %v5492_v34   ;;  %v5597_v10 = vpop.permute.xlu1 %1054  ;;  %7875 = vst [vmem:[#allocation32_spill] sm:$0xff] %v5606_v40  ;;  %7877 = vst [vmem:[#allocation33_spill] sm:$0xff] %v5618_v22  ;;  %4807 = vpow2.f32 %v887_v47 }
 0x39c   : > { %1026 = vperm.xlu1 %4536, %v5381_v48   ;;  %v915_v42 = vmul.f32 1.442695, %v906_v38 }
 0x39d   : > { %v1781_v1 = vpop.permute.xlu0 %1780 }
 0x39e   : > { %v1815_v44 = vmul.f32 %v5602_v15, %v1781_v1  ;;  %v934_v1 = vmul.f32 %v5606_v40, %v5549_v4  ;;  %4809 = vpow2.f32 %v915_v42 }
 0x39f   : > { %4598 = vset.pattern.permute.xlu0 %v7744_v43  ;;  %v7878_v43 = vmov 0  }
 0x3a0   : > { %4537 = vset.pattern.permute.xlu1 %v7876_v35  ;;  %1941 = vperm.xlu0 %4598, %v5492_v34   ;;  %v5614_v62 = vpop.permute.xlu1 %1098  ;;  %v943_v47 = vmul.f32 1.442695, %v934_v1 }
 0x3a1   : > { %1070 = vperm.xlu1 %4537, %v5381_v48   ;;  %v4802_v48 = vpop.eup %4801 }
 0x3a2   : > { %v1015_v6 = vpop.permute.xlu0 %1014  ;;  %4811 = vpow2.f32 %v943_v47 }
 0x3a3   : > { %v1046_v14 = vmul.f32 %v5618_v22, %v1015_v6  ;;  %v4804_v6 = vpop.eup %4803 }
 0x3a4   : > { %4600 = vset.pattern.permute.xlu0 %v7878_v43 }
 0x3a5   : > { %4539 = vset.pattern.permute.xlu1 %v7880_v19  ;;  %1184 = vperm.xlu0 %4600, %v5425_v0   ;;  %v1693_v25 = vpop.permute.xlu1 %1692 }
 0x3a6   : > { %v1727_v38 = vmul.f32 %v5627_v60, %v1693_v25  ;;  %1925 = vperm.xlu1 %4539, %v5436_v5  }
 0x3a8   : > { %v5633_v12 = vadd.f32 %v1908_v37, %v1727_v38  ;;  %v1142_v37 = vmul.f32 0.0, %v4802_v48  ;;  %v4806_v38 = vpop.eup %4805 }
 0x3a9   : > { %4603 = vset.pattern.permute.xlu0 %v7881_v51  ;;  %v4808_v32 = vpop.eup %4807 }
 0x3aa   : > { %4542 = vset.pattern.permute.xlu1 %v7878_v43  ;;  %1417 = vperm.xlu0 %4603, %v5425_v0   ;;  %v965_v42 = vpop.permute.xlu1 %964  ;;  %v1985_v25 = vmul.f32 %v4804_v6, %v5633_v12  ;;  %v1103_v0 = vpop.permute.xlu0 %1102 }
 0x3ab   : > { %v1002_v5 = vmul.f32 %v5637_v56, %v965_v42  ;;  %1661 = vperm.xlu1 %4542, %v5449_v9  }
 0x3ac   : > { %v5645_v1 = vadd.f32 %v1985_v25, %v1771_v13  ;;  %v5659_v13 = vrot.slane %v5528_v55, %v5315_v27 }
 0x3ad   : > { %v5647_v28 = vadd.f32 %v1142_v37, %v1002_v5  ;;  %v4810_v5 = vpop.eup %4809 }
 0x3ae   : > { %7882 = vst [vmem:[#allocation35_spill] sm:$0xff] %v5645_v1  ;;  %4604 = vset.pattern.permute.xlu0 %v7878_v43  ;;  %v2062_v47 = vmul.f32 %v4806_v38, %v5645_v1  ;;  %7885 = vst [vmem:[#allocation38_spill] sm:$0xff] %v5659_v13 }
 0x3af   : > { %7883 = vst [vmem:[#allocation36_spill] sm:$0xff] %v5647_v28  ;;  %4545 = vset.pattern.permute.xlu1 %v7881_v51  ;;  %1866 = vperm.xlu0 %4604, %v5504_v39   ;;  %v1059_v6 = vpop.permute.xlu1 %1058  ;;  %v1227_v42 = vmul.f32 %v4808_v32, %v5647_v28 }
 0x3b0   : > { %1796 = vperm.xlu1 %4545, %v5449_v9   ;;  %v5655_v48 = vadd.f32 %v2062_v47, %v1815_v44  ;;  %v1090_v37 = vmul.f32 %v5659_v13, %v1059_v6  ;;  %v5672_v44 = vrot.slane %v5528_v55, %v5321_v29 }
 0x3b1   : > { %v5661_v25 = vadd.f32 %v1227_v42, %v1046_v14  ;;  %v4812_v14 = vpop.eup %4811 }
 0x3b2   : > { %7884 = vst [vmem:[#allocation37_spill] sm:$0xff] %v5655_v48  ;;  %v1134_v47 = vmul.f32 %v5672_v44, %v1103_v0 }
 0x3b3   : > { %4605 = vset.pattern.permute.xlu0 %v7880_v19  ;;  %v1304_v38 = vmul.f32 %v4810_v5, %v5661_v25 }
 0x3b4   : > { %4546 = vset.pattern.permute.xlu1 %v7878_v43  ;;  %1945 = vperm.xlu0 %4605, %v5504_v39   ;;  %v5668_v32 = vpop.permute.xlu1 %1646 }
 0x3b5   : > { %1164 = vperm.xlu1 %4546, %v5407_v57   ;;  %v5675_v9 = vadd.f32 %v1304_v38, %v1090_v37 }
 0x3b7   : > { %v1381_v6 = vmul.f32 %v4812_v14, %v5675_v9 }
 0x3b8   : > { %4606 = vset.pattern.permute.xlu0 %v7881_v51 }
 0x3b9   : > { %4547 = vset.pattern.permute.xlu1 %v7880_v19  ;;  %2099 = vperm.xlu0 %4606, %v5504_v39   ;;  %v5682_v42 = vpop.permute.xlu1 %1696  ;;  %v5684_v5 = vadd.f32 %v1381_v6, %v1134_v47 }
 0x3ba   : > { %1247 = vperm.xlu1 %4547, %v5407_v57  }
 0x3bd   : > { %4607 = vset.pattern.permute.xlu0 %v7878_v43 }
 0x3be   : > { %4548 = vset.pattern.permute.xlu1 %v7876_v35  ;;  %1189 = vperm.xlu0 %4607, %v5429_v2   ;;  %v5690_v0 = vpop.permute.xlu1 %1740 }
 0x3bf   : > { %7886 = vst [vmem:[#allocation39_spill] sm:$0xff] %v5690_v0  ;;  %1324 = vperm.xlu1 %4548, %v5407_v57  }
 0x3c2   : > { %4613 = vset.pattern.permute.xlu0 %v7876_v35 }
 0x3c3   : > { %4549 = vset.pattern.permute.xlu1 %v7881_v51  ;;  %2026 = vperm.xlu0 %4613, %v5515_v45   ;;  %v5696_v55 = vpop.permute.xlu1 %1784 }
 0x3c4   : > { %7887 = vst [vmem:[#allocation40_spill] sm:$0xff] %v5696_v55  ;;  %1401 = vperm.xlu1 %4549, %v5407_v57   ;;  %v5711_v57 = vpop.permute.xlu0 %1106 }
 0x3c7   : > { %4616 = vset.pattern.permute.xlu0 %v7880_v19 }
 0x3c8   : > { %4550 = vset.pattern.permute.xlu1 %v7878_v43  ;;  %1271 = vperm.xlu0 %4616, %v5432_v3   ;;  %v5702_v37 = vpop.permute.xlu1 %969  ;;  %v5719_v47 = vpop.permute.xlu0 %1110 }
 0x3c9   : > { %984 = vperm.xlu1 %4550, %v5384_v49  }
 0x3cc   : > { %4617 = vset.pattern.permute.xlu0 %v7876_v35  ;;  %v5727_v29 = vpop.permute.xlu0 %1243 }
 0x3cd   : > { %4551 = vset.pattern.permute.xlu1 %v7880_v19  ;;  %1348 = vperm.xlu0 %4617, %v5432_v3   ;;  %v5708_v38 = vpop.permute.xlu1 %1018 }
 0x3ce   : > { %1030 = vperm.xlu1 %4551, %v5384_v49  }
 0x3d1   : > { %4618 = vset.pattern.permute.xlu0 %v7881_v51 }
 0x3d2   : > { %4552 = vset.pattern.permute.xlu1 %v7876_v35  ;;  %1425 = vperm.xlu0 %4618, %v5432_v3   ;;  %v5716_v14 = vpop.permute.xlu1 %1062  ;;  %v5736_v3 = vpop.permute.xlu0 %1320 }
 0x3d3   : > { %1074 = vperm.xlu1 %4552, %v5384_v49  }
 0x3d6   : > { %4620 = vset.pattern.permute.xlu0 %v7876_v35  ;;  %v5743_v45 = vpop.permute.xlu0 %1397 }
 0x3d7   : > { %4554 = vset.pattern.permute.xlu1 %v7878_v43  ;;  %v5723_v6 = vpop.permute.xlu1 %1651  ;;  %2030 = vperm.xlu0 %4620, %v5524_v53  }
 0x3d8   : > { %7888 = vst [vmem:[#allocation41_spill] sm:$0xff] %v5723_v6  ;;  %1846 = vperm.xlu1 %4554, %v5457_v16   ;;  %v1532_v6 = vmul.f32 %v5481_v31, %v5549_v4 }
 0x3da   : > { %v5749_v39 = vpop.permute.xlu0 %1114  ;;  %v1541_v46 = vmul.f32 1.442695, %v1532_v6 }
 0x3dc   : > { %4556 = vset.pattern.permute.xlu1 %v7876_v35  ;;  %v5730_v27 = vpop.permute.xlu1 %1700  ;;  %4813 = vpow2.f32 %v1541_v46  ;;  %v5793_v46 = vld [vmem:[%s7730_s4 + $0x18] sm:$0xff] }
 0x3dd   : > { %7889 = vst [vmem:[#allocation42_spill] sm:$0xff] %v5730_v27  ;;  %2006 = vperm.xlu1 %4556, %v5457_v16   ;;  %7900 = vst [vmem:[#allocation53_spill] sm:$0xff] %v5793_v46  ;;  %v852_v48 = vmul.f32 %v5536_v26, %v5793_v46 }
 0x3df   : > { %v863_v1 = vmul.f32 1.442695, %v852_v48  ;;  %v885_v48 = vmul.f32 1.442695, %v877_v54 }
 0x3e1   : > { %4557 = vset.pattern.permute.xlu1 %v7881_v51  ;;  %v5734_v49 = vpop.permute.xlu1 %1744 }
 0x3e2   : > { %7890 = vst [vmem:[#allocation43_spill] sm:$0xff] %v5734_v49  ;;  %2083 = vperm.xlu1 %4557, %v5457_v16   ;;  %v5755_v16 = vpop.permute.xlu0 %1841 }
 0x3e3   : > { %7892 = vst [vmem:[#allocation45_spill] sm:$0xff] %v5755_v16 }
 0x3e6   : > { %4558 = vset.pattern.permute.xlu1 %v7878_v43  ;;  %v5740_v53 = vpop.permute.xlu1 %1788  ;;  %v5761_v27 = vpop.permute.xlu0 %2002 }
 0x3e7   : > { %7891 = vst [vmem:[#allocation44_spill] sm:$0xff] %v5740_v53  ;;  %1666 = vperm.xlu1 %4558, %v5477_v30   ;;  %7893 = vst [vmem:[#allocation46_spill] sm:$0xff] %v5761_v27 }
 0x3e9   : > { %v4814_v16 = vpop.eup %4813 }
 0x3eb   : > { %4559 = vset.pattern.permute.xlu1 %v7880_v19  ;;  %v5746_v2 = vpop.permute.xlu1 %974 }
 0x3ec   : > { %1712 = vperm.xlu1 %4559, %v5477_v30  }
 0x3f0   : > { %4561 = vset.pattern.permute.xlu1 %v7881_v51  ;;  %v5752_v49 = vpop.permute.xlu1 %1022 }
 0x3f1   : > { %1800 = vperm.xlu1 %4561, %v5477_v30   ;;  %v5769_v30 = vpop.permute.xlu0 %2079 }
 0x3f2   : > { %7895 = vst [vmem:[#allocation48_spill] sm:$0xff] %v5769_v30  ;;  %v5786_v30 = vld [vmem:[%s7730_s4 + $0x10] sm:$0xff] }
 0x3f3   : > { %7899 = vst [vmem:[#allocation52_spill] sm:$0xff] %v5786_v30 }
 0x3f5   : > { %4562 = vset.pattern.permute.xlu1 %v7878_v43  ;;  %v5758_v53 = vpop.permute.xlu1 %1066  ;;  %v5775_v28 = vpop.permute.xlu0 %1708 }
 0x3f6   : > { %1169 = vperm.xlu1 %4562, %v5411_v58   ;;  %7897 = vst [vmem:[#allocation50_spill] sm:$0xff] %v5775_v28 }
 0x3fa   : > { %4563 = vset.pattern.permute.xlu1 %v7880_v19  ;;  %v5764_v34 = vpop.permute.xlu1 %1656 }
 0x3fb   : > { %7894 = vst [vmem:[#allocation47_spill] sm:$0xff] %v5764_v34  ;;  %1251 = vperm.xlu1 %4563, %v5411_v58   ;;  %v1560_v34 = vmul.f32 %v5499_v36, %v5549_v4  ;;  %v1824_v36 = vmul.f32 0.0, %v4814_v16  ;;  %v905_v16 = vmul.f32 %v5589_v24, %v5489_v33 }
 0x3fd   : > { %v1569_v6 = vmul.f32 1.442695, %v1560_v34  ;;  %v5806_v34 = vld [vmem:[%s7730_s4 + $0x20] sm:$0xff] }
 0x3ff   : > { %4564 = vset.pattern.permute.xlu1 %v7876_v35  ;;  %v5772_v63 = vpop.permute.xlu1 %1704  ;;  %4815 = vpow2.f32 %v1569_v6  ;;  %v1684_v6 = vmul.f32 %v5557_v8, %v5668_v32 }
 0x400   : > { %7896 = vst [vmem:[#allocation49_spill] sm:$0xff] %v5772_v63  ;;  %1328 = vperm.xlu1 %4564, %v5411_v58   ;;  %v849_v58 = vmul.f32 %v5536_v26, %v5489_v33  ;;  %v851_v63 = vmul.f32 %v5536_v26, %v5786_v30 }
 0x402   : > { %v857_v15 = vmul.f32 1.442695, %v849_v58  ;;  %v861_v55 = vmul.f32 1.442695, %v851_v63  ;;  %v879_v63 = vmul.f32 %v5571_v17, %v5786_v30 }
 0x404   : > { %4566 = vset.pattern.permute.xlu1 %v7878_v43  ;;  %v5780_v23 = vpop.permute.xlu1 %1748  ;;  %4817 = vpow2.f32 %v857_v15  ;;  %v880_v15 = vmul.f32 %v5571_v17, %v5793_v46 }
 0x405   : > { %7898 = vst [vmem:[#allocation51_spill] sm:$0xff] %v5780_v23  ;;  %989 = vperm.xlu1 %4566, %v5388_v50   ;;  %v5798_v23 = vpop.permute.xlu0 %1752  ;;  %4819 = vpow2.f32 %v861_v55  ;;  %v889_v55 = vmul.f32 1.442695, %v879_v63  ;;  %v913_v63 = vmul.f32 1.442695, %v905_v16 }
 0x406   : > { %7902 = vst [vmem:[#allocation55_spill] sm:$0xff] %v5798_v23  ;;  %v853_v23 = vmul.f32 %v5536_v26, %v5806_v34  ;;  %4821 = vpow2.f32 %v863_v1  ;;  %v891_v1 = vmul.f32 1.442695, %v880_v15 }
 0x409   : > { %4567 = vset.pattern.permute.xlu1 %v7880_v19  ;;  %v5796_v28 = vpop.permute.xlu1 %1792  ;;  %v5816_v27 = vpop.permute.xlu0 %1118 }
 0x40a   : > { %7901 = vst [vmem:[#allocation54_spill] sm:$0xff] %v5796_v28  ;;  %1034 = vperm.xlu1 %4567, %v5388_v50   ;;  %7904 = vst [vmem:[#allocation57_spill] sm:$0xff] %v5816_v27  ;;  %v5830_v27 = vadd.f32 %v1824_v36, %v1684_v6  ;;  %v908_v6 = vmul.f32 %v5589_v24, %v5793_v46 }
 0x40c   : > { %v4816_v52 = vpop.eup %4815 }
 0x40d   : > { %v1930_v32 = vpop.permute.xlu0 %1929  ;;  %v1909_v36 = vmul.f32 %v4816_v52, %v5830_v27  ;;  %v909_v52 = vmul.f32 %v5589_v24, %v5806_v34 }
 0x40e   : > { %4568 = vset.pattern.permute.xlu1 %v7876_v35  ;;  %v5811_v28 = vpop.permute.xlu1 %1159 }
 0x40f   : > { %7903 = vst [vmem:[#allocation56_spill] sm:$0xff] %v5811_v28  ;;  %1078 = vperm.xlu1 %4568, %v5388_v50   ;;  %v865_v28 = vmul.f32 1.442695, %v853_v23  ;;  %v881_v23 = vmul.f32 %v5571_v17, %v5806_v34 }
 0x411   : > { %4823 = vpow2.f32 %v865_v28  ;;  %v1728_v28 = vmul.f32 %v5627_v60, %v5682_v42  ;;  %v893_v54 = vmul.f32 1.442695, %v881_v23  ;;  %v5847_v15 = vpop.permute.xlu0 %1756  ;;  %v4818_v0 = vpop.eup %4817  ;;  %v1001_v42 = vmul.f32 %v5637_v56, %v5552_v7 }
 0x412   : > { %v5822_v58 = vpop.permute.xlu1 %979  ;;  %4825 = vpow2.f32 %v885_v48  ;;  %7905 = vst [vmem:[#allocation58_spill] sm:$0xff] %v5847_v15  ;;  %v919_v23 = vmul.f32 1.442695, %v908_v6  ;;  %v1003_v15 = vmul.f32 %v5637_v56, %v5702_v37  ;;  %v1004_v7 = vmul.f32 %v5637_v56, %v5746_v2 }
 0x413   : > { %4569 = vset.pattern.permute.xlu1 %v7881_v51  ;;  %4827 = vpow2.f32 %v889_v55  ;;  %v5852_v31 = vadd.f32 %v1909_v36, %v1728_v28  ;;  %v4820_v55 = vpop.eup %4819  ;;  %v933_v28 = vmul.f32 %v5606_v40, %v5489_v33  ;;  %v935_v36 = vmul.f32 %v5606_v40, %v5786_v30 }
 0x414   : > { %1122 = vperm.xlu1 %4569, %v5388_v50   ;;  %v907_v50 = vmul.f32 %v5589_v24, %v5786_v30  ;;  %4829 = vpow2.f32 %v891_v1  ;;  %v4822_v1 = vpop.eup %4821  ;;  %v936_v30 = vmul.f32 %v5606_v40, %v5793_v46  ;;  %v1005_v60 = vmul.f32 %v5637_v56, %v5822_v58 }
 0x415   : > { %4831 = vpow2.f32 %v893_v54  ;;  %v1957_v16 = vmul.f32 %v1930_v32, %v5852_v31  ;;  %v5868_v6 = vpop.permute.xlu0 %1405  ;;  %v1144_v37 = vmul.f32 0.0, %v4822_v1  ;;  %v1045_v58 = vmul.f32 %v5618_v22, %v5577_v18 }
 0x416   : > { %v917_v21 = vmul.f32 1.442695, %v907_v50  ;;  %4833 = vpow2.f32 %v913_v63  ;;  %v1141_v50 = vmul.f32 0.0, %v4818_v0  ;;  %v921_v0 = vmul.f32 1.442695, %v909_v52 }
 0x417   : > { %v5834_v8 = vpop.permute.xlu1 %1026  ;;  %v1965_v2 = vsel %vm590_vm5, %v1957_v16, 0.0  ;;  %v1047_v18 = vmul.f32 %v5618_v22, %v5708_v38 }
 0x418   : > { %4570 = vset.pattern.permute.xlu1 %v7878_v43  ;;  %4835 = vpow2.f32 %v917_v21  ;;  %v5872_v33 = vadd.f32 %v1141_v50, %v1001_v42  ;;  %v1143_v21 = vmul.f32 0.0, %v4820_v55  ;;  %v937_v42 = vmul.f32 %v5606_v40, %v5806_v34 }
 0x419   : > { %1851 = vperm.xlu1 %4570, %v5463_v20   ;;  %4837 = vpow2.f32 %v919_v23  ;;  %v5887_v50 = vadd.f32 %v1144_v37, %v1004_v7 }
 0x41a   : > { %v5885_v55 = vadd.f32 %v1143_v21, %v1003_v15  ;;  %4839 = vpow2.f32 %v921_v0  ;;  %v1048_v21 = vmul.f32 %v5618_v22, %v5752_v49 }
 0x41c   : > { %v5849_v48 = vpop.permute.xlu1 %1070 }
 0x41d   : > { %4571 = vset.pattern.permute.xlu1 %v7880_v19 }
 0x41e   : > { %1933 = vperm.xlu1 %4571, %v5463_v20   ;;  %v4824_v63 = vpop.eup %4823 }
 0x41f   : > { %v4826_v23 = vpop.eup %4825  ;;  %v1145_v1 = vmul.f32 0.0, %v4824_v63  ;;  %v949_v63 = vmul.f32 1.442695, %v937_v42 }
 0x420   : > { %v1226_v16 = vmul.f32 %v4826_v23, %v5872_v33 }
 0x421   : > { %v1926_v54 = vpop.permute.xlu1 %1925  ;;  %v5898_v15 = vadd.f32 %v1145_v1, %v1005_v60 }
 0x422   : > { %v1956_v32 = vmul.f32 %v1926_v54, %v5633_v12  ;;  %4572 = vset.pattern.permute.xlu1 %v7876_v35  ;;  %v941_v54 = vmul.f32 1.442695, %v933_v28  ;;  %v945_v28 = vmul.f32 1.442695, %v935_v36 }
 0x423   : > { %2010 = vperm.xlu1 %4572, %v5463_v20   ;;  %7906 = vst [vmem:[#allocation59_spill] sm:$0xff] %v5898_v15 }
 0x424   : > { %v1964_v12 = vsel %vm590_vm5, %v1956_v32, 0.0  ;;  %v4828_v32 = vpop.eup %4827  ;;  %4841 = vpow2.f32 %v941_v54  ;;  %v1049_v54 = vmul.f32 %v5618_v22, %v5834_v8  ;;  %v1089_v8 = vmul.f32 %v5659_v13, %v5597_v10 }
 0x425   : > { %v5881_v52 = vadd.f32 %v1965_v2, %v1964_v12  ;;  %v947_v2 = vmul.f32 1.442695, %v936_v30  ;;  %v5895_v12 = vpop.permute.xlu0 %1409  ;;  %v4830_v7 = vpop.eup %4829  ;;  %v1228_v0 = vmul.f32 %v4828_v32, %v5885_v55  ;;  %v5909_v30 = vld [vmem:[%s7730_s4 + $0x28] sm:$0xff]  ;;  %4843 = vpow2.f32 %v945_v28 }
 0x426   : > { %v5889_v46 = vpop.permute.xlu1 %1661  ;;  %v1229_v36 = vmul.f32 %v4830_v7, %v5887_v50  ;;  %v4832_v60 = vpop.eup %4831  ;;  %v854_v49 = vmul.f32 %v5536_v26, %v5909_v30 }
 0x427   : > { %4573 = vset.pattern.permute.xlu1 %v7881_v51  ;;  %4845 = vpow2.f32 %v947_v2  ;;  %v1230_v38 = vmul.f32 %v4832_v60, %v5898_v15  ;;  %v4834_v42 = vpop.eup %4833  ;;  %v5920_v1 = vadd.f32 %v1228_v0, %v1047_v18  ;;  %v1091_v18 = vmul.f32 %v5659_v13, %v5716_v14 }
 0x428   : > { %2087 = vperm.xlu1 %4573, %v5463_v20   ;;  %v1234_v20 = vadd.f32 %v1226_v16, %v1045_v58  ;;  %v4836_v23 = vpop.eup %4835  ;;  %v5922_v58 = vadd.f32 %v1229_v36, %v1048_v21  ;;  %4847 = vpow2.f32 %v949_v63  ;;  %v867_v60 = vmul.f32 1.442695, %v854_v49 }
 0x429   : > { %v5924_v16 = vpop.permute.xlu0 %1856  ;;  %v4838_v32 = vpop.eup %4837  ;;  %v5930_v7 = vadd.f32 %v1230_v38, %v1049_v54  ;;  %v1305_v0 = vmul.f32 %v4836_v23, %v5920_v1  ;;  %v1092_v63 = vmul.f32 %v5659_v13, %v5758_v53  ;;  %v882_v54 = vmul.f32 %v5571_v17, %v5909_v30 }
 0x42a   : > { %v1303_v28 = vmul.f32 %v4834_v42, %v1234_v20  ;;  %v1306_v36 = vmul.f32 %v4838_v32, %v5922_v58  ;;  %v4840_v10 = vpop.eup %4839  ;;  %v1274_v38 = vmul.f32 %v5727_v29, %v1234_v20  ;;  %v1093_v49 = vmul.f32 %v5659_v13, %v5849_v48 }
 0x42b   : > { %v5911_v37 = vpop.permute.xlu1 %1796  ;;  %7908 = vst [vmem:[#allocation61_spill] sm:$0xff] %v5930_v7  ;;  %v1307_v14 = vmul.f32 %v4840_v10, %v5930_v7  ;;  %4849 = vpow2.f32 %v867_v60  ;;  %v5948_v53 = vadd.f32 %v1305_v0, %v1091_v18  ;;  %v1133_v29 = vmul.f32 %v5672_v44, %v5614_v62 }
 0x42c   : > { %7907 = vst [vmem:[#allocation60_spill] sm:$0xff] %v5911_v37  ;;  %4574 = vset.pattern.permute.xlu1 %v7878_v43  ;;  %v1311_v21 = vadd.f32 %v1303_v28, %v1089_v8  ;;  %v5950_v37 = vadd.f32 %v1306_v36, %v1092_v63  ;;  %v1588_v48 = vmul.f32 %v5540_v59, %v5549_v4  ;;  %v895_v28 = vmul.f32 1.442695, %v882_v54 }
 0x42d   : > { %1671 = vperm.xlu1 %4574, %v5511_v41   ;;  %v5943_v42 = vpop.permute.xlu0 %1937  ;;  %v1282_v0 = vsel %vm590_vm5, %v1274_v38, 0.0  ;;  %v5961_v36 = vadd.f32 %v1307_v14, %v1093_v49 }
 0x42e   : > { %v1351_v62 = vmul.f32 %v5736_v3, %v1311_v21  ;;  %v1597_v14 = vmul.f32 1.442695, %v1588_v48  ;;  %4851 = vpow2.f32 %v895_v28  ;;  %v1135_v3 = vmul.f32 %v5672_v44, %v5711_v57 }
 0x42f   : > { %v1137_v57 = vmul.f32 %v5672_v44, %v5749_v39 }
 0x430   : > { %v5928_v2 = vpop.permute.xlu1 %1164 }
 0x431   : > { %4575 = vset.pattern.permute.xlu1 %v7880_v19  ;;  %v4842_v32 = vpop.eup %4841  ;;  %v5970_v54 = vpop.permute.xlu0 %1676 }
 0x432   : > { %1716 = vperm.xlu1 %4575, %v5511_v41   ;;  %v1380_v20 = vmul.f32 %v4842_v32, %v1311_v21  ;;  %v4844_v60 = vpop.eup %4843  ;;  %7909 = vst [vmem:[#allocation62_spill] sm:$0xff] %v5970_v54  ;;  %v1136_v21 = vmul.f32 %v5672_v44, %v5719_v47 }
 0x434   : > { %v4846_v63 = vpop.eup %4845  ;;  %v1388_v15 = vadd.f32 %v1380_v20, %v1133_v29 }
 0x435   : > { %v1248_v23 = vpop.permute.xlu1 %1247  ;;  %v1383_v32 = vmul.f32 %v4846_v63, %v5950_v37  ;;  %v4848_v38 = vpop.eup %4847 }
 0x436   : > { %v1275_v8 = vmul.f32 %v1248_v23, %v5661_v25  ;;  %4576 = vset.pattern.permute.xlu1 %v7876_v35  ;;  %v910_v25 = vmul.f32 %v5589_v24, %v5909_v30  ;;  %v1382_v23 = vmul.f32 %v4844_v60, %v5948_v53  ;;  %v1428_v29 = vmul.f32 %v5743_v45, %v1388_v15 }
 0x437   : > { %1760 = vperm.xlu1 %4576, %v5511_v41   ;;  %v1391_v48 = vadd.f32 %v1383_v32, %v1136_v21  ;;  %v1616_v15 = vmul.f32 %v5564_v11, %v5549_v4 }
 0x438   : > { %v1283_v18 = vsel %vm590_vm5, %v1275_v8, 0.0  ;;  %v1384_v8 = vmul.f32 %v4848_v38, %v5961_v36  ;;  %v923_v60 = vmul.f32 1.442695, %v910_v25  ;;  %v1390_v20 = vadd.f32 %v1382_v23, %v1135_v3  ;;  %v4850_v63 = vpop.eup %4849 }
 0x439   : > { %v5966_v10 = vadd.f32 %v1283_v18, %v1282_v0  ;;  %v1359_v0 = vsel %vm590_vm5, %v1351_v62, 0.0  ;;  %v1414_v18 = vpop.permute.xlu0 %1413  ;;  %v1436_v62 = vsel %vm590_vm5, %v1428_v29, 0.0  ;;  %v1431_v23 = vmul.f32 %v5895_v12, %v1391_v48 }
 0x43a   : > { %v1325_v7 = vpop.permute.xlu1 %1324  ;;  %v1430_v28 = vmul.f32 %v5868_v6, %v1390_v20  ;;  %v1392_v45 = vadd.f32 %v1384_v8, %v1137_v57  ;;  %4853 = vpow2.f32 %v923_v60  ;;  %v1146_v8 = vmul.f32 0.0, %v4850_v63 }
 0x43b   : > { %v1352_v49 = vmul.f32 %v1325_v7, %v5675_v9  ;;  %4577 = vset.pattern.permute.xlu1 %v7881_v51  ;;  %v938_v7 = vmul.f32 %v5606_v40, %v5909_v30  ;;  %4855 = vpow2.f32 %v1597_v14  ;;  %v1441_v60 = vsel %vm590_vm5, %v1431_v23, 0.0  ;;  %v4852_v29 = vpop.eup %4851 }
 0x43c   : > { %1804 = vperm.xlu1 %4577, %v5511_v41   ;;  %v1432_v3 = vmul.f32 %v1414_v18, %v1392_v45  ;;  %v1625_v12 = vmul.f32 1.442695, %v1616_v15 }
 0x43d   : > { %v1360_v9 = vsel %vm590_vm5, %v1352_v49, 0.0  ;;  %v951_v39 = vmul.f32 1.442695, %v938_v7  ;;  %v5999_v38 = vpop.permute.xlu0 %1861 }
 0x43e   : > { %v5987_v47 = vadd.f32 %v1360_v9, %v1359_v0  ;;  %v1443_v9 = vsel %vm590_vm5, %v1432_v3, 0.0 }
 0x43f   : > { %v1402_v41 = vpop.permute.xlu1 %1401  ;;  %4857 = vpow2.f32 %v951_v39 }
 0x440   : > { %v1429_v25 = vmul.f32 %v1402_v41, %v5684_v5  ;;  %4578 = vset.pattern.permute.xlu1 %v7878_v43  ;;  %v1439_v5 = vsel %vm590_vm5, %v1430_v28, 0.0  ;;  %4859 = vpow2.f32 %v1625_v12  ;;  %v7910_v28 = vld [vmem:[#allocation19_spill] sm:$0xff]  ;;  %v7917_v12 = vld [vmem:[#allocation29_spill] sm:$0xff] }
 0x441   : > { %1174 = vperm.xlu1 %4578, %v5416_v61   ;;  %v6009_v48 = vpop.permute.xlu0 %1941  ;;  %v1536_v18 = vmul.f32 %v7910_v28, %v5909_v30 }
 0x442   : > { %v1437_v6 = vsel %vm590_vm5, %v1429_v25, 0.0 }
 0x443   : > { %v1438_v32 = vadd.f32 %v1437_v6, %v1436_v62  ;;  %v1549_v23 = vmul.f32 1.442695, %v1536_v18  ;;  %v7912_v6 = vld [vmem:[#allocation39_spill] sm:$0xff] }
 0x444   : > { %v985_v49 = vpop.permute.xlu1 %984 }
 0x445   : > { %v1440_v21 = vadd.f32 %v1439_v5, %v1438_v32  ;;  %v1006_v4 = vmul.f32 %v5637_v56, %v985_v49  ;;  %4579 = vset.pattern.permute.xlu1 %v7880_v19  ;;  %v7913_v32 = vld [vmem:[#allocation30_spill] sm:$0xff]  ;;  %v6023_v49 = vpop.permute.xlu0 %1184  ;;  %4861 = vpow2.f32 %v1549_v23 }
 0x446   : > { %1255 = vperm.xlu1 %4579, %v5416_v61   ;;  %v1772_v5 = vmul.f32 %v7913_v32, %v7912_v6  ;;  %v1592_v6 = vmul.f32 %v5540_v59, %v5909_v30 }
 0x447   : > { %v1442_v14 = vadd.f32 %v1441_v60, %v1440_v21  ;;  %v6005_v0 = vadd.f32 %v1146_v8, %v1006_v4  ;;  %v4854_v45 = vpop.eup %4853  ;;  %v7915_v21 = vld [vmem:[#allocation21_spill] sm:$0xff] }
 0x448   : > { %v4856_v63 = vpop.eup %4855  ;;  %v1564_v8 = vmul.f32 %v7915_v21, %v5909_v30 }
 0x449   : > { %v1031_v7 = vpop.permute.xlu1 %1030  ;;  %v1231_v57 = vmul.f32 %v4852_v29, %v6005_v0  ;;  %v1444_v20 = vadd.f32 %v1443_v9, %v1442_v14  ;;  %v1986_v3 = vmul.f32 %v4856_v63, %v5852_v31  ;;  %v7918_v14 = vld [vmem:[#allocation45_spill] sm:$0xff]  ;;  %v1418_v63 = vpop.permute.xlu0 %1417 }
 0x44a   : > { %v1050_v41 = vmul.f32 %v5618_v22, %v1031_v7  ;;  %4580 = vset.pattern.permute.xlu1 %v7876_v35  ;;  %v1879_v29 = vmul.f32 %v7918_v14, %v7917_v12  ;;  %v7919_v9 = vld [vmem:[#allocation57_spill] sm:$0xff]  ;;  %v7920_v12 = vld [vmem:[#allocation35_spill] sm:$0xff] }
 0x44b   : > { %1332 = vperm.xlu1 %4580, %v5416_v61   ;;  %v7914_v61 = vld [vmem:[#allocation13_spill] sm:$0xff]  ;;  %v1138_v7 = vmul.f32 %v5672_v44, %v7919_v9  ;;  %v1994_v31 = vadd.f32 %v1986_v3, %v1772_v5  ;;  %v7922_v5 = vld [vmem:[#allocation40_spill] sm:$0xff]  ;;  %v7923_v3 = vld [vmem:[#allocation31_spill] sm:$0xff] }
 0x44c   : > { %v6016_v25 = vadd.f32 %v1231_v57, %v1050_v41  ;;  %v4858_v60 = vpop.eup %4857 }
 0x44d   : > { %v4860_v23 = vpop.eup %4859 }
 0x44e   : > { %7911 = vst [vmem:[#allocation19_spill] sm:$0xff] %v6016_v25  ;;  %v1075_v15 = vpop.permute.xlu1 %1074  ;;  %v1308_v39 = vmul.f32 %v4854_v45, %v6016_v25  ;;  %v1577_v45 = vmul.f32 1.442695, %v1564_v8 }
 0x44f   : > { %v1094_v62 = vmul.f32 %v5659_v13, %v1075_v15  ;;  %4581 = vset.pattern.permute.xlu1 %v7878_v43 }
 0x450   : > { %994 = vperm.xlu1 %4581, %v7914_v61   ;;  %4863 = vpow2.f32 %v1577_v45 }
 0x451   : > { %v6029_v4 = vadd.f32 %v1308_v39, %v1094_v62  ;;  %v1887_v39 = vsel %vm590_vm5, %v1879_v29, 0.0 }
 0x453   : > { %7916 = vst [vmem:[#allocation39_spill] sm:$0xff] %v6029_v4  ;;  %v1847_v57 = vpop.permute.xlu1 %1846  ;;  %v1385_v41 = vmul.f32 %v4858_v60, %v6029_v4  ;;  %v7921_v60 = vld [vmem:[#allocation46_spill] sm:$0xff] }
 0x454   : > { %v1880_v18 = vmul.f32 %v1847_v57, %v5830_v27  ;;  %4582 = vset.pattern.permute.xlu1 %v7880_v19  ;;  %v2033_v14 = vmul.f32 %v7921_v60, %v7920_v12  ;;  %v1816_v57 = vmul.f32 %v7923_v3, %v7922_v5  ;;  %v1620_v12 = vmul.f32 %v5564_v11, %v5909_v30  ;;  %v4862_v30 = vpop.eup %4861 }
 0x455   : > { %1038 = vperm.xlu1 %4582, %v7914_v61   ;;  %v1393_v15 = vadd.f32 %v1385_v41, %v1138_v7  ;;  %v2063_v7 = vmul.f32 %v4860_v23, %v1994_v31  ;;  %v7926_v23 = vld [vmem:[#allocation48_spill] sm:$0xff] }
 0x456   : > { %v1888_v62 = vsel %vm590_vm5, %v1880_v18, 0.0  ;;  %v1605_v18 = vmul.f32 1.442695, %v1592_v6  ;;  %v1633_v6 = vmul.f32 1.442695, %v1620_v12 }
 0x457   : > { %v6045_v27 = vadd.f32 %v1888_v62, %v1887_v39  ;;  %v1433_v9 = vmul.f32 %v1418_v63, %v1393_v15  ;;  %v2041_v15 = vsel %vm590_vm5, %v2033_v14, 0.0  ;;  %v7925_v62 = vld [vmem:[#allocation37_spill] sm:$0xff]  ;;  %v2071_v45 = vadd.f32 %v2063_v7, %v1816_v57  ;;  %v7928_v7 = vld [vmem:[#allocation18_spill] sm:$0xff] }
 0x458   : > { %v2007_v8 = vpop.permute.xlu1 %2006  ;;  %4865 = vpow2.f32 %v1605_v18 }
 0x459   : > { %v2034_v41 = vmul.f32 %v2007_v8, %v1994_v31  ;;  %4583 = vset.pattern.permute.xlu1 %v7876_v35  ;;  %v1445_v29 = vsel %vm590_vm5, %v1433_v9, 0.0  ;;  %v2110_v31 = vmul.f32 %v7926_v23, %v7925_v62  ;;  %4867 = vpow2.f32 %v1633_v6  ;;  %v7929_v23 = vld [vmem:[#allocation34_spill] sm:$0xff] }
 0x45a   : > { %1082 = vperm.xlu1 %4583, %v7914_v61   ;;  %v6054_v39 = vadd.f32 %v1445_v29, %v1444_v20  ;;  %v1828_v29 = vmul.f32 0.0, %v4862_v30  ;;  %v7930_v6 = vld [vmem:[#allocation58_spill] sm:$0xff] }
 0x45b   : > { %v2042_v63 = vsel %vm590_vm5, %v2034_v41, 0.0  ;;  %v2118_v20 = vsel %vm590_vm5, %v2110_v31, 0.0  ;;  %v1776_v30 = vmul.f32 %v7913_v32, %v7930_v6 }
 0x45c   : > { %7924 = vst [vmem:[#allocation30_spill] sm:$0xff] %v6054_v39  ;;  %v6060_v60 = vadd.f32 %v2042_v63, %v2041_v15  ;;  %v7927_v15 = vld [vmem:[#allocation28_spill] sm:$0xff] }
 0x45d   : > { %v2084_v5 = vpop.permute.xlu1 %2083  ;;  %v4864_v12 = vpop.eup %4863 }
 0x45e   : > { %v2111_v9 = vmul.f32 %v2084_v5, %v2071_v45  ;;  %4584 = vset.pattern.permute.xlu1 %v7881_v51 }
 0x45f   : > { %1126 = vperm.xlu1 %4584, %v7914_v61   ;;  %v6076_v61 = vld [vmem:[%s7730_s4 + $0x30] sm:$0xff] }
 0x460   : > { %v2119_v14 = vsel %vm590_vm5, %v2111_v9, 0.0  ;;  %v855_v45 = vmul.f32 %v5536_v26, %v6076_v61  ;;  %v883_v6 = vmul.f32 %v5571_v17, %v6076_v61 }
 0x461   : > { %v6066_v8 = vadd.f32 %v2119_v14, %v2118_v20  ;;  %v7931_v20 = vld [vmem:[#allocation36_spill] sm:$0xff] }
 0x462   : > { %v1667_v41 = vpop.permute.xlu1 %1666  ;;  %v1198_v14 = vmul.f32 %v5928_v2, %v7931_v20  ;;  %v7935_v2 = vld [vmem:[#allocation52_spill] sm:$0xff] }
 0x463   : > { %v1688_v57 = vmul.f32 %v7927_v15, %v1667_v41  ;;  %4587 = vset.pattern.permute.xlu1 %v7876_v35 }
 0x464   : > { %2014 = vperm.xlu1 %4587, %v7928_v7   ;;  %v1206_v20 = vsel %vm590_vm5, %v1198_v14, 0.0  ;;  %v7937_v14 = vld [vmem:[#allocation53_spill] sm:$0xff] }
 0x465   : > { %v6071_v18 = vadd.f32 %v1828_v29, %v1688_v57  ;;  %v4866_v9 = vpop.eup %4865 }
 0x466   : > { %v4868_v39 = vpop.eup %4867 }
 0x467   : > { %v1913_v63 = vmul.f32 %v4864_v12, %v6071_v18  ;;  %v1713_v62 = vpop.permute.xlu1 %1712  ;;  %v7932_v12 = vld [vmem:[#allocation56_spill] sm:$0xff] }
 0x468   : > { %v1732_v31 = vmul.f32 %v7929_v23, %v1713_v62  ;;  %4588 = vset.pattern.permute.xlu1 %v7881_v51  ;;  %v1197_v62 = vmul.f32 %v7932_v12, %v5872_v33 }
 0x469   : > { %2091 = vperm.xlu1 %4588, %v7928_v7   ;;  %v869_v7 = vmul.f32 1.442695, %v855_v45 }
 0x46a   : > { %v6084_v5 = vadd.f32 %v1913_v63, %v1732_v31  ;;  %v7934_v31 = vld [vmem:[#allocation24_spill] sm:$0xff]  ;;  %v1205_v45 = vsel %vm590_vm5, %v1197_v62, 0.0 }
 0x46b   : > { %4869 = vpow2.f32 %v869_v7  ;;  %v1207_v12 = vadd.f32 %v1206_v20, %v1205_v45  ;;  %v1534_v7 = vmul.f32 %v7910_v28, %v7937_v14 }
 0x46c   : > { %v1990_v41 = vmul.f32 %v4866_v9, %v6084_v5  ;;  %v1801_v29 = vpop.permute.xlu1 %1800  ;;  %v1533_v9 = vmul.f32 %v7910_v28, %v7935_v2 }
 0x46d   : > { %v1820_v57 = vmul.f32 %v7923_v3, %v1801_v29  ;;  %4590 = vset.pattern.permute.xlu1 %v7880_v19  ;;  %v1545_v20 = vmul.f32 1.442695, %v1534_v7 }
 0x46e   : > { %v6095_v63 = vadd.f32 %v1990_v41, %v1776_v30  ;;  %1720 = vperm.xlu1 %4590, %v7934_v31   ;;  %v897_v41 = vmul.f32 1.442695, %v883_v6  ;;  %v1543_v25 = vmul.f32 1.442695, %v1533_v9  ;;  %v1561_v6 = vmul.f32 %v7915_v21, %v7935_v2 }
 0x470   : > { %7933 = vst [vmem:[#allocation13_spill] sm:$0xff] %v6095_v63  ;;  %v2067_v29 = vmul.f32 %v4868_v39, %v6095_v63  ;;  %v911_v39 = vmul.f32 %v5589_v24, %v6076_v61  ;;  %4871 = vpow2.f32 %v897_v41  ;;  %v1571_v41 = vmul.f32 1.442695, %v1561_v6 }
 0x471   : > { %v1170_v4 = vpop.permute.xlu1 %1169  ;;  %4873 = vpow2.f32 %v1543_v25 }
 0x472   : > { %v6105_v33 = vadd.f32 %v2067_v29, %v1820_v57  ;;  %v1199_v30 = vmul.f32 %v1170_v4, %v5885_v55  ;;  %4591 = vset.pattern.permute.xlu1 %v7876_v35  ;;  %v1535_v55 = vmul.f32 %v7910_v28, %v5806_v34  ;;  %v925_v9 = vmul.f32 1.442695, %v911_v39 }
 0x473   : > { %1764 = vperm.xlu1 %4591, %v7934_v31   ;;  %v939_v29 = vmul.f32 %v5606_v40, %v6076_v61 }
 0x474   : > { %7936 = vst [vmem:[#allocation21_spill] sm:$0xff] %v6105_v33  ;;  %v1208_v54 = vsel %vm590_vm5, %v1199_v30, 0.0  ;;  %v1547_v45 = vmul.f32 1.442695, %v1535_v55  ;;  %4875 = vpow2.f32 %v925_v9 }
 0x475   : > { %v6115_v62 = vadd.f32 %v1208_v54, %v1207_v12  ;;  %4877 = vpow2.f32 %v1545_v20  ;;  %v7938_v12 = vld [vmem:[#allocation14_spill] sm:$0xff]  ;;  %v953_v39 = vmul.f32 1.442695, %v939_v29 }
 0x476   : > { %v1252_v4 = vpop.permute.xlu1 %1251  ;;  %4879 = vpow2.f32 %v1547_v45 }
 0x477   : > { %v1276_v57 = vmul.f32 %v1252_v4, %v5920_v1  ;;  %4592 = vset.pattern.permute.xlu1 %v7881_v51  ;;  %4881 = vpow2.f32 %v1571_v41 }
 0x478   : > { %1808 = vperm.xlu1 %4592, %v7934_v31   ;;  %v1562_v31 = vmul.f32 %v7915_v21, %v7937_v14  ;;  %v4870_v7 = vpop.eup %4869  ;;  %4883 = vpow2.f32 %v953_v39 }
 0x479   : > { %v1285_v54 = vsel %vm590_vm5, %v1276_v57, 0.0  ;;  %v1147_v9 = vmul.f32 0.0, %v4870_v7 }
 0x47a   : > { %v6128_v30 = vadd.f32 %v1285_v54, %v5966_v10  ;;  %v1563_v10 = vmul.f32 %v7915_v21, %v5806_v34  ;;  %v1573_v6 = vmul.f32 1.442695, %v1562_v31 }
 0x47b   : > { %v1329_v1 = vpop.permute.xlu1 %1328 }
 0x47c   : > { %v1353_v25 = vmul.f32 %v1329_v1, %v5948_v53  ;;  %4593 = vset.pattern.permute.xlu1 %v7878_v43  ;;  %v1589_v53 = vmul.f32 %v5540_v59, %v7935_v2  ;;  %v1575_v54 = vmul.f32 1.442695, %v1563_v10  ;;  %v7939_v1 = vld [vmem:[#allocation41_spill] sm:$0xff]  ;;  %4885 = vpow2.f32 %v1573_v6 }
 0x47d   : > { %1179 = vperm.xlu1 %4593, %v7938_v12   ;;  %v4872_v34 = vpop.eup %4871  ;;  %v1685_v41 = vmul.f32 %v7927_v15, %v7939_v1  ;;  %v1617_v10 = vmul.f32 %v5564_v11, %v7935_v2  ;;  %v7941_v1 = vld [vmem:[#allocation20_spill] sm:$0xff]  ;;  %v1687_v2 = vmul.f32 %v7927_v15, %v5889_v46 }
 0x47e   : > { %v1362_v55 = vsel %vm590_vm5, %v1353_v25, 0.0  ;;  %v4874_v45 = vpop.eup %4873  ;;  %4887 = vpow2.f32 %v1575_v54 }
 0x47f   : > { %v6139_v4 = vadd.f32 %v1362_v55, %v5987_v47  ;;  %v1599_v47 = vmul.f32 1.442695, %v1589_v53  ;;  %v1825_v39 = vmul.f32 0.0, %v4874_v45  ;;  %v7942_v45 = vld [vmem:[#allocation47_spill] sm:$0xff] }
 0x480   : > { %v990_v57 = vpop.permute.xlu1 %989 }
 0x481   : > { %v1007_v20 = vmul.f32 %v5637_v56, %v990_v57  ;;  %4594 = vset.pattern.permute.xlu1 %v7880_v19  ;;  %4889 = vpow2.f32 %v1599_v47  ;;  %v4876_v53 = vpop.eup %4875  ;;  %v1833_v57 = vadd.f32 %v1825_v39, %v1685_v41  ;;  %v1686_v47 = vmul.f32 %v7927_v15, %v7942_v45 }
 0x482   : > { %1259 = vperm.xlu1 %4594, %v7938_v12   ;;  %v4878_v6 = vpop.eup %4877 }
 0x483   : > { %v6146_v29 = vadd.f32 %v1147_v9, %v1007_v20  ;;  %v4880_v54 = vpop.eup %4879 }
 0x484   : > { %v1827_v63 = vmul.f32 0.0, %v4880_v54 }
 0x485   : > { %v1232_v25 = vmul.f32 %v4872_v34, %v6146_v29  ;;  %v1035_v31 = vpop.permute.xlu1 %1034 }
 0x486   : > { %v1051_v7 = vmul.f32 %v5618_v22, %v1035_v31  ;;  %4595 = vset.pattern.permute.xlu1 %v7876_v35  ;;  %v1627_v31 = vmul.f32 1.442695, %v1617_v10  ;;  %v1835_v45 = vadd.f32 %v1827_v63, %v1687_v2  ;;  %v7946_v2 = vld [vmem:[#allocation15_spill] sm:$0xff] }
 0x487   : > { %1336 = vperm.xlu1 %4595, %v7938_v12   ;;  %v4882_v12 = vpop.eup %4881 }
 0x488   : > { %v6156_v55 = vadd.f32 %v1232_v25, %v1051_v7  ;;  %v7943_v25 = vld [vmem:[#allocation42_spill] sm:$0xff]  ;;  %v1910_v39 = vmul.f32 %v4882_v12, %v1833_v57  ;;  %4891 = vpow2.f32 %v1627_v31 }
 0x489   : > { %v1729_v41 = vmul.f32 %v7929_v23, %v7943_v25 }
 0x48a   : > { %7940 = vst [vmem:[#allocation29_spill] sm:$0xff] %v6156_v55  ;;  %v1309_v9 = vmul.f32 %v4876_v53, %v6156_v55  ;;  %v1079_v20 = vpop.permute.xlu1 %1078  ;;  %v4884_v53 = vpop.eup %4883  ;;  %v1826_v55 = vmul.f32 0.0, %v4878_v6  ;;  %v7944_v6 = vld [vmem:[#allocation49_spill] sm:$0xff] }
 0x48b   : > { %v1095_v34 = vmul.f32 %v5659_v13, %v1079_v20  ;;  %2018 = vperm.xlu1 %4595, %v7941_v1   ;;  %v1918_v46 = vadd.f32 %v1910_v39, %v1729_v41  ;;  %v4886_v25 = vpop.eup %4885  ;;  %v1730_v54 = vmul.f32 %v7929_v23, %v7944_v6  ;;  %v7947_v41 = vld [vmem:[#allocation50_spill] sm:$0xff] }
 0x48c   : > { %v1834_v13 = vadd.f32 %v1826_v55, %v1686_v47  ;;  %v7945_v55 = vld [vmem:[#allocation43_spill] sm:$0xff]  ;;  %v1731_v39 = vmul.f32 %v7929_v23, %v7947_v41  ;;  %v7949_v41 = vld [vmem:[#allocation22_spill] sm:$0xff] }
 0x48d   : > { %v6167_v7 = vadd.f32 %v1309_v9, %v1095_v34  ;;  %v4888_v34 = vpop.eup %4887  ;;  %v1773_v63 = vmul.f32 %v7913_v32, %v7945_v55 }
 0x48e   : > { %v4890_v12 = vpop.eup %4889  ;;  %v1911_v33 = vmul.f32 %v4886_v25, %v1834_v13  ;;  %v1912_v40 = vmul.f32 %v4888_v34, %v1835_v45  ;;  %v1882_v47 = vmul.f32 %v5924_v16, %v1834_v13 }
 0x48f   : > { %4599 = vset.pattern.permute.xlu1 %v7881_v51  ;;  %v1386_v10 = vmul.f32 %v4884_v53, %v6167_v7  ;;  %v1123_v20 = vpop.permute.xlu1 %1122  ;;  %v1883_v53 = vmul.f32 %v5999_v38, %v1835_v45 }
 0x490   : > { %v1139_v22 = vmul.f32 %v5672_v44, %v1123_v20  ;;  %2095 = vperm.xlu1 %4599, %v7941_v1   ;;  %v6186_v25 = vadd.f32 %v1911_v33, %v1730_v54  ;;  %v6188_v34 = vadd.f32 %v1912_v40, %v1731_v39  ;;  %v1892_v13 = vsel %vm590_vm5, %v1882_v47, 0.0 }
 0x491   : > { %v1894_v40 = vsel %vm590_vm5, %v1883_v53, 0.0 }
 0x492   : > { %v6173_v9 = vadd.f32 %v1386_v10, %v1139_v22  ;;  %v1987_v22 = vmul.f32 %v4890_v12, %v1918_v46  ;;  %v1867_v10 = vpop.permute.xlu0 %1866  ;;  %v1959_v38 = vmul.f32 %v5943_v42, %v6186_v25  ;;  %v7948_v42 = vld [vmem:[#allocation44_spill] sm:$0xff] }
 0x493   : > { %v1884_v16 = vmul.f32 %v1867_v10, %v6071_v18 }
 0x494   : > { %4601 = vset.pattern.permute.xlu1 %v7880_v19  ;;  %v1852_v31 = vpop.permute.xlu1 %1851  ;;  %v1995_v12 = vadd.f32 %v1987_v22, %v1773_v63 }
 0x495   : > { %v1881_v1 = vmul.f32 %v1852_v31, %v1833_v57  ;;  %1263 = vperm.xlu1 %4601, %v7946_v2   ;;  %v4892_v33 = vpop.eup %4891  ;;  %v1896_v47 = vsel %vm590_vm5, %v1884_v16, 0.0 }
 0x496   : > { %v1946_v55 = vpop.permute.xlu0 %1945 }
 0x497   : > { %v1890_v20 = vsel %vm590_vm5, %v1881_v1, 0.0  ;;  %v2064_v1 = vmul.f32 %v4892_v33, %v1995_v12  ;;  %v1961_v22 = vmul.f32 %v1946_v55, %v6084_v5 }
 0x498   : > { %v1891_v6 = vadd.f32 %v1890_v20, %v6045_v27  ;;  %v1960_v27 = vmul.f32 %v6009_v48, %v6188_v34 }
 0x499   : > { %4602 = vset.pattern.permute.xlu1 %v7876_v35  ;;  %v1934_v57 = vpop.permute.xlu1 %1933 }
 0x49a   : > { %v1893_v45 = vadd.f32 %v1892_v13, %v1891_v6  ;;  %v1958_v31 = vmul.f32 %v1934_v57, %v1918_v46  ;;  %1340 = vperm.xlu1 %4602, %v7946_v2   ;;  %v1817_v46 = vmul.f32 %v7923_v3, %v7948_v42  ;;  %v1969_v2 = vsel %vm590_vm5, %v1959_v38, 0.0  ;;  %v7950_v57 = vld [vmem:[#allocation16_spill] sm:$0xff] }
 0x49b   : > { %v1971_v20 = vsel %vm590_vm5, %v1960_v27, 0.0  ;;  %v1973_v13 = vsel %vm590_vm5, %v1961_v22, 0.0  ;;  %v7951_v27 = vld [vmem:[#allocation23_spill] sm:$0xff] }
 0x49c   : > { %v1895_v54 = vadd.f32 %v1894_v40, %v1893_v45  ;;  %v1967_v18 = vsel %vm590_vm5, %v1958_v31, 0.0  ;;  %v2072_v5 = vadd.f32 %v2064_v1, %v1817_v46  ;;  %v7952_v1 = vld [vmem:[#allocation17_spill] sm:$0xff]  ;;  %v1590_v46 = vmul.f32 %v5540_v59, %v7937_v14 }
 0x49d   : > { %v1968_v63 = vadd.f32 %v1967_v18, %v5881_v52 }
 0x49e   : > { %2022 = vperm.xlu1 %4602, %v7949_v41   ;;  %v2011_v39 = vpop.permute.xlu1 %2010  ;;  %v6208_v48 = vadd.f32 %v1896_v47, %v1895_v54 }
 0x49f   : > { %v1970_v53 = vadd.f32 %v1969_v2, %v1968_v63  ;;  %v2035_v10 = vmul.f32 %v2011_v39, %v1995_v12  ;;  %v1601_v39 = vmul.f32 1.442695, %v1590_v46 }
 0x4a1   : > { %v1972_v6 = vadd.f32 %v1971_v20, %v1970_v53  ;;  %v2044_v52 = vsel %vm590_vm5, %v2035_v10, 0.0  ;;  %4893 = vpow2.f32 %v1601_v39  ;;  %v1618_v20 = vmul.f32 %v5564_v11, %v7937_v14  ;;  %v4769_v39 = vld [vmem:[%s7731_s5 + $0x8] sm:$0xff]  }
 0x4a2   : > { %v6214_v16 = vadd.f32 %v2044_v52, %v6060_v60  ;;  %4608 = vset.pattern.permute.xlu1 %v7880_v19  ;;  %4394 = vmatpush3.bf16.msra.mxu1 %v4769_v39 }
 0x4a3   : > { %1267 = vperm.xlu1 %4608, %v7950_v57   ;;  %v2088_v38 = vpop.permute.xlu1 %2087  ;;  %v6218_v45 = vadd.f32 %v1973_v13, %v1972_v6  ;;  %v1629_v6 = vmul.f32 1.442695, %v1618_v20 }
 0x4a4   : > { %v2112_v31 = vmul.f32 %v2088_v38, %v2072_v5  ;;  %v7954_v5 = vld [vmem:[#allocation51_spill] sm:$0xff] }
 0x4a5   : > { %4895 = vpow2.f32 %v1629_v6  ;;  %v1774_v14 = vmul.f32 %v7913_v32, %v7954_v5 }
 0x4a6   : > { %v2121_v12 = vsel %vm590_vm5, %v2112_v31, 0.0  ;;  %v4765_v31 = vld [vmem:[%s7729_s3 + $0x98] sm:$0xff]  }
 0x4a7   : > { %v6222_v40 = vadd.f32 %v2121_v12, %v6066_v8  ;;  %4609 = vset.pattern.permute.xlu1 %v7876_v35  ;;  %4382 = vmatpush3.bf16.msra.mxu0 %v4765_v31 }
 0x4a8   : > { %1344 = vperm.xlu1 %4609, %v7950_v57   ;;  %v6226_v60 = vpop.permute.xlu1 %1671 }
 0x4ac   : > { %4610 = vset.pattern.permute.xlu1 %v7881_v51 }
 0x4ad   : > { %1421 = vperm.xlu1 %4610, %v7950_v57   ;;  %v6230_v33 = vpop.permute.xlu1 %1716 }
 0x4ae   : > { %v4894_v13 = vpop.eup %4893 }
 0x4b1   : > { %4611 = vset.pattern.permute.xlu1 %v7878_v43 }
 0x4b2   : > { %1871 = vperm.xlu1 %4611, %v7951_v27   ;;  %v6234_v54 = vpop.permute.xlu1 %1760  ;;  %v4896_v12 = vpop.eup %4895 }
 0x4b6   : > { %4612 = vset.pattern.permute.xlu1 %v7880_v19 }
 0x4b7   : > { %1949 = vperm.xlu1 %4612, %v7951_v27   ;;  %v6238_v8 = vpop.permute.xlu1 %1804 }
 0x4bb   : > { %4614 = vset.pattern.permute.xlu1 %v7881_v51 }
 0x4bc   : > { %2103 = vperm.xlu1 %4614, %v7951_v27   ;;  %v1175_v18 = vpop.permute.xlu1 %1174  ;;  %v4766_v27 = vld [vmem:[%s7729_s3 + $0x90] sm:$0xff]  }
 0x4bd   : > { %v1200_v55 = vmul.f32 %v1175_v18, %v5887_v50  ;;  %v7953_v50 = vld [vmem:[#allocation25_spill] sm:$0xff]  ;;  %v7955_v18 = vld [vmem:[#allocation54_spill] sm:$0xff] }
 0x4bf   : > { %v1210_v47 = vsel %vm590_vm5, %v1200_v55, 0.0  ;;  %v1818_v55 = vmul.f32 %v7923_v3, %v7955_v18 }
 0x4c0   : > { %v6245_v63 = vadd.f32 %v1210_v47, %v6115_v62  ;;  %4615 = vset.pattern.permute.xlu1 %v7878_v43 }
 0x4c1   : > { %1194 = vperm.xlu1 %4615, %v7952_v1   ;;  %v1256_v42 = vpop.permute.xlu1 %1255 }
 0x4c2   : > { %v1277_v2 = vmul.f32 %v1256_v42, %v5922_v58  ;;  %v7956_v42 = vmov 0.0  }
 0x4c3   : > { %4383 = vmatprep.subr.bf16.mxu0 %v7956_v42  ;;  %4395 = vmatprep.subr.bf16.mxu1 %v7956_v42 }
 0x4c4   : > { %v1287_v22 = vsel %vm590_vm5, %v1277_v2, 0.0  ;;  %4384 = vmatpush3.bf16.msra.mxu0 %v4766_v27  ;;  %v4767_v2 = vld [vmem:[%s7729_s3 + $0x88] sm:$0xff]  }
 0x4c5   : > { %v6254_v41 = vadd.f32 %v1287_v22, %v6128_v30  ;;  %1876 = vperm.xlu1 %4615, %v7953_v50   ;;  %4385 = vmatprep.subr.bf16.mxu0 %v7956_v42 }
 0x4c6   : > { %v1333_v62 = vpop.permute.xlu1 %1332 }
 0x4c7   : > { %v1354_v53 = vmul.f32 %v1333_v62, %v5950_v37 }
 0x4c8   : > { %4386 = vmatpush3.bf16.msra.mxu0 %v4767_v2 }
 0x4c9   : > { %v1364_v10 = vsel %vm590_vm5, %v1354_v53, 0.0  ;;  %4619 = vset.pattern.permute.xlu1 %v7880_v19  ;;  %4387 = vmatprep.subr.bf16.mxu0 %v7956_v42 }
 0x4ca   : > { %v6263_v58 = vadd.f32 %v1364_v10, %v6139_v4  ;;  %1953 = vperm.xlu1 %4619, %v7953_v50   ;;  %v1988_v4 = vmul.f32 %v4894_v13, %v6186_v25  ;;  %v4771_v10 = vld [vmem:[%s7731_s5] sm:$0xff]  }
 0x4cb   : > { %v6266_v30 = vpop.permute.xlu1 %994  ;;  %v5069_v13 = vld [vmem:[%s7730_s4 + $0x20] sm:$0xff]  ;;  %4396 = vmatpush3.bf16.msra.mxu1 %v4771_v10 }
 0x4cc   : > { %v1996_v38 = vadd.f32 %v1988_v4, %v1774_v14  ;;  %v1591_v5 = vmul.f32 %v5069_v13, %v5540_v59  ;;  %4409 = vmatprep.subr.bf16.mxu1 %v7956_v42  ;;  %v6322_v4 = vld [vmem:[%s7730_s4 + $0x38] sm:$0xff]  ;;  %v1619_v18 = vmul.f32 %v5069_v13, %v5564_v11 }
 0x4cd   : > { %v1566_v39 = vmul.f32 %v7915_v21, %v6322_v4 }
 0x4ce   : > { %4621 = vset.pattern.permute.xlu1 %v7881_v51  ;;  %v2065_v1 = vmul.f32 %v4896_v12, %v1996_v38  ;;  %v1538_v12 = vmul.f32 %v7910_v28, %v6322_v4  ;;  %v1631_v2 = vmul.f32 1.442695, %v1619_v18 }
 0x4cf   : > { %2107 = vperm.xlu1 %4621, %v7953_v50  }
 0x4d0   : > { %v6270_v37 = vpop.permute.xlu1 %1038  ;;  %v2073_v50 = vadd.f32 %v2065_v1, %v1818_v55  ;;  %v1553_v55 = vmul.f32 1.442695, %v1538_v12 }
 0x4d5   : > { %v6272_v52 = vpop.permute.xlu1 %1082 }
 0x4da   : > { %v6277_v57 = vpop.permute.xlu1 %1126 }
 0x4df   : > { %v2015_v47 = vpop.permute.xlu1 %2014 }
 0x4e0   : > { %v2036_v25 = vmul.f32 %v2015_v47, %v1996_v38  ;;  %v1603_v38 = vmul.f32 1.442695, %v1591_v5  ;;  %v856_v47 = vmul.f32 %v5536_v26, %v6322_v4  ;;  %v1202_v26 = vmul.f32 %v6023_v49, %v6005_v0 }
 0x4e1   : > { %v884_v5 = vmul.f32 %v5571_v17, %v6322_v4 }
 0x4e2   : > { %v2046_v46 = vsel %vm590_vm5, %v2036_v25, 0.0  ;;  %4897 = vpow2.f32 %v1603_v38  ;;  %v6335_v25 = vpop.permute.xlu0 %2099  ;;  %v1214_v0 = vsel %vm590_vm5, %v1202_v26, 0.0  ;;  %v1689_v26 = vmul.f32 %v7927_v15, %v6226_v60 }
 0x4e3   : > { %v6293_v22 = vadd.f32 %v2046_v46, %v6214_v16  ;;  %v4768_v16 = vld [vmem:[%s7729_s3 + $0x80] sm:$0xff]   ;;  %v1565_v46 = vmul.f32 %v7915_v21, %v6076_v61  ;;  %v1581_v21 = vmul.f32 1.442695, %v1566_v39  ;;  %v899_v17 = vmul.f32 1.442695, %v884_v5 }
 0x4e4   : > { %v2092_v62 = vpop.permute.xlu1 %2091  ;;  %4388 = vmatpush3.bf16.msra.mxu0 %v4768_v16 }
 0x4e5   : > { %v2113_v53 = vmul.f32 %v2092_v62, %v2073_v50  ;;  %4401 = vmatprep.subr.bf16.mxu0 %v7956_v42  ;;  %v871_v50 = vmul.f32 1.442695, %v856_v47 }
 0x4e6   : > { %v1190_v16 = vpop.permute.xlu0 %1189 }
 0x4e7   : > { %v2123_v20 = vsel %vm590_vm5, %v2113_v53, 0.0  ;;  %v7957_v53 = vld [vmem:[#allocation59_spill] sm:$0xff]  ;;  %v1203_v13 = vmul.f32 %v1190_v16, %v6146_v29 }
 0x4e8   : > { %v6309_v6 = vadd.f32 %v2123_v20, %v6222_v40  ;;  %v1537_v40 = vmul.f32 %v7910_v28, %v6076_v61  ;;  %v1579_v28 = vmul.f32 1.442695, %v1565_v46  ;;  %v1593_v20 = vmul.f32 %v5540_v59, %v6076_v61 }
 0x4e9   : > { %v6315_v14 = vpop.permute.xlu1 %1720 }
 0x4ea   : > { %v1551_v27 = vmul.f32 1.442695, %v1537_v40  ;;  %v1607_v46 = vmul.f32 1.442695, %v1593_v20  ;;  %v6367_v16 = vpop.permute.xlu0 %2026  ;;  %v912_v20 = vmul.f32 %v5589_v24, %v6322_v4 }
 0x4ec   : > { %4899 = vpow2.f32 %v1551_v27  ;;  %v1594_v27 = vmul.f32 %v5540_v59, %v6322_v4  ;;  %v927_v24 = vmul.f32 1.442695, %v912_v20  ;;  %v7963_v20 = vld [vmem:[#allocation21_spill] sm:$0xff] }
 0x4ed   : > { %4901 = vpow2.f32 %v1553_v55  ;;  %v7958_v55 = vld [vmem:[#allocation61_spill] sm:$0xff] }
 0x4ee   : > { %v6326_v31 = vpop.permute.xlu1 %1764  ;;  %4903 = vpow2.f32 %v1631_v2  ;;  %v1216_v2 = vsel %vm590_vm5, %v1203_v13, 0.0 }
 0x4ef   : > { %4905 = vpow2.f32 %v871_v50  ;;  %v4898_v12 = vpop.eup %4897  ;;  %v7959_v50 = vld [vmem:[#allocation55_spill] sm:$0xff] }
 0x4f0   : > { %4907 = vpow2.f32 %v1579_v28  ;;  %v1989_v47 = vmul.f32 %v4898_v12, %v6188_v34  ;;  %v1775_v28 = vmul.f32 %v7913_v32, %v7959_v50  ;;  %v1609_v34 = vmul.f32 1.442695, %v1594_v27 }
 0x4f1   : > { %4909 = vpow2.f32 %v1581_v21 }
 0x4f2   : > { %4911 = vpow2.f32 %v899_v17 }
 0x4f3   : > { %v6333_v1 = vpop.permute.xlu1 %1808  ;;  %4913 = vpow2.f32 %v1607_v46 }
 0x4f4   : > { %4915 = vpow2.f32 %v1609_v34  ;;  %v7962_v34 = vld [vmem:[#allocation32_spill] sm:$0xff] }
 0x4f5   : > { %4917 = vpow2.f32 %v927_v24  ;;  %v7964_v24 = vld [vmem:[#allocation33_spill] sm:$0xff] }
 0x4f8   : > { %v1180_v62 = vpop.permute.xlu1 %1179 }
 0x4f9   : > { %v1201_v10 = vmul.f32 %v1180_v62, %v7957_v53  ;;  %v4900_v62 = vpop.eup %4899 }
 0x4fa   : > { %v4902_v5 = vpop.eup %4901 }
 0x4fb   : > { %v1212_v40 = vsel %vm590_vm5, %v1201_v10, 0.0  ;;  %v1997_v10 = vadd.f32 %v1989_v47, %v1775_v28  ;;  %v4904_v21 = vpop.eup %4903  ;;  %v1733_v28 = vmul.f32 %v7929_v23, %v6230_v33 }
 0x4fc   : > { %v1213_v38 = vadd.f32 %v1212_v40, %v6245_v63  ;;  %v1829_v40 = vmul.f32 0.0, %v4900_v62 }
 0x4fd   : > { %v1260_v49 = vpop.permute.xlu1 %1259  ;;  %v2066_v27 = vmul.f32 %v4904_v21, %v1997_v10 }
 0x4fe   : > { %v1215_v18 = vadd.f32 %v1214_v0, %v1213_v38  ;;  %v1278_v29 = vmul.f32 %v1260_v49, %v7958_v55  ;;  %v6375_v12 = vadd.f32 %v1829_v40, %v1689_v26 }
 0x500   : > { %v1289_v63 = vsel %vm590_vm5, %v1278_v29, 0.0  ;;  %v6360_v39 = vadd.f32 %v1216_v2, %v1215_v18  ;;  %v1830_v18 = vmul.f32 0.0, %v4902_v5  ;;  %v7961_v29 = vld [vmem:[#allocation60_spill] sm:$0xff]  ;;  %v1008_v2 = vmul.f32 %v5637_v56, %v6266_v30 }
 0x501   : > { %v6363_v59 = vadd.f32 %v1289_v63, %v6254_v41  ;;  %v7960_v41 = vld [vmem:[#allocation62_spill] sm:$0xff]  ;;  %v1819_v47 = vmul.f32 %v7923_v3, %v7961_v29  ;;  %v1734_v56 = vmul.f32 %v7929_v23, %v6315_v14 }
 0x502   : > { %v1337_v53 = vpop.permute.xlu1 %1336  ;;  %v1690_v38 = vmul.f32 %v7927_v15, %v7960_v41  ;;  %v1272_v15 = vpop.permute.xlu0 %1271 }
 0x503   : > { %v1355_v13 = vmul.f32 %v1337_v53, %v5961_v36  ;;  %v4906_v36 = vpop.eup %4905  ;;  %v2074_v62 = vadd.f32 %v2066_v27, %v1819_v47  ;;  %v940_v53 = vmul.f32 %v7962_v34, %v6322_v4 }
 0x504   : > { %v4908_v46 = vpop.eup %4907  ;;  %v6380_v17 = vadd.f32 %v1830_v18, %v1690_v38  ;;  %v1148_v26 = vmul.f32 0.0, %v4906_v36  ;;  %v7965_v36 = vld [vmem:[#allocation19_spill] sm:$0xff] }
 0x505   : > { %v1366_v60 = vsel %vm590_vm5, %v1355_v13, 0.0  ;;  %v2115_v13 = vmul.f32 %v6335_v25, %v7963_v20  ;;  %v4910_v5 = vpop.eup %4909  ;;  %v955_v38 = vmul.f32 1.442695, %v940_v53 }
 0x506   : > { %v1367_v0 = vadd.f32 %v1366_v60, %v6263_v58  ;;  %v2019_v49 = vpop.permute.xlu1 %2018  ;;  %v1914_v58 = vmul.f32 %v4908_v46, %v6375_v12  ;;  %v6395_v40 = vadd.f32 %v1148_v26, %v1008_v2  ;;  %v1349_v41 = vpop.permute.xlu0 %1348 }
 0x507   : > { %v2037_v55 = vmul.f32 %v2019_v49, %v1997_v10  ;;  %v4912_v49 = vpop.eup %4911  ;;  %v2127_v25 = vsel %vm590_vm5, %v2115_v13, 0.0  ;;  %4919 = vpow2.f32 %v955_v38  ;;  %v7968_v38 = vld [vmem:[#allocation13_spill] sm:$0xff] }
 0x508   : > { %v6397_v33 = vadd.f32 %v1914_v58, %v1733_v28  ;;  %v4914_v14 = vpop.eup %4913  ;;  %v1233_v18 = vmul.f32 %v4912_v49, %v6395_v40  ;;  %v1778_v58 = vmul.f32 %v7913_v32, %v6326_v31 }
 0x509   : > { %v2048_v50 = vsel %vm590_vm5, %v2037_v55, 0.0  ;;  %v1052_v55 = vmul.f32 %v7964_v24, %v6270_v37  ;;  %v4916_v2 = vpop.eup %4915 }
 0x50a   : > { %v2049_v63 = vadd.f32 %v2048_v50, %v6293_v22  ;;  %v1915_v22 = vmul.f32 %v4910_v5, %v6380_v17  ;;  %v1991_v46 = vmul.f32 %v4914_v14, %v6397_v33  ;;  %v4918_v13 = vpop.eup %4917  ;;  %v7967_v5 = vld [vmem:[#allocation38_spill] sm:$0xff] }
 0x50b   : > { %v2096_v10 = vpop.permute.xlu1 %2095  ;;  %v1241_v26 = vadd.f32 %v1233_v18, %v1052_v55 }
 0x50c   : > { %v2114_v30 = vmul.f32 %v2096_v10, %v2074_v62  ;;  %v6403_v27 = vadd.f32 %v1915_v22, %v1734_v56  ;;  %v1426_v62 = vpop.permute.xlu0 %1425  ;;  %v7966_v10 = vld [vmem:[#allocation39_spill] sm:$0xff]  ;;  %v1096_v22 = vmul.f32 %v7967_v5, %v6272_v52 }
 0x50d   : > { %v1281_v52 = vmul.f32 %v1272_v15, %v1241_v26 }
 0x50e   : > { %v2125_v21 = vsel %vm590_vm5, %v2114_v30, 0.0  ;;  %v1992_v28 = vmul.f32 %v4916_v2, %v6403_v27  ;;  %v1310_v30 = vmul.f32 %v4918_v13, %v1241_v26 }
 0x50f   : > { %v2126_v60 = vadd.f32 %v2125_v21, %v6309_v6  ;;  %v1777_v6 = vmul.f32 %v7913_v32, %v6234_v54 }
 0x510   : > { %v1264_v23 = vpop.permute.xlu1 %1263  ;;  %v6420_v56 = vadd.f32 %v1992_v28, %v1778_v58  ;;  %v2031_v32 = vpop.permute.xlu0 %2030  ;;  %v1318_v14 = vadd.f32 %v1310_v30, %v1096_v22  ;;  %v1295_v28 = vsel %vm590_vm5, %v1281_v52, 0.0 }
 0x511   : > { %v1279_v29 = vmul.f32 %v1264_v23, %v7965_v36  ;;  %v6409_v47 = vadd.f32 %v2127_v25, %v2126_v60  ;;  %v1999_v53 = vadd.f32 %v1991_v46, %v1777_v6  ;;  %v1621_v23 = vmul.f32 %v5564_v11, %v6076_v61 }
 0x512   : > { %v2040_v49 = vmul.f32 %v2031_v32, %v6420_v56  ;;  %v1358_v15 = vmul.f32 %v1349_v41, %v1318_v14  ;;  %v7970_v32 = vld [vmem:[#allocation30_spill] sm:$0xff] }
 0x513   : > { %v1291_v50 = vsel %vm590_vm5, %v1279_v29, 0.0  ;;  %v1635_v6 = vmul.f32 1.442695, %v1621_v23  ;;  %v1821_v23 = vmul.f32 %v7923_v3, %v6238_v8 }
 0x514   : > { %v1292_v37 = vadd.f32 %v1291_v50, %v6363_v59  ;;  %v2039_v59 = vmul.f32 %v6367_v16, %v1999_v53  ;;  %v4920_v46 = vpop.eup %4919  ;;  %v2054_v16 = vsel %vm590_vm5, %v2040_v49, 0.0  ;;  %v1140_v50 = vmul.f32 %v5672_v44, %v6277_v57 }
 0x515   : > { %v1341_v34 = vpop.permute.xlu1 %1340  ;;  %v1387_v2 = vmul.f32 %v4920_v46, %v1318_v14  ;;  %4921 = vpow2.f32 %v1635_v6  ;;  %v1372_v30 = vsel %vm590_vm5, %v1358_v15, 0.0 }
 0x516   : > { %v1356_v20 = vmul.f32 %v1341_v34, %v7966_v10  ;;  %v2052_v24 = vsel %vm590_vm5, %v2039_v59, 0.0 }
 0x518   : > { %v1368_v54 = vsel %vm590_vm5, %v1356_v20, 0.0  ;;  %v1395_v20 = vadd.f32 %v1387_v2, %v1140_v50 }
 0x519   : > { %v1369_v31 = vadd.f32 %v1368_v54, %v1367_v0  ;;  %v2023_v21 = vpop.permute.xlu1 %2022  ;;  %v7969_v0 = vld [vmem:[#allocation29_spill] sm:$0xff] }
 0x51a   : > { %v2038_v60 = vmul.f32 %v2023_v21, %v7968_v38  ;;  %v1435_v57 = vmul.f32 %v1426_v62, %v1395_v20 }
 0x51c   : > { %v2050_v25 = vsel %vm590_vm5, %v2038_v60, 0.0  ;;  %v1449_v41 = vsel %vm590_vm5, %v1435_v57, 0.0 }
 0x51d   : > { %v2051_v18 = vadd.f32 %v2050_v25, %v2049_v63  ;;  %v7971_v25 = vld [vmem:[#allocation9_spill] sm:$0xff] }
 0x51e   : > { %v1268_v55 = vpop.permute.xlu1 %1267 }
 0x51f   : > { %v2053_v36 = vadd.f32 %v2052_v24, %v2051_v18  ;;  %v1280_v29 = vmul.f32 %v1268_v55, %v7969_v0 }
 0x521   : > { %v6436_v58 = vadd.f32 %v2054_v16, %v2053_v36  ;;  %v1293_v61 = vsel %vm590_vm5, %v1280_v29, 0.0 }
 0x522   : > { %v1294_v63 = vadd.f32 %v1293_v61, %v1292_v37  ;;  %v4922_v49 = vpop.eup %4921 }
 0x523   : > { %v1345_v34 = vpop.permute.xlu1 %1344  ;;  %v2068_v18 = vmul.f32 %v4922_v49, %v1999_v53 }
 0x524   : > { %v1296_v26 = vadd.f32 %v1295_v28, %v1294_v63  ;;  %v1357_v10 = vmul.f32 %v1345_v34, %v6167_v7  ;;  %v2056_v28 = vrot.slane %v6436_v58, 4 }
 0x526   : > { %v1370_v13 = vsel %vm590_vm5, %v1357_v10, 0.0  ;;  %v1297_v36 = vrot.slane %v1296_v26, 4 }
 0x527   : > { %v1371_v54 = vadd.f32 %v1370_v13, %v1369_v31  ;;  %v1622_v31 = vmul.f32 %v5564_v11, %v6322_v4  ;;  %v2076_v4 = vadd.f32 %v2068_v18, %v1821_v23 }
 0x528   : > { %v1422_v44 = vpop.permute.xlu1 %1421  ;;  %v1298_v53 = vadd.f32 %v1297_v36, %v1296_v26 }
 0x529   : > { %v1373_v5 = vadd.f32 %v1372_v30, %v1371_v54  ;;  %v1434_v22 = vmul.f32 %v1422_v44, %v6173_v9  ;;  %v4231_v9 = vmul.f32 -1.442695, %v7971_v25  ;;  %v1637_v55 = vmul.f32 1.442695, %v1622_v31 }
 0x52a   : > { %v1822_v44 = vmul.f32 %v7923_v3, %v6333_v1 }
 0x52b   : > { %v1447_v37 = vsel %vm590_vm5, %v1434_v22, 0.0  ;;  %4923 = vpow2.f32 %v4231_v9  ;;  %v1374_v0 = vrot.slane %v1373_v5, 4 }
 0x52c   : > { %v1448_v21 = vadd.f32 %v1447_v37, %v7970_v32  ;;  %4925 = vpow2.f32 %v1637_v55 }
 0x52d   : > { %v1872_v59 = vpop.permute.xlu1 %1871 }
 0x52e   : > { %v1450_v7 = vadd.f32 %v1449_v41, %v1448_v21  ;;  %v1885_v38 = vmul.f32 %v1872_v59, %v6375_v12 }
 0x530   : > { %v1898_v60 = vsel %vm590_vm5, %v1885_v38, 0.0  ;;  %v1451_v29 = vrot.slane %v1450_v7, 4 }
 0x531   : > { %v1899_v62 = vadd.f32 %v1898_v60, %v6208_v48 }
 0x532   : > { %v1950_v14 = vpop.permute.xlu1 %1949  ;;  %v1452_v2 = vadd.f32 %v1451_v29, %v1450_v7 }
 0x533   : > { %v1962_v24 = vmul.f32 %v1950_v14, %v6397_v33  ;;  %v1375_v33 = vadd.f32 %v1374_v0, %v1373_v5 }
 0x534   : > { %v1453_v10 = vrot.slane %v1452_v2, 2 }
 0x535   : > { %v1975_v12 = vsel %vm590_vm5, %v1962_v24, 0.0  ;;  %v1376_v34 = vrot.slane %v1375_v33, 2 }
 0x536   : > { %v1976_v11 = vadd.f32 %v1975_v12, %v6218_v45  ;;  %v1299_v45 = vrot.slane %v1298_v53, 2  ;;  %v1454_v37 = vadd.f32 %v1453_v10, %v1452_v2  ;;  %v5070_v10 = vld [vmem:[%s7730_s4 + $0x40] sm:$0xff] }
 0x537   : > { %v2104_v52 = vpop.permute.xlu1 %2103  ;;  %v1377_v57 = vadd.f32 %v1376_v34, %v1375_v33 }
 0x538   : > { %v2116_v48 = vmul.f32 %v2104_v52, %v2076_v4  ;;  %v1300_v54 = vadd.f32 %v1299_v45, %v1298_v53 }
 0x539   : > { %v1378_v49 = vrot.slane %v1377_v57, 1 }
 0x53a   : > { %v2129_v46 = vsel %vm590_vm5, %v2116_v48, 0.0  ;;  %v1301_v59 = vrot.slane %v1300_v54, 1 }
 0x53b   : > { %v2130_v8 = vadd.f32 %v2129_v46, %v6409_v47  ;;  %v4924_v47 = vpop.eup %4923  ;;  %v1379_v12 = vadd.f32 %v1378_v49, %v1377_v57  ;;  %v4776_v49 = vld [vmem:[%s7731_s5 + $0x50] sm:$0xff]  }
 0x53c   : > { %v1195_v16 = vpop.permute.xlu1 %1194  ;;  %v4926_v13 = vpop.eup %4925  ;;  %v2160_v41 = vadd.f32 1.0, %v4924_v47  ;;  %v1302_v18 = vadd.f32 %v1301_v59, %v1300_v54 }
 0x53d   : > { %v1204_v6 = vmul.f32 %v1195_v16, %v6395_v40  ;;  %v2069_v22 = vmul.f32 %v4926_v13, %v6420_v56 }
 0x53e   : > { %4927 = vrcp.f32 %v2160_v41 }
 0x53f   : > { %v1218_v50 = vsel %vm590_vm5, %v1204_v6, 0.0  ;;  %v2077_v1 = vadd.f32 %v2069_v22, %v1822_v44 }
 0x540   : > { %v1219_v61 = vadd.f32 %v1218_v50, %v6360_v39  ;;  %v1877_v63 = vpop.permute.xlu1 %1876  ;;  %v2057_v39 = vadd.f32 %v2056_v28, %v6436_v58  ;;  %v1455_v58 = vrot.slane %v1454_v37, 1 }
 0x541   : > { %v1886_v15 = vmul.f32 %v1877_v63, %v6380_v17 }
 0x542   : > { %v1220_v20 = vrot.slane %v1219_v61, 4  ;;  %v2058_v60 = vrot.slane %v2057_v39, 2  ;;  %v1456_v36 = vadd.f32 %v1455_v58, %v1454_v37  ;;  %v4770_v37 = vld [vmem:[%s7731_s5 + $0x18] sm:$0xff]   ;;  %v4779_v58 = vld [vmem:[%s7731_s5 + $0x20] sm:$0xff]  }
 0x543   : > { %v1900_v26 = vsel %vm590_vm5, %v1886_v15, 0.0 }
 0x544   : > { %v1221_v40 = vadd.f32 %v1220_v20, %v1219_v61  ;;  %v1901_v30 = vadd.f32 %v1900_v26, %v1899_v62  ;;  %v2059_v55 = vadd.f32 %v2058_v60, %v2057_v39  ;;  %v7972_v20 = vld [vmem:[#allocation26_spill] sm:$0xff]  ;;  %v4775_v60 = vld [vmem:[%s7731_s5 + $0x30] sm:$0xff]  }
 0x545   : > { %v1954_v5 = vpop.permute.xlu1 %1953  ;;  %v2154_v47 = vrot.slane %v5070_v10, %v7972_v20 }
 0x546   : > { %v1222_v17 = vrot.slane %v1221_v40, 2  ;;  %v1902_v32 = vrot.slane %v1901_v30, 4  ;;  %v1963_v21 = vmul.f32 %v1954_v5, %v6403_v27  ;;  %v2060_v2 = vrot.slane %v2059_v55, 1 }
 0x548   : > { %v1223_v7 = vadd.f32 %v1222_v17, %v1221_v40  ;;  %v1903_v38 = vadd.f32 %v1902_v32, %v1901_v30  ;;  %v1977_v31 = vsel %vm590_vm5, %v1963_v21, 0.0  ;;  %v2061_v34 = vadd.f32 %v2060_v2, %v2059_v55  ;;  %v7973_v30 = vld [vmem:[#allocation11_spill] sm:$0xff]  ;;  %v4772_v32 = vld [vmem:[%s7731_s5 + $0x10] sm:$0xff]  }
 0x549   : > { %v1978_v3 = vadd.f32 %v1977_v31, %v1976_v11  ;;  %v2155_v44 = vmul.f32 %v2154_v47, %v7973_v30  ;;  %v4774_v31 = vld [vmem:[%s7731_s5 + $0x58] sm:$0xff]  }
 0x54a   : > { %v1224_v62 = vrot.slane %v1223_v7, 1  ;;  %v1904_v9 = vrot.slane %v1903_v38, 2  ;;  %v2108_v23 = vpop.permute.xlu1 %2107 }
 0x54b   : > { %v1979_v56 = vrot.slane %v1978_v3, 4  ;;  %v2117_v14 = vmul.f32 %v2108_v23, %v2077_v1  ;;  %v4928_v26 = vpop.eup %4927  ;;  %v4778_v1 = vld [vmem:[%s7731_s5 + $0x48] sm:$0xff]  }
 0x54c   : > { %v1225_v27 = vadd.f32 %v1224_v62, %v1223_v7  ;;  %v1905_v24 = vadd.f32 %v1904_v9, %v1903_v38  ;;  %v2163_v57 = vmul.f32 %v4928_v26, %v7971_v25  ;;  %v4773_v38 = vld [vmem:[%s7731_s5 + $0x38] sm:$0xff]   ;;  %v4780_v62 = vld [vmem:[%s7731_s5 + $0x40] sm:$0xff]  }
 0x54d   : > { %v1980_v4 = vadd.f32 %v1979_v56, %v1978_v3  ;;  %v2131_v52 = vsel %vm590_vm5, %v2117_v14, 0.0  ;;  %v4777_v3 = vld [vmem:[%s7731_s5 + $0x28] sm:$0xff]   ;;  %v6542_v9 = vld [vmem:[%s7732_s6 + $0x40] sm:$0xff]  ;;  %v7975_v56 = vld [vmem:[#allocation5_spill] sm:$0xff] }
 0x54e   : > { %v2140_v11 = vsel %vm2139_vm8, %v1225_v27, %v1302_v18  ;;  %v1906_v48 = vrot.slane %v1905_v24, 1  ;;  %v2132_v0 = vadd.f32 %v2131_v52, %v2130_v8  ;;  %v2402_v14 = vrot.slane %v6542_v9, %v7975_v56 }
 0x54f   : > { %v2142_v29 = vsel %vm2141_vm9, %v2140_v11, %v1379_v12  ;;  %v1981_v46 = vrot.slane %v1980_v4, 2 }
 0x550   : > { %v2143_v53 = vsel %vm491_vm3, %v2142_v29, %v1456_v36  ;;  %v1907_v16 = vadd.f32 %v1906_v48, %v1905_v24  ;;  %v2133_v33 = vrot.slane %v2132_v0, 4  ;;  %v7977_v24 = vld [vmem:[#allocation6_spill] sm:$0xff] }
 0x551   : > { %v1982_v6 = vadd.f32 %v1981_v46, %v1980_v4  ;;  %v2411_v55 = vrot.slane %v6542_v9, %v7977_v24  ;;  %v7978_v4 = vld [vmem:[#allocation7_spill] sm:$0xff] }
 0x552   : > { %v2144_v50 = vsel %vm547_vm4, %v2143_v53, %v1907_v16  ;;  %v2134_v45 = vadd.f32 %v2133_v33, %v2132_v0  ;;  %v2397_v52 = vrot.slane %v6542_v9, %v7978_v4  ;;  %v7979_v0 = vld [vmem:[#allocation8_spill] sm:$0xff] }
 0x553   : > { %v1983_v61 = vrot.slane %v1982_v6, 1  ;;  %v2420_v29 = vrot.slane %v6542_v9, %v7979_v0 }
 0x554   : > { %v2135_v63 = vrot.slane %v2134_v45, 2 }
 0x555   : > { %v1984_v28 = vadd.f32 %v1983_v61, %v1982_v6 }
 0x556   : > { %v2136_v15 = vadd.f32 %v2135_v63, %v2134_v45 }
 0x557   : > { %v2146_v8 = vsel %vm2145_vm10, %v2144_v50, %v1984_v28 }
 0x558   : > { %v2148_v13 = vsel %vm2147_vm11, %v2146_v8, %v2061_v34  ;;  %v2137_v54 = vrot.slane %v2136_v15, 1 }
 0x55a   : > { %v2138_v40 = vadd.f32 %v2137_v54, %v2136_v15 }
 0x55c   : > { %v2150_v39 = vsel %vm2149_vm12, %v2148_v13, %v2138_v40 }
 0x55d   : > { %v2156_v5 = vadd.f32 %v2155_v44, %v2150_v39 }
 0x55f   : > { %v2164_v22 = vmul.f32 %v2163_v57, %v2156_v5  ;;  %v7980_v5 = vld [vmem:[#allocation10_spill] sm:$0xff] }
 0x561   : > { %v2165_v17 = vpack.c.bf16 %v2164_v22, %v2164_v22  ;;  %v2452_v22 = vrot.slane %v6542_v9, %v7980_v5 }
 0x563   : > { %4390 = vmatmul.mubr.msk.bf16.vlgmr.msra.gmra.mxu0 %vm590_vm5, %v2165_v17 }
 0x564   : > { %4402 = vmatpush3.bf16.msra.mxu0 %v4770_v37  ;;  %4405 = vmatprep.mubr.msk.bf16.mxu0 %vm5136_vm0, %v7956_v42 }
 0x565   : > { %4403 = vmatprep.subr.bf16.mxu0 %v7956_v42 }
 0x568   : > { %4404 = vmatpush3.bf16.msra.mxu0 %v4772_v32 }
 0x569   : > { %4421 = vmatprep.subr.bf16.mxu0 %v7956_v42 }
 0x623   : > { %v6497_v25 = vpop.f32.mrf.mxu0 }
 0x624   : > { %7974 = vst [vmem:[#allocation45_spill] sm:$0xff] %v6497_v25  ;;  %v2282_v21 = vpack.c.bf16 %v6497_v25, %v6497_v25 }
 0x625   : > { %v4391_v41 = vpop.f32.mrf.mxu0 }
 0x626   : > { %4398 = vmatmul.mubr.msk.bf16.vlgmr.msra.gmra.mxu1 %vm392_vm2, %v2282_v21  ;;  %4406 = vmatmul.mubr.msk.bf16.vlgmr.msra.gmra.mxu0 %vm392_vm2, %v2282_v21 }
 0x627   : > { %v2230_v59 = vpop.f32.mrf.mxu0  ;;  %4417 = vmatprep.mubr.msk.bf16.mxu1 %vm5136_vm0, %v7956_v42  ;;  %4429 = vmatprep.mubr.msk.bf16.mxu0 %vm5136_vm0, %v7956_v42 }
 0x628   : > { %4410 = vmatpush3.bf16.msra.mxu1 %v4773_v38  ;;  %4422 = vmatpush3.bf16.msra.mxu0 %v4774_v31 }
 0x629   : > { %v4392_v7 = vpop.f32.mrf.mxu0  ;;  %4411 = vmatprep.subr.bf16.mxu1 %v7956_v42  ;;  %4423 = vmatprep.subr.bf16.mxu0 %v7956_v42 }
 0x62c   : > { %4412 = vmatpush3.bf16.msra.mxu1 %v4775_v60  ;;  %4424 = vmatpush3.bf16.msra.mxu0 %v4776_v49  ;;  %v4781_v60 = vld [vmem:[%s7731_s5 + $0x78] sm:$0xff]  }
 0x62d   : > { %4413 = vmatprep.subr.bf16.mxu1 %v7956_v42  ;;  %4425 = vmatprep.subr.bf16.mxu0 %v7956_v42 }
 0x630   : > { %4414 = vmatpush3.bf16.msra.mxu1 %v4777_v3  ;;  %4426 = vmatpush3.bf16.msra.mxu0 %v4778_v1  ;;  %v4782_v3 = vld [vmem:[%s7731_s5 + $0x70] sm:$0xff]   ;;  %v4783_v1 = vld [vmem:[%s7731_s5 + $0x68] sm:$0xff]  }
 0x631   : > { %4415 = vmatprep.subr.bf16.mxu1 %v7956_v42  ;;  %4427 = vmatprep.subr.bf16.mxu0 %v7956_v42 }
 0x634   : > { %4416 = vmatpush3.bf16.msra.mxu1 %v4779_v58  ;;  %4428 = vmatpush3.bf16.msra.mxu0 %v4780_v62  ;;  %v4784_v58 = vld [vmem:[%s7731_s5 + $0x60] sm:$0xff]  }
 0x635   : > { %4433 = vmatprep.subr.bf16.mxu1 %v7956_v42  ;;  %4445 = vmatprep.subr.bf16.mxu0 %v7956_v42 }
 0x6e6   : > { %v2332_v23 = vpop.f32.mrf.mxu1  ;;  %v6546_v18 = vpop.f32.mrf.mxu0 }
 0x6e7   : > { %7976 = vst [vmem:[#allocation57_spill] sm:$0xff] %v6546_v18  ;;  %v2391_v27 = vrot.slane %v2332_v23, 5  ;;  %v2426_v12 = vrot.slane %v2332_v23, 1 }
 0x6e8   : > { %v4399_v36 = vpop.f32.mrf.mxu1  ;;  %v4407_v11 = vpop.f32.mrf.mxu0 }
 0x6e9   : > { %v2393_v48 = vsel %vm491_vm3, 0.0, %v2391_v27  ;;  %v2428_v46 = vsel %vm491_vm3, 0.0, %v2426_v12 }
 0x6ea   : > { %v2403_v53 = vmul.f32 %v2402_v14, %v2393_v48  ;;  %v2335_v16 = vpop.f32.mrf.mxu1  ;;  %v2387_v33 = vpop.f32.mrf.mxu0  ;;  %v2412_v6 = vmul.f32 %v2411_v55, %v2393_v48  ;;  %v2430_v2 = vmul.f32 %v2428_v46, %v2402_v14  ;;  %v2435_v50 = vmul.f32 %v2428_v46, %v2411_v55 }
 0x6eb   : > { %v2398_v45 = vmul.f32 %v2397_v52, %v2393_v48  ;;  %v2429_v34 = vmul.f32 %v2428_v46, %v2397_v52  ;;  %v2440_v8 = vmul.f32 %v2428_v46, %v2420_v29  ;;  %v2421_v26 = vmul.f32 %v2420_v29, %v2393_v48 }
 0x6ec   : > { %v2405_v61 = vrot.slane %v2403_v53, 1  ;;  %v4400_v63 = vpop.f32.mrf.mxu1  ;;  %v4408_v28 = vpop.f32.mrf.mxu0  ;;  %v2432_v15 = vrot.slane %v2430_v2, 1  ;;  %v2414_v47 = vrot.slane %v2412_v6, 2  ;;  %v2437_v54 = vrot.slane %v2435_v50, 2 }
 0x6ed   : > { %v2442_v44 = vrot.slane %v2440_v8, 3  ;;  %v2423_v39 = vrot.slane %v2421_v26, 3 }
 0x6ee   : > { %v2407_v10 = vadd.f32 %v2405_v61, %v2398_v45  ;;  %v2434_v13 = vadd.f32 %v2432_v15, %v2429_v34  ;;  %v7982_v15 = vld [vmem:[#allocation12_spill] sm:$0xff] }
 0x6ef   : > { %v2465_v8 = vrot.slane %v6542_v9, %v7982_v15 }
 0x6f0   : > { %v2416_v40 = vadd.f32 %v2414_v47, %v2407_v10  ;;  %v2439_v30 = vadd.f32 %v2437_v54, %v2434_v13 }
 0x6f2   : > { %v2444_v57 = vadd.f32 %v2442_v44, %v2439_v30  ;;  %v2425_v37 = vadd.f32 %v2423_v39, %v2416_v40 }
 0x6f4   : > { %v2446_v17 = vrot.slane %v2444_v57, 4 }
 0x6f6   : > { %v2448_v32 = vsel %vm547_vm4, %v2425_v37, %v2446_v17 }
 0x6f7   : > { %v2453_v21 = vadd.f32 %v2452_v22, %v2448_v32 }
 0x6f9   : > { %v4243_v41 = vmul.f32 -1.442695, %v2453_v21 }
 0x6fb   : > { %4929 = vpow2.f32 %v4243_v41 }
 0x708   : > { %v4930_v59 = vpop.eup %4929 }
 0x709   : > { %v2457_v7 = vadd.f32 1.0, %v4930_v59 }
 0x70b   : > { %4931 = vrcp.f32 %v2457_v7 }
 0x718   : > { %v4932_v38 = vpop.eup %4931 }
 0x719   : > { %v6559_v31 = vmul.f32 %v4932_v38, %v2453_v21 }
 0x71b   : > { %7981 = vst [vmem:[#allocation35_spill] sm:$0xff] %v6559_v31  ;;  %v2461_v49 = vpack.c.bf16 %v6559_v31, %v6559_v31 }
 0x71d   : > { %4418 = vmatmul.mubr.msk.bf16.vlgmr.msra.gmra.mxu1 %vm590_vm5, %v2461_v49  ;;  %4430 = vmatmul.mubr.msk.bf16.vlgmr.msra.gmra.mxu0 %vm590_vm5, %v2461_v49 }
 0x71e   : > { %4434 = vmatpush3.bf16.msra.mxu1 %v4781_v60  ;;  %4441 = vmatprep.mubr.msk.bf16.mxu1 %vm5136_vm0, %v7956_v42 }
 0x71f   : > { %4435 = vmatprep.subr.bf16.mxu1 %v7956_v42  ;;  %4453 = vmatprep.mubr.msk.bf16.mxu0 %vm5136_vm0, %v7956_v42 }
 0x722   : > { %4436 = vmatpush3.bf16.msra.mxu1 %v4782_v3 }
 0x723   : > { %4437 = vmatprep.subr.bf16.mxu1 %v7956_v42 }
 0x726   : > { %4438 = vmatpush3.bf16.msra.mxu1 %v4783_v1 }
 0x727   : > { %4439 = vmatprep.subr.bf16.mxu1 %v7956_v42 }
 0x72a   : > { %4440 = vmatpush3.bf16.msra.mxu1 %v4784_v58 }
 0x72d   : > { %4442 = vmatmul.mubr.msk.bf16.vlgmr.msra.gmra.mxu1 %vm590_vm5, %v2461_v49 }
 0x7dd   : > { %v2527_v62 = vpop.f32.mrf.mxu1  ;;  %v2609_v23 = vpop.f32.mrf.mxu0 }
 0x7de   : > { %v3357_v14 = vrot.slane %v2609_v23, 4  ;;  %2680 = vxpose.xlu0.b32.start.end [1/1] (short) (narrow) %v2609_v23, 64  ;;  %v6613_v47 = vadd.f32 %v2527_v62, %v2465_v8 }
 0x7df   : > { %v4419_v27 = vpop.f32.mrf.mxu1  ;;  %v4431_v55 = vpop.f32.mrf.mxu0 }
 0x7e0   : > { %3359 = vxpose.xlu1.b32.start.end [1/1] (short) (narrow) %v3357_v14, 64  ;;  %v2536_v13 = vand.u32 2147483647, %v6613_v47  ;;  %v2533_v23 = vmax.f32 %v6613_v47, 0.0  ;;  %vm2534_vm14 = vcmp.ne.f32.partialorder %v6613_v47, %v6613_v47 }
 0x7e1   : > { %v2530_v12 = vpop.f32.mrf.mxu1  ;;  %v2612_v52 = vpop.f32.mrf.mxu0 }
 0x7e2   : > { %v2537_v54 = vsub.f32 0.0, %v2536_v13 }
 0x7e3   : > { %v4420_v36 = vpop.f32.mrf.mxu1  ;;  %v4432_v11 = vpop.f32.mrf.mxu0 }
 0x7e4   : > { %v2538_v40 = vmul.f32 1.442695, %v2537_v54  ;;  %v7988_v54 = vld [vmem:[#allocation27_spill] sm:$0xff] }
 0x7e6   : > { %4933 = vpow2.f32 %v2538_v40 }
 0x7ed   : > { %v2673_v48 = vpop.f32.mrf.mxu1 }
 0x7ee   : > { %v3392_v16 = vrot.slane %v2673_v48, 4 }
 0x7ef   : > { %v4443_v29 = vpop.f32.mrf.mxu1 }
 0x7f1   : > { %v2676_v46 = vpop.f32.mrf.mxu1 }
 0x7f3   : > { %v4444_v53 = vpop.f32.mrf.mxu1  ;;  %v4934_v22 = vpop.eup %4933 }
 0x7f4   : > { %v2540_v37 = vadd.f32 1.0, %v4934_v22  ;;  %v2543_v21 = vmul.f32 -0.5, %v4934_v22  ;;  %v2546_v60 = vand.u32 2147483647, %v4934_v22 }
 0x7f6   : > { %4935 = vlog2.f32 %v2540_v37  ;;  %v2544_v38 = vadd.f32 1.0, %v2543_v21  ;;  %vm2547_vm13 = vcmp.lt.f32.partialorder %v2546_v60, 0.0004427343 }
 0x7f8   : > { %v2545_v58 = vmul.f32 %v4934_v22, %v2544_v38 }
 0x7fb   : > { %3394 = vxpose.xlu0.b32.start.end [1/1] (short) (narrow) %v3392_v16, 64 }
 0x7fd   : > { %2712 = vxpose.xlu1.b32.start.end [1/1] (short) (narrow) %v2673_v48, 64  ;;  %v6709_v48 = vld [vmem:[%s7732_s6] sm:$0xff] }
 0x803   : > { %v4936_v7 = vpop.eup %4935 }
 0x804   : > { %v2542_v49 = vmul.f32 0.6931472, %v4936_v7 }
 0x806   : > { %v2548_v62 = vsel %vm2547_vm13, %v2545_v58, %v2542_v49 }
 0x807   : > { %v2549_v55 = vadd.f32 %v2548_v62, %v2533_v23 }
 0x809   : > { %v6692_v12 = vsel %vm2534_vm14, %v6613_v47, %v2549_v55 }
 0x80a   : > { %v6704_v11 = vrot.slane %v6692_v12, %v7980_v5  ;;  %v6723_v16 = vrot.slane %v6692_v12, %v7982_v15  ;;  %v6756_v47 = vrot.slane %v6692_v12, %v7975_v56  ;;  %v6762_v40 = vrot.slane %v6692_v12, %v7988_v54 }
 0x80b   : > { %v6778_v60 = vrot.slane %v6692_v12, %v7977_v24  ;;  %v6782_v49 = vmul.f32 %v6692_v12, %v6559_v31 }
 0x80c   : > { %v3430_v53 = vmul.f32 %v6704_v11, %v6709_v48  ;;  %v3514_v38 = vmul.f32 %v6762_v40, %v6709_v48 }
 0x80d   : > { %v6824_v31 = vrot.slane %v6782_v49, %v7982_v15 }
 0x80e   : > { %v3522_v55 = vmul.f32 1.442695, %v3514_v38 }
 0x81b   : > { %4624 = vset.pattern.permute.xlu1 %v7876_v35 }
 0x824   : > { %4622 = vset.pattern.permute.xlu0 %v7878_v43 }
 0x85a   : > { %v2696_v33 = vpop.trf.xlu0 }
 0x85b   : > { %2858 = vperm.xlu0 %4622, %v2696_v33   ;;  %2953 = vperm.xlu1 %4624, %v2696_v33  }
 0x85c   : > { %v3375_v6 = vpop.trf.xlu1 }
 0x85e   : > { %v2697_v45 = vpop.trf.xlu0 }
 0x85f   : > { %4623 = vset.pattern.permute.xlu0 %v7880_v19  ;;  %4626 = vset.pattern.permute.xlu1 %v7878_v43 }
 0x860   : > { %2909 = vperm.xlu0 %4623, %v2696_v33   ;;  %3540 = vperm.xlu1 %4626, %v3375_v6   ;;  %v3376_v2 = vpop.trf.xlu1 }
 0x862   : > { %v2698_v28 = vpop.trf.xlu0 }
 0x864   : > { %4625 = vset.pattern.permute.xlu0 %v7881_v51  ;;  %4627 = vset.pattern.permute.xlu1 %v7880_v19  ;;  %v6591_v50 = vpop.trf.xlu1 }
 0x865   : > { %2997 = vperm.xlu0 %4625, %v2696_v33   ;;  %3591 = vperm.xlu1 %4627, %v3375_v6   ;;  %v3438_v33 = vmul.f32 1.442695, %v3430_v53 }
 0x866   : > { %v6609_v10 = vpop.trf.xlu0 }
 0x867   : > { %4937 = vpow2.f32 %v3438_v33 }
 0x868   : > { %v6595_v61 = vpop.trf.xlu1 }
 0x869   : > { %4628 = vset.pattern.permute.xlu0 %v7876_v35  ;;  %4630 = vset.pattern.permute.xlu1 %v7878_v43 }
 0x86a   : > { %3635 = vperm.xlu0 %4628, %v3375_v6   ;;  %2863 = vperm.xlu1 %4630, %v2697_v45   ;;  %v6632_v44 = vpop.trf.xlu0 }
 0x86c   : > { %v6599_v63 = vpop.trf.xlu1 }
 0x86e   : > { %4629 = vset.pattern.permute.xlu0 %v7881_v51  ;;  %4631 = vset.pattern.permute.xlu1 %v7880_v19  ;;  %v6637_v39 = vpop.trf.xlu0 }
 0x86f   : > { %3679 = vperm.xlu0 %4629, %v3375_v6   ;;  %2913 = vperm.xlu1 %4631, %v2697_v45   ;;  %v6731_v6 = vrot.slane %v6692_v12, %v7978_v4 }
 0x870   : > { %v6605_v34 = vpop.trf.xlu1 }
 0x872   : > { %v6642_v57 = vpop.trf.xlu0 }
 0x873   : > { %4632 = vset.pattern.permute.xlu0 %v7876_v35  ;;  %4633 = vset.pattern.permute.xlu1 %v7881_v51 }
 0x874   : > { %2957 = vperm.xlu0 %4632, %v2697_v45   ;;  %3001 = vperm.xlu1 %4633, %v2697_v45   ;;  %v6616_v26 = vpop.trf.xlu1  ;;  %v3458_v45 = vmul.f32 %v6723_v16, %v6709_v48  ;;  %v4938_v53 = vpop.eup %4937 }
 0x876   : > { %v6650_v17 = vpop.trf.xlu0 }
 0x878   : > { %4638 = vset.pattern.permute.xlu0 %v7878_v43  ;;  %4634 = vset.pattern.permute.xlu1 %v7878_v43  ;;  %v6622_v9 = vpop.trf.xlu1 }
 0x879   : > { %2868 = vperm.xlu0 %4638, %v2698_v28   ;;  %3545 = vperm.xlu1 %4634, %v3376_v2   ;;  %7983 = vst [vmem:[#allocation46_spill] sm:$0xff] %v6622_v9  ;;  %v6842_v9 = vrot.slane %v6782_v49, %v7978_v4 }
 0x87a   : > { %v6658_v32 = vpop.trf.xlu0 }
 0x87c   : > { %v6627_v30 = vpop.trf.xlu1 }
 0x87d   : > { %4647 = vset.pattern.permute.xlu0 %v7880_v19  ;;  %4635 = vset.pattern.permute.xlu1 %v7880_v19 }
 0x87e   : > { %2921 = vperm.xlu0 %4647, %v6609_v10   ;;  %3595 = vperm.xlu1 %4635, %v3376_v2   ;;  %v6664_v41 = vpop.trf.xlu0 }
 0x880   : > { %v6666_v59 = vpop.trf.xlu1 }
 0x882   : > { %4649 = vset.pattern.permute.xlu0 %v7881_v51  ;;  %4636 = vset.pattern.permute.xlu1 %v7876_v35  ;;  %v6672_v3 = vpop.trf.xlu0 }
 0x883   : > { %3009 = vperm.xlu0 %4649, %v6609_v10   ;;  %3639 = vperm.xlu1 %4636, %v3376_v2  }
 0x884   : > { %v6674_v1 = vpop.trf.xlu1 }
 0x886   : > { %v6681_v14 = vpop.trf.xlu0 }
 0x887   : > { %4650 = vset.pattern.permute.xlu0 %v7878_v43  ;;  %4637 = vset.pattern.permute.xlu1 %v7881_v51  ;;  %7984 = vst [vmem:[#allocation40_spill] sm:$0xff] %v6681_v14 }
 0x888   : > { %3683 = vperm.xlu1 %4637, %v3376_v2   ;;  %3555 = vperm.xlu0 %4650, %v6595_v61   ;;  %v6683_v27 = vpop.trf.xlu1 }
 0x88a   : > { %v6696_v52 = vpop.trf.xlu0 }
 0x88b   : > { %7985 = vst [vmem:[#allocation31_spill] sm:$0xff] %v6696_v52 }
 0x88c   : > { %4639 = vset.pattern.permute.xlu1 %v7880_v19  ;;  %4655 = vset.pattern.permute.xlu0 %v7880_v19  ;;  %v6698_v36 = vpop.trf.xlu1 }
 0x88d   : > { %2917 = vperm.xlu1 %4639, %v2698_v28   ;;  %3142 = vperm.xlu0 %4655, %v6627_v30   ;;  %7986 = vst [vmem:[#allocation37_spill] sm:$0xff] %v6698_v36 }
 0x88e   : > { %v6715_v29 = vpop.trf.xlu0 }
 0x890   : > { %v6717_v46 = vpop.trf.xlu1 }
 0x891   : > { %4640 = vset.pattern.permute.xlu1 %v7876_v35  ;;  %4657 = vset.pattern.permute.xlu0 %v7881_v51 }
 0x892   : > { %2961 = vperm.xlu1 %4640, %v2698_v28   ;;  %3296 = vperm.xlu0 %4657, %v6627_v30   ;;  %v6733_v2 = vpop.trf.xlu0 }
 0x893   : > { %7987 = vst [vmem:[#allocation48_spill] sm:$0xff] %v6733_v2 }
 0x896   : > { %4641 = vset.pattern.permute.xlu1 %v7881_v51  ;;  %4658 = vset.pattern.permute.xlu0 %v7878_v43  ;;  %v6764_v22 = vpop.trf.xlu0 }
 0x897   : > { %3005 = vperm.xlu1 %4641, %v2698_v28   ;;  %2878 = vperm.xlu0 %4658, %v6632_v44   ;;  %v6746_v28 = vld [vmem:[%s7732_s6 + $0x8] sm:$0xff]  ;;  %7989 = vst [vmem:[#allocation28_spill] sm:$0xff] %v6764_v22 }
 0x898   : > { %v2749_v8 = vmul.f32 %v6731_v6, %v6746_v28  ;;  %v2777_v21 = vmul.f32 %v6756_v47, %v6746_v28  ;;  %v2805_v33 = vmul.f32 %v6778_v60, %v6746_v28 }
 0x89a   : > { %v2758_v37 = vmul.f32 1.442695, %v2749_v8  ;;  %v2786_v23 = vmul.f32 1.442695, %v2777_v21  ;;  %v2748_v8 = vmul.f32 %v6731_v6, %v6709_v48 }
 0x89b   : > { %4642 = vset.pattern.permute.xlu1 %v7878_v43  ;;  %4660 = vset.pattern.permute.xlu0 %v7876_v35 }
 0x89c   : > { %3550 = vperm.xlu1 %4642, %v6591_v50   ;;  %2969 = vperm.xlu0 %4660, %v6632_v44   ;;  %v2756_v38 = vmul.f32 1.442695, %v2748_v8  ;;  %v2776_v8 = vmul.f32 %v6756_v47, %v6709_v48 }
 0x8a0   : > { %4643 = vset.pattern.permute.xlu1 %v7880_v19  ;;  %4666 = vset.pattern.permute.xlu0 %v7878_v43 }
 0x8a1   : > { %3599 = vperm.xlu1 %4643, %v6591_v50   ;;  %3560 = vperm.xlu0 %4666, %v6599_v63  }
 0x8a5   : > { %4644 = vset.pattern.permute.xlu1 %v7876_v35  ;;  %4667 = vset.pattern.permute.xlu0 %v7880_v19 }
 0x8a6   : > { %3643 = vperm.xlu1 %4644, %v6591_v50   ;;  %3607 = vperm.xlu0 %4667, %v6599_v63  }
 0x8aa   : > { %4645 = vset.pattern.permute.xlu1 %v7881_v51  ;;  %4668 = vset.pattern.permute.xlu0 %v7876_v35 }
 0x8ab   : > { %3687 = vperm.xlu1 %4645, %v6591_v50   ;;  %3651 = vperm.xlu0 %4668, %v6599_v63   ;;  %v6735_v50 = vpop.trf.xlu1 }
 0x8af   : > { %4646 = vset.pattern.permute.xlu1 %v7878_v43  ;;  %4669 = vset.pattern.permute.xlu0 %v7878_v43 }
 0x8b0   : > { %2873 = vperm.xlu1 %4646, %v6609_v10   ;;  %3063 = vperm.xlu0 %4669, %v6666_v59  }
 0x8b4   : > { %4648 = vset.pattern.permute.xlu1 %v7876_v35  ;;  %4671 = vset.pattern.permute.xlu0 %v7876_v35 }
 0x8b5   : > { %2965 = vperm.xlu1 %4648, %v6609_v10   ;;  %3223 = vperm.xlu0 %4671, %v6666_v59   ;;  %v3466_v10 = vmul.f32 1.442695, %v3458_v45  ;;  %v6796_v45 = vrot.slane %v6692_v12, %v7979_v0 }
 0x8b7   : > { %4939 = vpow2.f32 %v3466_v10  ;;  %v6802_v10 = vrot.slane %v6782_v49, %v7980_v5  ;;  %v2814_v5 = vmul.f32 1.442695, %v2805_v33 }
 0x8b8   : > { %4941 = vpow2.f32 %v2758_v37 }
 0x8b9   : > { %4651 = vset.pattern.permute.xlu1 %v7880_v19  ;;  %4672 = vset.pattern.permute.xlu0 %v7881_v51 }
 0x8ba   : > { %3603 = vperm.xlu1 %4651, %v6595_v61   ;;  %3300 = vperm.xlu0 %4672, %v6666_v59  }
 0x8be   : > { %4652 = vset.pattern.permute.xlu1 %v7876_v35  ;;  %4674 = vset.pattern.permute.xlu0 %v7880_v19 }
 0x8bf   : > { %3647 = vperm.xlu1 %4652, %v6595_v61   ;;  %2929 = vperm.xlu0 %4674, %v6637_v39  }
 0x8c3   : > { %4653 = vset.pattern.permute.xlu1 %v7881_v51  ;;  %4676 = vset.pattern.permute.xlu0 %v7881_v51 }
 0x8c4   : > { %3691 = vperm.xlu1 %4653, %v6595_v61   ;;  %3017 = vperm.xlu0 %4676, %v6637_v39   ;;  %v6741_v61 = vrot.slane %v6692_v12, %v7972_v20  ;;  %v3722_v12 = vmul.f32 0.0, %v4938_v53 }
 0x8c6   : > { %v3486_v13 = vmul.f32 %v6741_v61, %v6709_v48 }
 0x8c8   : > { %4654 = vset.pattern.permute.xlu1 %v7878_v43  ;;  %4677 = vset.pattern.permute.xlu0 %v7878_v43  ;;  %v3494_v7 = vmul.f32 1.442695, %v3486_v13 }
 0x8c9   : > { %3058 = vperm.xlu1 %4654, %v6627_v30   ;;  %3745 = vperm.xlu0 %4677, %v6664_v41  }
 0x8ca   : > { %4943 = vpow2.f32 %v3494_v7 }
 0x8cb   : > { %4945 = vpow2.f32 %v2786_v23  ;;  %v2833_v23 = vmul.f32 %v6796_v45, %v6746_v28 }
 0x8cc   : > { %4947 = vpow2.f32 %v3522_v55 }
 0x8cd   : > { %4656 = vset.pattern.permute.xlu1 %v7876_v35  ;;  %4678 = vset.pattern.permute.xlu0 %v7880_v19  ;;  %4949 = vpow2.f32 %v2814_v5  ;;  %v2842_v15 = vmul.f32 1.442695, %v2833_v23  ;;  %v6846_v5 = vrot.slane %v6782_v49, %v7972_v20 }
 0x8ce   : > { %3219 = vperm.xlu1 %4656, %v6627_v30   ;;  %3828 = vperm.xlu0 %4678, %v6664_v41   ;;  %v6766_v30 = vpop.trf.xlu1  ;;  %4951 = vpow2.f32 %v2756_v38 }
 0x8cf   : > { %7990 = vst [vmem:[#allocation18_spill] sm:$0xff] %v6766_v30 }
 0x8d2   : > { %4659 = vset.pattern.permute.xlu1 %v7880_v19  ;;  %4679 = vset.pattern.permute.xlu0 %v7876_v35 }
 0x8d3   : > { %2925 = vperm.xlu1 %4659, %v6632_v44   ;;  %3905 = vperm.xlu0 %4679, %v6664_v41  }
 0x8d6   : > { %v6784_v58 = vpop.permute.xlu0 %2858  ;;  %v6786_v62 = vpop.permute.xlu1 %2953 }
 0x8d7   : > { %4661 = vset.pattern.permute.xlu1 %v7881_v51  ;;  %4681 = vset.pattern.permute.xlu0 %v7878_v43 }
 0x8d8   : > { %3013 = vperm.xlu1 %4661, %v6632_v44   ;;  %3565 = vperm.xlu0 %4681, %v6605_v34   ;;  %v6807_v44 = vld [vmem:[%s7732_s6 + $0x10] sm:$0xff] }
 0x8d9   : > { %v2750_v7 = vmul.f32 %v6731_v6, %v6807_v44 }
 0x8db   : > { %v6809_v13 = vpop.permute.xlu0 %2909  ;;  %v3541_v37 = vpop.permute.xlu1 %3540 }
 0x8dc   : > { %v3582_v21 = vmul.f32 %v6802_v10, %v3541_v37  ;;  %4662 = vset.pattern.permute.xlu1 %v7878_v43  ;;  %4682 = vset.pattern.permute.xlu0 %v7880_v19  ;;  %v4940_v37 = vpop.eup %4939 }
 0x8dd   : > { %3740 = vperm.xlu1 %4662, %v6658_v32   ;;  %3611 = vperm.xlu0 %4682, %v6605_v34  }
 0x8de   : > { %v6820_v25 = vadd.f32 %v3722_v12, %v3582_v21  ;;  %v2760_v21 = vmul.f32 1.442695, %v2750_v7  ;;  %v4942_v12 = vpop.eup %4941 }
 0x8df   : > { %v3041_v4 = vmul.f32 0.0, %v4942_v12 }
 0x8e0   : > { %7991 = vst [vmem:[#allocation34_spill] sm:$0xff] %v6820_v25  ;;  %v6826_v55 = vpop.permute.xlu0 %2997  ;;  %v3592_v53 = vpop.permute.xlu1 %3591  ;;  %v3807_v18 = vmul.f32 %v4940_v37, %v6820_v25  ;;  %v2778_v37 = vmul.f32 %v6756_v47, %v6807_v44  ;;  %v2784_v25 = vmul.f32 1.442695, %v2776_v8  ;;  %4953 = vpow2.f32 %v2760_v21 }
 0x8e1   : > { %v3626_v33 = vmul.f32 %v6824_v31, %v3592_v53  ;;  %4663 = vset.pattern.permute.xlu1 %v7880_v19  ;;  %4683 = vset.pattern.permute.xlu0 %v7876_v35  ;;  %v4944_v53 = vpop.eup %4943  ;;  %4955 = vpow2.f32 %v2842_v15  ;;  %v6870_v15 = vld [vmem:[%s7732_s6 + $0x18] sm:$0xff] }
 0x8e2   : > { %3824 = vperm.xlu1 %4663, %v6658_v32   ;;  %3655 = vperm.xlu0 %4683, %v6605_v34   ;;  %v2788_v20 = vmul.f32 1.442695, %v2778_v37  ;;  %v4946_v22 = vpop.eup %4945  ;;  %4957 = vpow2.f32 %v2784_v25  ;;  %v2804_v37 = vmul.f32 %v6778_v60, %v6709_v48  ;;  %v3433_v25 = vmul.f32 %v6704_v11, %v6870_v15 }
 0x8e3   : > { %v6836_v42 = vadd.f32 %v3807_v18, %v3626_v33  ;;  %v4948_v21 = vpop.eup %4947 }
 0x8e4   : > { %4959 = vpow2.f32 %v2788_v20 }
 0x8e5   : > { %7992 = vst [vmem:[#allocation58_spill] sm:$0xff] %v6836_v42  ;;  %v3636_v7 = vpop.permute.xlu0 %3635  ;;  %v2864_v38 = vpop.permute.xlu1 %2863  ;;  %v3884_v23 = vmul.f32 %v4944_v53, %v6836_v42  ;;  %v2900_v42 = vmul.f32 %v6842_v9, %v6784_v58 }
 0x8e6   : > { %v3670_v18 = vmul.f32 %v6846_v5, %v3636_v7  ;;  %v2901_v33 = vmul.f32 %v6842_v9, %v2864_v38  ;;  %4664 = vset.pattern.permute.xlu1 %v7876_v35  ;;  %4684 = vset.pattern.permute.xlu0 %v7881_v51  ;;  %v6861_v7 = vrot.slane %v6782_v49, %v7975_v56 }
 0x8e7   : > { %3901 = vperm.xlu1 %4664, %v6658_v32   ;;  %3699 = vperm.xlu0 %4684, %v6605_v34   ;;  %v6865_v38 = vrot.slane %v6782_v49, %v7988_v54 }
 0x8e8   : > { %v6855_v8 = vadd.f32 %v3041_v4, %v2901_v33  ;;  %v6857_v53 = vadd.f32 %v3884_v23, %v3670_v18  ;;  %v4950_v4 = vpop.eup %4949 }
 0x8ea   : > { %7993 = vst [vmem:[#allocation36_spill] sm:$0xff] %v6857_v53  ;;  %v3680_v34 = vpop.permute.xlu0 %3679  ;;  %v2914_v12 = vpop.permute.xlu1 %2913  ;;  %v3126_v23 = vmul.f32 %v4946_v22, %v6855_v8  ;;  %v3961_v56 = vmul.f32 %v4948_v21, %v6857_v53  ;;  %v6890_v21 = vrot.slane %v6782_v49, %v7977_v24  ;;  %v6900_v24 = vrot.slane %v6782_v49, %v7979_v0 }
 0x8eb   : > { %v3714_v18 = vmul.f32 %v6865_v38, %v3680_v34  ;;  %v2945_v54 = vmul.f32 %v6861_v7, %v2914_v12  ;;  %4665 = vset.pattern.permute.xlu1 %v7881_v51  ;;  %4689 = vset.pattern.permute.xlu0 %v7878_v43  ;;  %v2812_v34 = vmul.f32 1.442695, %v2804_v37  ;;  %v4952_v12 = vpop.eup %4951  ;;  %v2832_v37 = vmul.f32 %v6796_v45, %v6709_v48 }
 0x8ec   : > { %3978 = vperm.xlu1 %4665, %v6658_v32   ;;  %2888 = vperm.xlu0 %4689, %v6642_v57  }
 0x8ed   : > { %v6884_v33 = vadd.f32 %v3126_v23, %v2945_v54  ;;  %v6886_v22 = vadd.f32 %v3961_v56, %v3714_v18  ;;  %v3444_v23 = vmul.f32 1.442695, %v3433_v25  ;;  %v4954_v56 = vpop.eup %4953  ;;  %v3040_v18 = vmul.f32 0.0, %v4952_v12 }
 0x8ee   : > { %4961 = vpow2.f32 %v2812_v34  ;;  %v3042_v34 = vmul.f32 0.0, %v4954_v56 }
 0x8ef   : > { %7994 = vst [vmem:[#allocation56_spill] sm:$0xff] %v6884_v33  ;;  %7995 = vst [vmem:[#allocation24_spill] sm:$0xff] %v6886_v22  ;;  %v2958_v53 = vpop.permute.xlu0 %2957  ;;  %v3002_v20 = vpop.permute.xlu1 %3001  ;;  %v3203_v32 = vmul.f32 %v4950_v4, %v6884_v33  ;;  %v6909_v54 = vadd.f32 %v3040_v18, %v2900_v42  ;;  %4963 = vpow2.f32 %v3444_v23  ;;  %v2806_v18 = vmul.f32 %v6778_v60, %v6807_v44 }
 0x8f0   : > { %v2989_v30 = vmul.f32 %v6890_v21, %v2958_v53  ;;  %3695 = vperm.xlu1 %4665, %v6599_v63   ;;  %4691 = vset.pattern.permute.xlu0 %v7876_v35  ;;  %v3461_v63 = vmul.f32 %v6723_v16, %v6870_v15  ;;  %v4956_v53 = vpop.eup %4955  ;;  %v3033_v25 = vmul.f32 %v6900_v24, %v3002_v20 }
 0x8f1   : > { %2977 = vperm.xlu0 %4691, %v6642_v57   ;;  %v4958_v20 = vpop.eup %4957  ;;  %v2988_v33 = vmul.f32 %v6890_v21, %v6786_v62 }
 0x8f2   : > { %v6905_v58 = vadd.f32 %v3203_v32, %v2989_v30  ;;  %v2840_v30 = vmul.f32 1.442695, %v2832_v37  ;;  %v3472_v12 = vmul.f32 1.442695, %v3461_v63  ;;  %v4960_v23 = vpop.eup %4959  ;;  %v6932_v37 = vld [vmem:[%s7732_s6 + $0x20] sm:$0xff] }
 0x8f3   : > { %v3434_v62 = vmul.f32 %v6704_v11, %v6932_v37 }
 0x8f4   : > { %v2869_v0 = vpop.permute.xlu0 %2868  ;;  %4670 = vset.pattern.permute.xlu1 %v7880_v19  ;;  %v6913_v49 = vpop.permute.xlu1 %3545  ;;  %v3280_v48 = vmul.f32 %v4956_v53, %v6905_v58  ;;  %v2944_v53 = vmul.f32 %v6861_v7, %v6809_v13  ;;  %4965 = vpow2.f32 %v2840_v30  ;;  %v2816_v13 = vmul.f32 1.442695, %v2806_v18 }
 0x8f5   : > { %v2902_v4 = vmul.f32 %v6842_v9, %v2869_v0  ;;  %3146 = vperm.xlu1 %4670, %v6666_v59   ;;  %4694 = vset.pattern.permute.xlu0 %v7880_v19  ;;  %v3125_v59 = vmul.f32 %v4958_v20, %v6909_v54  ;;  %4967 = vpow2.f32 %v3472_v12  ;;  %v2834_v30 = vmul.f32 %v6796_v45, %v6807_v44 }
 0x8f6   : > { %3832 = vperm.xlu0 %4694, %v6672_v3   ;;  %v6920_v42 = vadd.f32 %v3280_v48, %v3033_v25  ;;  %v2752_v48 = vmul.f32 %v6731_v6, %v6932_v37  ;;  %4969 = vpow2.f32 %v2816_v13 }
 0x8f7   : > { %v6922_v32 = vadd.f32 %v3042_v34, %v2902_v4  ;;  %v3133_v4 = vadd.f32 %v3125_v59, %v2944_v53  ;;  %v2844_v53 = vmul.f32 1.442695, %v2834_v30 }
 0x8f8   : > { %v2764_v12 = vmul.f32 1.442695, %v2752_v48 }
 0x8f9   : > { %7996 = vst [vmem:[#allocation52_spill] sm:$0xff] %v6922_v32  ;;  %v2922_v56 = vpop.permute.xlu0 %2921  ;;  %4673 = vset.pattern.permute.xlu1 %v7878_v43  ;;  %v6935_v63 = vpop.permute.xlu1 %3595  ;;  %v3127_v25 = vmul.f32 %v4960_v23, %v6922_v32  ;;  %v2780_v32 = vmul.f32 %v6756_v47, %v6932_v37 }
 0x8fa   : > { %v6939_v0 = vmul.f32 %v6861_v7, %v2922_v56  ;;  %2883 = vperm.xlu1 %4673, %v6637_v39   ;;  %4696 = vset.pattern.permute.xlu0 %v7881_v51  ;;  %4971 = vpow2.f32 %v2764_v12 }
 0x8fb   : > { %3986 = vperm.xlu0 %4696, %v6672_v3   ;;  %v4962_v23 = vpop.eup %4961  ;;  %4973 = vpow2.f32 %v2844_v53  ;;  %v2792_v30 = vmul.f32 1.442695, %v2780_v32  ;;  %v3446_v32 = vmul.f32 1.442695, %v3434_v62 }
 0x8fc   : > { %v3202_v18 = vmul.f32 %v4962_v23, %v3133_v4  ;;  %v4964_v59 = vpop.eup %4963 }
 0x8fd   : > { %v3725_v48 = vmul.f32 0.0, %v4964_v59  ;;  %4975 = vpow2.f32 %v2792_v30  ;;  %v3032_v59 = vmul.f32 %v6900_v24, %v6826_v55 }
 0x8fe   : > { %v3010_v34 = vpop.permute.xlu0 %3009  ;;  %4675 = vset.pattern.permute.xlu1 %v7876_v35  ;;  %v6949_v20 = vpop.permute.xlu1 %3639  ;;  %v6967_v13 = vadd.f32 %v3202_v18, %v2988_v33  ;;  %4977 = vpow2.f32 %v3446_v32 }
 0x8ff   : > { %v6952_v56 = vmul.f32 %v6900_v24, %v3010_v34  ;;  %2973 = vperm.xlu1 %4675, %v6637_v39   ;;  %4699 = vset.pattern.permute.xlu0 %v7876_v35 }
 0x900   : > { %3659 = vperm.xlu0 %4699, %v6616_v26  }
 0x901   : > { %v4966_v23 = vpop.eup %4965 }
 0x902   : > { %v4968_v12 = vpop.eup %4967 }
 0x903   : > { %v3556_v22 = vpop.permute.xlu0 %3555  ;;  %4680 = vset.pattern.permute.xlu1 %v7881_v51  ;;  %v6962_v34 = vpop.permute.xlu1 %3683 }
 0x904   : > { %7997 = vst [vmem:[#allocation53_spill] sm:$0xff] %v6962_v34  ;;  %v3585_v39 = vmul.f32 %v6802_v10, %v3556_v22  ;;  %3982 = vperm.xlu1 %4680, %v6664_v41   ;;  %4702 = vset.pattern.permute.xlu0 %v7880_v19  ;;  %v3279_v22 = vmul.f32 %v4966_v23, %v6967_v13  ;;  %v4970_v23 = vpop.eup %4969 }
 0x905   : > { %3154 = vperm.xlu0 %4702, %v6683_v27  }
 0x906   : > { %v6972_v2 = vadd.f32 %v3725_v48, %v3585_v39  ;;  %v3462_v39 = vmul.f32 %v6723_v16, %v6932_v37 }
 0x908   : > { %7998 = vst [vmem:[#allocation14_spill] sm:$0xff] %v6972_v2  ;;  %v3143_v34 = vpop.permute.xlu0 %3142  ;;  %4685 = vset.pattern.permute.xlu1 %v7878_v43  ;;  %v2918_v41 = vpop.permute.xlu1 %2917  ;;  %v6977_v33 = vmul.f32 %v4968_v12, %v6972_v2  ;;  %v3287_v12 = vadd.f32 %v3279_v22, %v3032_v59 }
 0x909   : > { %v6979_v18 = vmul.f32 %v3143_v34, %v3133_v4  ;;  %v2946_v53 = vmul.f32 %v6861_v7, %v2918_v41  ;;  %3068 = vperm.xlu1 %4685, %v6674_v1   ;;  %2937 = vperm.xlu0 %4702, %v6650_v17   ;;  %v4972_v41 = vpop.eup %4971 }
 0x90a   : > { %v4974_v59 = vpop.eup %4973 }
 0x90b   : > { %7999 = vst [vmem:[#allocation41_spill] sm:$0xff] %v6979_v18  ;;  %v6988_v48 = vadd.f32 %v3127_v25, %v2946_v53  ;;  %v3474_v25 = vmul.f32 1.442695, %v3462_v39  ;;  %v3490_v53 = vmul.f32 %v6741_v61, %v6932_v37  ;;  %v3044_v39 = vmul.f32 0.0, %v4972_v41 }
 0x90d   : > { %8000 = vst [vmem:[#allocation20_spill] sm:$0xff] %v6988_v48  ;;  %v3297_v4 = vpop.permute.xlu0 %3296  ;;  %4686 = vset.pattern.permute.xlu1 %v7880_v19  ;;  %4707 = vset.pattern.permute.xlu0 %v7881_v51  ;;  %v2962_v34 = vpop.permute.xlu1 %2961  ;;  %v3204_v62 = vmul.f32 %v4970_v23, %v6988_v48  ;;  %4979 = vpow2.f32 %v3474_v25 }
 0x90e   : > { %v6993_v30 = vmul.f32 %v3297_v4, %v3287_v12  ;;  %v2990_v55 = vmul.f32 %v6890_v21, %v2962_v34  ;;  %3150 = vperm.xlu1 %4686, %v6674_v1   ;;  %3025 = vperm.xlu0 %4707, %v6650_v17   ;;  %v2751_v34 = vmul.f32 %v6731_v6, %v6870_v15 }
 0x910   : > { %v6998_v22 = vadd.f32 %v3204_v62, %v2990_v55  ;;  %v3502_v62 = vmul.f32 1.442695, %v3490_v53  ;;  %v2762_v53 = vmul.f32 1.442695, %v2751_v34 }
 0x912   : > { %8001 = vst [vmem:[#allocation47_spill] sm:$0xff] %v6998_v22  ;;  %v2879_v2 = vpop.permute.xlu0 %2878  ;;  %4687 = vset.pattern.permute.xlu1 %v7876_v35  ;;  %4708 = vset.pattern.permute.xlu0 %v7878_v43  ;;  %v3006_v32 = vpop.permute.xlu1 %3005  ;;  %v3281_v23 = vmul.f32 %v4974_v59, %v6998_v22  ;;  %v3518_v59 = vmul.f32 %v6762_v40, %v6932_v37  ;;  %4981 = vpow2.f32 %v3502_v62 }
 0x913   : > { %v2904_v12 = vmul.f32 %v6842_v9, %v2879_v2  ;;  %v3034_v4 = vmul.f32 %v6900_v24, %v3006_v32  ;;  %3227 = vperm.xlu1 %4687, %v6674_v1   ;;  %3755 = vperm.xlu0 %4708, %v6681_v14   ;;  %v4976_v2 = vpop.eup %4975  ;;  %4983 = vpow2.f32 %v2762_v53  ;;  %v2807_v62 = vmul.f32 %v6778_v60, %v6870_v15 }
 0x915   : > { %v7011_v55 = vadd.f32 %v3281_v23, %v3034_v4  ;;  %v7013_v48 = vadd.f32 %v3044_v39, %v2904_v12  ;;  %v3530_v23 = vmul.f32 1.442695, %v3518_v59  ;;  %v4978_v12 = vpop.eup %4977  ;;  %v2779_v4 = vmul.f32 %v6756_v47, %v6870_v15 }
 0x917   : > { %8002 = vst [vmem:[#allocation42_spill] sm:$0xff] %v7011_v55  ;;  %8003 = vst [vmem:[#allocation49_spill] sm:$0xff] %v7013_v48  ;;  %v2970_v22 = vpop.permute.xlu0 %2969  ;;  %4688 = vset.pattern.permute.xlu1 %v7881_v51  ;;  %4711 = vset.pattern.permute.xlu0 %v7881_v51  ;;  %v7019_v32 = vpop.permute.xlu1 %3550  ;;  %v7022_v25 = vmul.f32 %v4976_v2, %v7013_v48  ;;  %4985 = vpow2.f32 %v3530_v23  ;;  %v2790_v34 = vmul.f32 1.442695, %v2779_v4  ;;  %v2818_v23 = vmul.f32 1.442695, %v2807_v62 }
 0x918   : > { %v7025_v41 = vmul.f32 %v6890_v21, %v2970_v22  ;;  %3304 = vperm.xlu1 %4688, %v6674_v1   ;;  %3990 = vperm.xlu0 %4711, %v6681_v14   ;;  %v3726_v22 = vmul.f32 0.0, %v4978_v12  ;;  %v2835_v4 = vmul.f32 %v6796_v45, %v6870_v15 }
 0x919   : > { %4987 = vpow2.f32 %v2790_v34 }
 0x91a   : > { %v4980_v48 = vpop.eup %4979  ;;  %4989 = vpow2.f32 %v2818_v23  ;;  %v2846_v34 = vmul.f32 1.442695, %v2835_v4  ;;  %v3459_v23 = vmul.f32 %v6723_v16, %v6746_v28 }
 0x91c   : > { %v3561_v39 = vpop.permute.xlu0 %3560  ;;  %4690 = vset.pattern.permute.xlu1 %v7880_v19  ;;  %4716 = vset.pattern.permute.xlu0 %v7878_v43  ;;  %v7033_v2 = vpop.permute.xlu1 %3599  ;;  %4991 = vpow2.f32 %v2846_v34 }
 0x91d   : > { %8004 = vst [vmem:[#allocation43_spill] sm:$0xff] %v7033_v2  ;;  %v3586_v1 = vmul.f32 %v6802_v10, %v3561_v39  ;;  %2933 = vperm.xlu1 %4690, %v6642_v57   ;;  %3078 = vperm.xlu0 %4716, %v6698_v36  }
 0x91f   : > { %v7040_v59 = vadd.f32 %v3726_v22, %v3586_v1  ;;  %v3489_v22 = vmul.f32 %v6741_v61, %v6870_v15  ;;  %v4982_v1 = vpop.eup %4981 }
 0x921   : > { %8005 = vst [vmem:[#allocation15_spill] sm:$0xff] %v7040_v59  ;;  %v3811_v55 = vmul.f32 %v4980_v48, %v7040_v59  ;;  %v3608_v18 = vpop.permute.xlu0 %3607  ;;  %4692 = vset.pattern.permute.xlu1 %v7881_v51  ;;  %4718 = vset.pattern.permute.xlu0 %v7876_v35  ;;  %v7045_v53 = vpop.permute.xlu1 %3643  ;;  %v3431_v48 = vmul.f32 %v6704_v11, %v6746_v28 }
 0x922   : > { %8006 = vst [vmem:[#allocation50_spill] sm:$0xff] %v7045_v53  ;;  %v3630_v12 = vmul.f32 %v6824_v31, %v3608_v18  ;;  %3021 = vperm.xlu1 %4692, %v6642_v57   ;;  %3235 = vperm.xlu0 %4718, %v6698_v36   ;;  %v4984_v36 = vpop.eup %4983  ;;  %v3517_v53 = vmul.f32 %v6762_v40, %v6870_v15 }
 0x924   : > { %v7054_v39 = vadd.f32 %v3811_v55, %v3630_v12  ;;  %v3440_v55 = vmul.f32 1.442695, %v3431_v48  ;;  %v3500_v12 = vmul.f32 1.442695, %v3489_v22  ;;  %v4986_v14 = vpop.eup %4985  ;;  %v3043_v48 = vmul.f32 0.0, %v4984_v36 }
 0x926   : > { %8007 = vst [vmem:[#allocation44_spill] sm:$0xff] %v7054_v39  ;;  %v3652_v59 = vpop.permute.xlu0 %3651  ;;  %4693 = vset.pattern.permute.xlu1 %v7878_v43  ;;  %3917 = vperm.xlu0 %4718, %v6696_v52   ;;  %v7060_v57 = vpop.permute.xlu1 %3687  ;;  %v3888_v18 = vmul.f32 %v4982_v1, %v7054_v39  ;;  %4993 = vpow2.f32 %v3440_v55  ;;  %v3528_v1 = vmul.f32 1.442695, %v3517_v53  ;;  %v3487_v53 = vmul.f32 %v6741_v61, %v6746_v28 }
 0x927   : > { %v3674_v62 = vmul.f32 %v6846_v5, %v3652_v59  ;;  %3750 = vperm.xlu1 %4693, %v6672_v3   ;;  %4995 = vpow2.f32 %v3500_v12  ;;  %v4988_v34 = vpop.eup %4987 }
 0x928   : > { %4997 = vpow2.f32 %v3528_v1  ;;  %v3496_v1 = vmul.f32 1.442695, %v3487_v53  ;;  %v7122_v53 = vld [vmem:[%s7732_s6 + $0x28] sm:$0xff] }
 0x929   : > { %v7067_v2 = vadd.f32 %v3888_v18, %v3674_v62  ;;  %v3468_v62 = vmul.f32 1.442695, %v3459_v23 }
 0x92a   : > { %4724 = vset.pattern.permute.xlu0 %v7880_v19 }
 0x92b   : > { %8008 = vst [vmem:[#allocation22_spill] sm:$0xff] %v7067_v2  ;;  %v3064_v52 = vpop.permute.xlu0 %3063  ;;  %4695 = vset.pattern.permute.xlu1 %v7876_v35  ;;  %3162 = vperm.xlu0 %4724, %v6717_v46   ;;  %v2874_v59 = vpop.permute.xlu1 %2873  ;;  %v7075_v4 = vmul.f32 %v4986_v14, %v7067_v2  ;;  %4999 = vpow2.f32 %v3468_v62  ;;  %v3335_v62 = vsel %vm590_vm5, %v6993_v30, 0.0 }
 0x92c   : > { %v7078_v15 = vmul.f32 %v3064_v52, %v6855_v8  ;;  %v2903_v22 = vmul.f32 %v6842_v9, %v2874_v59  ;;  %3909 = vperm.xlu1 %4695, %v6672_v3   ;;  %v4990_v8 = vpop.eup %4989  ;;  %5001 = vpow2.f32 %v3496_v1 }
 0x92d   : > { %v4992_v28 = vpop.eup %4991 }
 0x92e   : > { %v7082_v18 = vadd.f32 %v3043_v48, %v2903_v22 }
 0x92f   : > { %4726 = vset.pattern.permute.xlu0 %v7881_v51 }
 0x930   : > { %v3224_v55 = vpop.permute.xlu0 %3223  ;;  %4697 = vset.pattern.permute.xlu1 %v7878_v43  ;;  %3316 = vperm.xlu0 %4726, %v6717_v46   ;;  %v2966_v14 = vpop.permute.xlu1 %2965  ;;  %v3128_v52 = vmul.f32 %v4988_v34, %v7082_v18 }
 0x931   : > { %v7089_v36 = vmul.f32 %v3224_v55, %v6905_v58  ;;  %3570 = vperm.xlu1 %4697, %v6616_v26   ;;  %v2991_v12 = vmul.f32 %v6890_v21, %v2966_v14 }
 0x932   : > { %v7093_v3 = vadd.f32 %v3128_v52, %v6939_v0 }
 0x933   : > { %v4994_v34 = vpop.eup %4993 }
 0x934   : > { %4728 = vset.pattern.permute.xlu0 %v7880_v19  ;;  %v3205_v59 = vmul.f32 %v4990_v8, %v7093_v3  ;;  %v3583_v8 = vmul.f32 %v6802_v10, %v6913_v49 }
 0x935   : > { %v3301_v23 = vpop.permute.xlu0 %3300  ;;  %4698 = vset.pattern.permute.xlu1 %v7880_v19  ;;  %3844 = vperm.xlu0 %4728, %v6715_v29   ;;  %v3604_v58 = vpop.permute.xlu1 %3603 }
 0x936   : > { %v3328_v0 = vmul.f32 %v3301_v23, %v6920_v42  ;;  %v3629_v48 = vmul.f32 %v6824_v31, %v3604_v58  ;;  %3615 = vperm.xlu1 %4698, %v6616_v26   ;;  %v7105_v22 = vadd.f32 %v3205_v59, %v2991_v12  ;;  %v4996_v42 = vpop.eup %4995 }
 0x938   : > { %8009 = vst [vmem:[#allocation16_spill] sm:$0xff] %v7105_v22  ;;  %v3336_v55 = vsel %vm590_vm5, %v3328_v0, 0.0  ;;  %v7111_v14 = vadd.f32 %v6977_v33, %v3629_v48  ;;  %v3282_v52 = vmul.f32 %v4992_v28, %v7105_v22  ;;  %v3723_v0 = vmul.f32 0.0, %v4994_v34 }
 0x939   : > { %v7116_v23 = vadd.f32 %v3336_v55, %v3335_v62  ;;  %4729 = vset.pattern.permute.xlu0 %v7876_v35  ;;  %v3435_v48 = vmul.f32 %v6704_v11, %v7122_v53  ;;  %v2808_v55 = vmul.f32 %v6778_v60, %v6932_v37  ;;  %v3516_v22 = vmul.f32 %v6762_v40, %v6807_v44 }
 0x93a   : > { %8010 = vst [vmem:[#allocation23_spill] sm:$0xff] %v7111_v14  ;;  %v2930_v30 = vpop.permute.xlu0 %2929  ;;  %4700 = vset.pattern.permute.xlu1 %v7881_v51  ;;  %3921 = vperm.xlu0 %4729, %v6715_v29   ;;  %v3648_v33 = vpop.permute.xlu1 %3647  ;;  %v3887_v12 = vmul.f32 %v4996_v42, %v7111_v14  ;;  %v7128_v59 = vadd.f32 %v3282_v52, %v6952_v56 }
 0x93b   : > { %v7131_v49 = vmul.f32 %v6861_v7, %v2930_v30  ;;  %v3673_v58 = vmul.f32 %v6846_v5, %v3648_v33  ;;  %3703 = vperm.xlu1 %4700, %v6616_v26   ;;  %v3731_v28 = vadd.f32 %v3723_v0, %v3583_v8  ;;  %v4998_v56 = vpop.eup %4997  ;;  %v3432_v52 = vmul.f32 %v6704_v11, %v6807_v44 }
 0x93c   : > { %8011 = vst [vmem:[#allocation17_spill] sm:$0xff] %v7128_v59  ;;  %v5000_v34 = vpop.eup %4999  ;;  %v3448_v33 = vmul.f32 1.442695, %v3435_v48  ;;  %v2820_v39 = vmul.f32 1.442695, %v2808_v55 }
 0x93d   : > { %v7137_v62 = vadd.f32 %v3887_v12, %v3673_v58  ;;  %v2836_v12 = vmul.f32 %v6796_v45, %v6932_v37  ;;  %v3627_v58 = vmul.f32 %v6824_v31, %v6935_v63  ;;  %v3808_v0 = vmul.f32 %v5000_v34, %v3731_v28  ;;  %v5002_v14 = vpop.eup %5001 }
 0x93e   : > { %4731 = vset.pattern.permute.xlu0 %v7878_v43  ;;  %5003 = vpow2.f32 %v3448_v33 }
 0x93f   : > { %8012 = vst [vmem:[#allocation25_spill] sm:$0xff] %v7137_v62  ;;  %v3018_v42 = vpop.permute.xlu0 %3017  ;;  %4701 = vset.pattern.permute.xlu1 %v7878_v43  ;;  %3088 = vperm.xlu0 %4731, %v6735_v50   ;;  %v3692_v26 = vpop.permute.xlu1 %3691  ;;  %v3964_v1 = vmul.f32 %v4998_v56, %v7137_v62  ;;  %v3463_v56 = vmul.f32 %v6723_v16, %v7122_v53  ;;  %v2848_v37 = vmul.f32 1.442695, %v2836_v12  ;;  %5005 = vpow2.f32 %v2820_v39  ;;  %v8013_v39 = vld [vmem:[#allocation48_spill] sm:$0xff] }
 0x940   : > { %v7148_v8 = vmul.f32 %v6900_v24, %v3018_v42  ;;  %v3717_v30 = vmul.f32 %v6865_v38, %v3692_v26  ;;  %3073 = vperm.xlu1 %4701, %v6683_v27   ;;  %v3442_v42 = vmul.f32 1.442695, %v3432_v52  ;;  %v3816_v55 = vadd.f32 %v3808_v0, %v3627_v58 }
 0x941   : > { %v3105_v52 = vsel %vm590_vm5, %v7078_v15, 0.0 }
 0x942   : > { %v7156_v2 = vadd.f32 %v3964_v1, %v3717_v30  ;;  %v3476_v1 = vmul.f32 1.442695, %v3463_v56  ;;  %v3491_v30 = vmul.f32 %v6741_v61, %v7122_v53  ;;  %5007 = vpow2.f32 %v3442_v42 }
 0x943   : > { %4733 = vset.pattern.permute.xlu0 %v7876_v35  ;;  %v3885_v12 = vmul.f32 %v5002_v14, %v3816_v55  ;;  %5009 = vpow2.f32 %v2848_v37  ;;  %v3460_v56 = vmul.f32 %v6723_v16, %v6807_v44  ;;  %v3519_v14 = vmul.f32 %v6762_v40, %v7122_v53 }
 0x944   : > { %v3746_v26 = vpop.permute.xlu0 %3745  ;;  %4703 = vset.pattern.permute.xlu1 %v7876_v35  ;;  %3243 = vperm.xlu0 %4733, %v6735_v50   ;;  %v3059_v48 = vpop.permute.xlu1 %3058  ;;  %5011 = vpow2.f32 %v3476_v1  ;;  %v3504_v42 = vmul.f32 1.442695, %v3491_v30 }
 0x945   : > { %v7163_v62 = vmul.f32 %v3746_v26, %v3731_v28  ;;  %v3096_v63 = vmul.f32 %v3059_v48, %v6909_v54  ;;  %3231 = vperm.xlu1 %4703, %v6683_v27   ;;  %v3671_v54 = vmul.f32 %v6846_v5, %v6949_v20  ;;  %v3259_v20 = vsel %vm590_vm5, %v7089_v36, 0.0 }
 0x946   : > { %v3470_v1 = vmul.f32 1.442695, %v3460_v56  ;;  %5013 = vpow2.f32 %v3504_v42  ;;  %v3488_v56 = vmul.f32 %v6741_v61, %v6807_v44 }
 0x947   : > { %v3104_v34 = vsel %vm590_vm5, %v3096_v63, 0.0 }
 0x948   : > { %v7172_v33 = vadd.f32 %v3105_v52, %v3104_v34  ;;  %4736 = vset.pattern.permute.xlu0 %v7880_v19  ;;  %v3532_v34 = vmul.f32 1.442695, %v3519_v14  ;;  %5015 = vpow2.f32 %v3470_v1 }
 0x949   : > { %v3829_v28 = vpop.permute.xlu0 %3828  ;;  %3848 = vperm.xlu0 %4736, %v8013_v39   ;;  %4704 = vset.pattern.permute.xlu1 %v7881_v51  ;;  %v3220_v15 = vpop.permute.xlu1 %3219 }
 0x94a   : > { %v7179_v58 = vmul.f32 %v3829_v28, %v3816_v55  ;;  %v3250_v0 = vmul.f32 %v3220_v15, %v6967_v13  ;;  %3308 = vperm.xlu1 %4704, %v6683_v27   ;;  %v7193_v13 = vadd.f32 %v3885_v12, %v3671_v54  ;;  %v7198_v27 = vld [vmem:[%s7732_s6 + $0x30] sm:$0xff]  ;;  %v8015_v12 = vld [vmem:[#allocation18_spill] sm:$0xff]  ;;  %5017 = vpow2.f32 %v3532_v34 }
 0x94b   : > { %v2754_v52 = vmul.f32 %v6731_v6, %v7198_v27  ;;  %v5004_v30 = vpop.eup %5003  ;;  %v2782_v1 = vmul.f32 %v6756_v47, %v7198_v27 }
 0x94c   : > { %v3258_v26 = vsel %vm590_vm5, %v3250_v0, 0.0  ;;  %v5006_v28 = vpop.eup %5005 }
 0x94d   : > { %v7190_v48 = vadd.f32 %v3259_v20, %v3258_v26  ;;  %4737 = vset.pattern.permute.xlu0 %v7876_v35  ;;  %v3727_v20 = vmul.f32 0.0, %v5004_v30  ;;  %v3498_v30 = vmul.f32 1.442695, %v3488_v56 }
 0x94e   : > { %v3906_v37 = vpop.permute.xlu0 %3905  ;;  %3925 = vperm.xlu0 %4737, %v8013_v39   ;;  %4705 = vset.pattern.permute.xlu1 %v7878_v43  ;;  %v2926_v36 = vpop.permute.xlu1 %2925 }
 0x94f   : > { %v7203_v63 = vmul.f32 %v3906_v37, %v7193_v13  ;;  %v2948_v55 = vmul.f32 %v6861_v7, %v2926_v36  ;;  %2893 = vperm.xlu1 %4705, %v6650_v17   ;;  %v5008_v14 = vpop.eup %5007 }
 0x950   : > { %v5010_v36 = vpop.eup %5009 }
 0x951   : > { %v7210_v54 = vadd.f32 %v7022_v25, %v2948_v55  ;;  %v2768_v25 = vmul.f32 1.442695, %v2754_v52  ;;  %v5012_v59 = vpop.eup %5011 }
 0x952   : > { %4740 = vset.pattern.permute.xlu0 %v7880_v19 }
 0x953   : > { %8014 = vst [vmem:[#allocation51_spill] sm:$0xff] %v7210_v54  ;;  %v3566_v15 = vpop.permute.xlu0 %3565  ;;  %3170 = vperm.xlu0 %4740, %v8015_v12   ;;  %4706 = vset.pattern.permute.xlu1 %v7876_v35  ;;  %v3014_v0 = vpop.permute.xlu1 %3013  ;;  %v3206_v42 = vmul.f32 %v5006_v28, %v7210_v54  ;;  %5019 = vpow2.f32 %v2768_v25  ;;  %v8020_v54 = vld [vmem:[#allocation40_spill] sm:$0xff]  ;;  %v2796_v25 = vmul.f32 1.442695, %v2782_v1 }
 0x954   : > { %v3587_v26 = vmul.f32 %v6802_v10, %v3566_v15  ;;  %2981 = vperm.xlu1 %4706, %v6650_v17   ;;  %v3036_v28 = vmul.f32 %v6900_v24, %v3014_v0  ;;  %v8019_v0 = vld [vmem:[#allocation34_spill] sm:$0xff]  ;;  %5021 = vpow2.f32 %v3498_v30  ;;  %v2753_v30 = vmul.f32 %v6731_v6, %v7122_v53 }
 0x955   : > { %v7221_v37 = vadd.f32 %v3206_v42, %v7025_v41  ;;  %v8018_v41 = vld [vmem:[#allocation28_spill] sm:$0xff]  ;;  %v3584_v42 = vmul.f32 %v6802_v10, %v7019_v32  ;;  %5023 = vpow2.f32 %v2796_v25 }
 0x956   : > { %v7223_v55 = vadd.f32 %v3727_v20, %v3587_v26  ;;  %v2766_v25 = vmul.f32 1.442695, %v2753_v30  ;;  %v3941_v30 = vsel %vm590_vm5, %v7203_v63, 0.0 }
 0x957   : > { %8016 = vst [vmem:[#allocation54_spill] sm:$0xff] %v7221_v37  ;;  %4745 = vset.pattern.permute.xlu0 %v7876_v35  ;;  %v3283_v17 = vmul.f32 %v5010_v36, %v7221_v37  ;;  %v3724_v36 = vmul.f32 0.0, %v5008_v14  ;;  %v8029_v37 = vld [vmem:[#allocation24_spill] sm:$0xff] }
 0x958   : > { %8017 = vst [vmem:[#allocation59_spill] sm:$0xff] %v7223_v55  ;;  %v3612_v52 = vpop.permute.xlu0 %3611  ;;  %4709 = vset.pattern.permute.xlu1 %v7880_v19  ;;  %v3741_v34 = vpop.permute.xlu1 %3740  ;;  %3929 = vperm.xlu0 %4745, %v8018_v41   ;;  %v3812_v15 = vmul.f32 %v5012_v59, %v7223_v55  ;;  %v3787_v41 = vsel %vm590_vm5, %v7163_v62, 0.0 }
 0x959   : > { %v3631_v20 = vmul.f32 %v6824_v31, %v3612_v52  ;;  %v3778_v26 = vmul.f32 %v3741_v34, %v8019_v0  ;;  %3836 = vperm.xlu1 %4709, %v8020_v54   ;;  %v7238_v56 = vadd.f32 %v3283_v17, %v3036_v28  ;;  %v5014_v52 = vpop.eup %5013  ;;  %v7250_v28 = vadd.f32 %v3724_v36, %v3584_v42  ;;  %v8023_v17 = vld [vmem:[#allocation58_spill] sm:$0xff]  ;;  %v8025_v36 = vld [vmem:[#allocation43_spill] sm:$0xff] }
 0x95a   : > { %v3864_v42 = vsel %vm590_vm5, %v7179_v58, 0.0 }
 0x95b   : > { %8021 = vst [vmem:[#allocation61_spill] sm:$0xff] %v7238_v56  ;;  %v3786_v59 = vsel %vm590_vm5, %v3778_v26, 0.0  ;;  %v7245_v32 = vadd.f32 %v3812_v15, %v3631_v20  ;;  %v5016_v15 = vpop.eup %5015 }
 0x95c   : > { %v7247_v55 = vadd.f32 %v3787_v41, %v3786_v59  ;;  %4747 = vset.pattern.permute.xlu0 %v7881_v51  ;;  %v3526_v41 = vmul.f32 1.442695, %v3516_v22  ;;  %v5018_v26 = vpop.eup %5017  ;;  %v3628_v59 = vmul.f32 %v6824_v31, %v8025_v36 }
 0x95d   : > { %8022 = vst [vmem:[#allocation55_spill] sm:$0xff] %v7245_v32  ;;  %v3656_v14 = vpop.permute.xlu0 %3655  ;;  %4710 = vset.pattern.permute.xlu1 %v7876_v35  ;;  %v3825_v44 = vpop.permute.xlu1 %3824  ;;  %v3889_v1 = vmul.f32 %v5014_v52, %v7245_v32 }
 0x95e   : > { %v3675_v62 = vmul.f32 %v6846_v5, %v3656_v14  ;;  %v3855_v34 = vmul.f32 %v3825_v44, %v8023_v17  ;;  %3913 = vperm.xlu1 %4710, %v8020_v54   ;;  %v3809_v54 = vmul.f32 %v5016_v15, %v7250_v28  ;;  %v8026_v17 = vld [vmem:[#allocation36_spill] sm:$0xff]  ;;  %5025 = vpow2.f32 %v3526_v41 }
 0x95f   : > { %v5071_v15 = vld [vmem:[%s7732_s6 + $0x8] sm:$0xff]  ;;  %5027 = vpow2.f32 %v2766_v25 }
 0x960   : > { %v3863_v20 = vsel %vm590_vm5, %v3855_v34, 0.0  ;;  %v7262_v0 = vadd.f32 %v3889_v1, %v3675_v62  ;;  %v8027_v62 = vld [vmem:[#allocation46_spill] sm:$0xff]  ;;  %v2781_v34 = vmul.f32 %v6756_v47, %v7122_v53  ;;  %v3817_v36 = vadd.f32 %v3809_v54, %v3628_v59 }
 0x961   : > { %v7266_v52 = vadd.f32 %v3864_v42, %v3863_v20  ;;  %v3515_v42 = vmul.f32 %v5071_v15, %v6762_v40  ;;  %v5020_v20 = vpop.eup %5019  ;;  %v2809_v15 = vmul.f32 %v6778_v60, %v7122_v53  ;;  %v8030_v54 = vld [vmem:[#allocation50_spill] sm:$0xff] }
 0x962   : > { %8024 = vst [vmem:[#allocation62_spill] sm:$0xff] %v7262_v0  ;;  %v3700_v14 = vpop.permute.xlu0 %3699  ;;  %4712 = vset.pattern.permute.xlu1 %v7878_v43  ;;  %v3902_v22 = vpop.permute.xlu1 %3901  ;;  %v3966_v44 = vmul.f32 %v5018_v26, %v7262_v0  ;;  %v2794_v32 = vmul.f32 1.442695, %v2781_v34  ;;  %v3046_v0 = vmul.f32 0.0, %v5020_v20  ;;  %v3672_v25 = vmul.f32 %v6846_v5, %v8030_v54 }
 0x963   : > { %v3719_v58 = vmul.f32 %v6865_v38, %v3700_v14  ;;  %v3932_v1 = vmul.f32 %v3902_v22, %v8026_v17  ;;  %3575 = vperm.xlu1 %4712, %v8027_v62   ;;  %v5022_v56 = vpop.eup %5021  ;;  %v3524_v59 = vmul.f32 1.442695, %v3515_v42  ;;  %v2837_v42 = vmul.f32 %v6796_v45, %v7122_v53 }
 0x964   : > { %v5024_v34 = vpop.eup %5023  ;;  %5029 = vpow2.f32 %v2794_v32 }
 0x965   : > { %v3940_v26 = vsel %vm590_vm5, %v3932_v1, 0.0  ;;  %v7283_v14 = vadd.f32 %v3966_v44, %v3719_v58  ;;  %v3886_v44 = vmul.f32 %v5022_v56, %v3817_v36  ;;  %5031 = vpow2.f32 %v3524_v59  ;;  %v8031_v59 = vld [vmem:[#allocation56_spill] sm:$0xff] }
 0x966   : > { %v7285_v22 = vadd.f32 %v3941_v30, %v3940_v26  ;;  %v2822_v26 = vmul.f32 1.442695, %v2809_v15  ;;  %v2850_v15 = vmul.f32 1.442695, %v2837_v42 }
 0x967   : > { %8028 = vst [vmem:[#allocation60_spill] sm:$0xff] %v7283_v14  ;;  %v2889_v17 = vpop.permute.xlu0 %2888  ;;  %4713 = vset.pattern.permute.xlu1 %v7880_v19  ;;  %v3979_v41 = vpop.permute.xlu1 %3978 }
 0x968   : > { %v2906_v63 = vmul.f32 %v6842_v9, %v2889_v17  ;;  %v7292_v1 = vmul.f32 %v3979_v41, %v8029_v37  ;;  %3619 = vperm.xlu1 %4713, %v8027_v62   ;;  %5033 = vpow2.f32 %v2822_v26 }
 0x969   : > { %5035 = vpow2.f32 %v2850_v15 }
 0x96a   : > { %v7297_v58 = vadd.f32 %v3046_v0, %v2906_v63  ;;  %v7310_v0 = vadd.f32 %v3886_v44, %v3672_v25  ;;  %v3716_v63 = vmul.f32 %v6865_v38, %v7060_v57 }
 0x96b   : > { %v3696_v30 = vpop.permute.xlu1 %3695  ;;  %v5026_v17 = vpop.eup %5025 }
 0x96c   : > { %v3718_v20 = vmul.f32 %v6865_v38, %v3696_v30  ;;  %v2978_v14 = vpop.permute.xlu0 %2977  ;;  %4714 = vset.pattern.permute.xlu1 %v7876_v35  ;;  %v7302_v37 = vmul.f32 %v5024_v34, %v7297_v58  ;;  %v5028_v25 = vpop.eup %5027 }
 0x96d   : > { %v7307_v56 = vmul.f32 %v6890_v21, %v2978_v14  ;;  %3663 = vperm.xlu1 %4714, %v8027_v62   ;;  %v3963_v14 = vmul.f32 %v5026_v17, %v7310_v0 }
 0x96e   : > { %v7313_v32 = vadd.f32 %v7075_v4, %v3718_v20  ;;  %v8032_v4 = vld [vmem:[#allocation41_spill] sm:$0xff] }
 0x96f   : > { %v3181_v44 = vsel %vm590_vm5, %v8032_v4, 0.0 }
 0x970   : > { %v3147_v41 = vpop.permute.xlu1 %3146 }
 0x971   : > { %v3174_v54 = vmul.f32 %v3147_v41, %v8031_v59  ;;  %v3833_v53 = vpop.permute.xlu0 %3832  ;;  %4715 = vset.pattern.permute.xlu1 %v7881_v51  ;;  %v3971_v41 = vadd.f32 %v3963_v14, %v3716_v63  ;;  %v3045_v59 = vmul.f32 0.0, %v5028_v25  ;;  %v5030_v4 = vpop.eup %5029 }
 0x972   : > { %v3857_v34 = vmul.f32 %v3833_v53, %v3817_v36  ;;  %3707 = vperm.xlu1 %4715, %v8027_v62   ;;  %v8033_v53 = vld [vmem:[#allocation37_spill] sm:$0xff] }
 0x973   : > { %v3182_v30 = vsel %vm590_vm5, %v3174_v54, 0.0 }
 0x974   : > { %v3183_v26 = vadd.f32 %v3182_v30, %v3181_v44  ;;  %v3866_v20 = vsel %vm590_vm5, %v3857_v34, 0.0  ;;  %v5032_v44 = vpop.eup %5031  ;;  %v8035_v34 = vld [vmem:[#allocation53_spill] sm:$0xff] }
 0x975   : > { %v7326_v57 = vadd.f32 %v3866_v20, %v7266_v52  ;;  %v2884_v42 = vpop.permute.xlu1 %2883  ;;  %v3715_v15 = vmul.f32 %v6865_v38, %v8035_v34  ;;  %v3962_v63 = vmul.f32 %v5032_v44, %v7193_v13 }
 0x976   : > { %v2905_v36 = vmul.f32 %v6842_v9, %v2884_v42  ;;  %v3987_v17 = vpop.permute.xlu0 %3986  ;;  %4717 = vset.pattern.permute.xlu1 %v7880_v19 }
 0x977   : > { %v4011_v62 = vmul.f32 %v3987_v17, %v3971_v41  ;;  %3158 = vperm.xlu1 %4717, %v8033_v53   ;;  %v5034_v41 = vpop.eup %5033 }
 0x978   : > { %v7331_v54 = vadd.f32 %v3045_v59, %v2905_v36  ;;  %v3970_v36 = vadd.f32 %v3962_v63, %v3715_v15  ;;  %v5036_v34 = vpop.eup %5035 }
 0x979   : > { %v4020_v15 = vsel %vm590_vm5, %v4011_v62, 0.0 }
 0x97a   : > { %8034 = vst [vmem:[#allocation32_spill] sm:$0xff] %v7331_v54  ;;  %v3130_v52 = vmul.f32 %v5030_v4, %v7331_v54  ;;  %v2974_v30 = vpop.permute.xlu1 %2973 }
 0x97b   : > { %v2993_v14 = vmul.f32 %v6890_v21, %v2974_v30  ;;  %v3660_v25 = vpop.permute.xlu0 %3659  ;;  %4719 = vset.pattern.permute.xlu1 %v7881_v51  ;;  %v8037_v30 = vld [vmem:[#allocation31_spill] sm:$0xff] }
 0x97c   : > { %v7340_v20 = vadd.f32 %v3130_v52, %v7131_v49  ;;  %v7343_v42 = vmul.f32 %v6846_v5, %v3660_v25  ;;  %3312 = vperm.xlu1 %4719, %v8033_v53   ;;  %v4017_v49 = vsel %vm590_vm5, %v7292_v1, 0.0 }
 0x97e   : > { %v3207_v59 = vmul.f32 %v5034_v41, %v7340_v20 }
 0x97f   : > { %v3983_v17 = vpop.permute.xlu1 %3982 }
 0x980   : > { %v7347_v4 = vadd.f32 %v3207_v59, %v2993_v14  ;;  %v4010_v13 = vmul.f32 %v3983_v17, %v3970_v36  ;;  %v3155_v44 = vpop.permute.xlu0 %3154  ;;  %4720 = vset.pattern.permute.xlu1 %v7878_v43  ;;  %v8038_v59 = vld [vmem:[#allocation52_spill] sm:$0xff] }
 0x981   : > { %3760 = vperm.xlu1 %4720, %v8037_v30  }
 0x982   : > { %8036 = vst [vmem:[#allocation21_spill] sm:$0xff] %v7347_v4  ;;  %v4018_v52 = vsel %vm590_vm5, %v4010_v13, 0.0  ;;  %v3284_v53 = vmul.f32 %v5036_v34, %v7347_v4  ;;  %v2810_v13 = vmul.f32 %v6778_v60, %v7198_v27  ;;  %v8040_v4 = vld [vmem:[#allocation47_spill] sm:$0xff] }
 0x983   : > { %v4019_v25 = vadd.f32 %v4018_v52, %v4017_v49  ;;  %v8039_v52 = vld [vmem:[#allocation20_spill] sm:$0xff] }
 0x984   : > { %v7356_v63 = vpop.permute.xlu0 %2937  ;;  %v3069_v14 = vpop.permute.xlu1 %3068  ;;  %v7359_v41 = vadd.f32 %v3284_v53, %v7148_v8  ;;  %v3176_v8 = vmul.f32 %v3155_v44, %v7093_v3 }
 0x985   : > { %v3098_v36 = vmul.f32 %v3069_v14, %v8038_v59  ;;  %4721 = vset.pattern.permute.xlu1 %v7880_v19  ;;  %v4021_v17 = vadd.f32 %v4020_v15, %v4019_v25  ;;  %v2824_v25 = vmul.f32 1.442695, %v2810_v13  ;;  %v2838_v15 = vmul.f32 %v6796_v45, %v7198_v27 }
 0x986   : > { %3840 = vperm.xlu1 %4721, %v8037_v30  }
 0x987   : > { %v3107_v1 = vsel %vm590_vm5, %v3098_v36, 0.0  ;;  %5037 = vpow2.f32 %v2824_v25  ;;  %v2852_v44 = vmul.f32 1.442695, %v2838_v15 }
 0x988   : > { %v7368_v62 = vadd.f32 %v3107_v1, %v7172_v33  ;;  %v3186_v33 = vsel %vm590_vm5, %v3176_v8, 0.0 }
 0x989   : > { %v7370_v34 = vpop.permute.xlu0 %3025  ;;  %v3151_v49 = vpop.permute.xlu1 %3150  ;;  %5039 = vpow2.f32 %v2852_v44 }
 0x98a   : > { %v3175_v53 = vmul.f32 %v3151_v49, %v8039_v52  ;;  %4722 = vset.pattern.permute.xlu1 %v7881_v51  ;;  %v8041_v52 = vld [vmem:[#allocation42_spill] sm:$0xff] }
 0x98b   : > { %3994 = vperm.xlu1 %4722, %v8037_v30  }
 0x98c   : > { %v3184_v14 = vsel %vm590_vm5, %v3175_v53, 0.0  ;;  %v3436_v53 = vmul.f32 %v6704_v11, %v7198_v27 }
 0x98d   : > { %v3185_v59 = vadd.f32 %v3184_v14, %v3183_v26 }
 0x98e   : > { %v3756_v36 = vpop.permute.xlu0 %3755  ;;  %v3228_v1 = vpop.permute.xlu1 %3227 }
 0x98f   : > { %v3252_v54 = vmul.f32 %v3228_v1, %v8040_v4  ;;  %4723 = vset.pattern.permute.xlu1 %v7878_v43  ;;  %v7382_v3 = vadd.f32 %v3186_v33, %v3185_v59  ;;  %v3450_v59 = vmul.f32 1.442695, %v3436_v53  ;;  %v3464_v33 = vmul.f32 %v6723_v16, %v7198_v27  ;;  %v8042_v53 = vld [vmem:[#allocation14_spill] sm:$0xff] }
 0x990   : > { %3083 = vperm.xlu1 %4723, %v6717_v46  }
 0x991   : > { %v3261_v30 = vsel %vm590_vm5, %v3252_v54, 0.0  ;;  %5041 = vpow2.f32 %v3450_v59 }
 0x992   : > { %v7387_v13 = vadd.f32 %v3261_v30, %v7190_v48 }
 0x993   : > { %v3991_v26 = vpop.permute.xlu0 %3990  ;;  %v3305_v49 = vpop.permute.xlu1 %3304 }
 0x994   : > { %v4012_v8 = vmul.f32 %v3991_v26, %v7156_v2  ;;  %v3329_v4 = vmul.f32 %v3305_v49, %v8041_v52  ;;  %4725 = vset.pattern.permute.xlu1 %v7876_v35  ;;  %v5038_v1 = vpop.eup %5037 }
 0x995   : > { %3239 = vperm.xlu1 %4725, %v6717_v46  }
 0x996   : > { %v4022_v25 = vsel %vm590_vm5, %v4012_v8, 0.0  ;;  %v3338_v54 = vsel %vm590_vm5, %v3329_v4, 0.0  ;;  %v5040_v49 = vpop.eup %5039  ;;  %v3492_v8 = vmul.f32 %v6741_v61, %v7198_v27 }
 0x997   : > { %v7397_v48 = vadd.f32 %v4022_v25, %v4021_v17  ;;  %v7400_v15 = vadd.f32 %v3338_v54, %v7116_v23  ;;  %v3781_v25 = vmul.f32 %v3756_v36, %v8042_v53 }
 0x998   : > { %v2934_v14 = vpop.permute.xlu1 %2933  ;;  %v3079_v30 = vpop.permute.xlu0 %3078 }
 0x999   : > { %v2950_v2 = vmul.f32 %v6861_v7, %v2934_v14  ;;  %4727 = vset.pattern.permute.xlu1 %v7878_v43  ;;  %v3791_v36 = vsel %vm590_vm5, %v3781_v25, 0.0 }
 0x99a   : > { %3765 = vperm.xlu1 %4727, %v6715_v29  }
 0x99b   : > { %v7406_v46 = vadd.f32 %v7302_v37, %v2950_v2  ;;  %v3478_v37 = vmul.f32 1.442695, %v3464_v33 }
 0x99d   : > { %v3022_v17 = vpop.permute.xlu1 %3021  ;;  %v3208_v23 = vmul.f32 %v5038_v1, %v7406_v46  ;;  %5043 = vpow2.f32 %v3478_v37  ;;  %v3236_v2 = vpop.permute.xlu0 %3235 }
 0x99e   : > { %v3038_v44 = vmul.f32 %v6900_v24, %v3022_v17  ;;  %4730 = vset.pattern.permute.xlu1 %v7881_v51 }
 0x99f   : > { %3998 = vperm.xlu1 %4730, %v6715_v29   ;;  %v7415_v26 = vadd.f32 %v3208_v23, %v7307_v56  ;;  %v3506_v29 = vmul.f32 1.442695, %v3492_v8  ;;  %v3520_v56 = vmul.f32 %v6762_v40, %v7198_v27 }
 0x9a1   : > { %v3285_v52 = vmul.f32 %v5040_v49, %v7415_v26  ;;  %5045 = vpow2.f32 %v3506_v29  ;;  %v3534_v23 = vmul.f32 1.442695, %v3520_v56  ;;  %v7437_v37 = vpop.permute.xlu0 %3917 }
 0x9a2   : > { %v3751_v4 = vpop.permute.xlu1 %3750 }
 0x9a3   : > { %v3780_v54 = vmul.f32 %v3751_v4, %v7250_v28  ;;  %4732 = vset.pattern.permute.xlu1 %v7880_v19  ;;  %v7423_v14 = vadd.f32 %v3285_v52, %v3038_v44  ;;  %v5042_v44 = vpop.eup %5041  ;;  %5047 = vpow2.f32 %v3534_v23  ;;  %v7450_v4 = vld [vmem:[%s7732_s6 + $0x38] sm:$0xff] }
 0x9a4   : > { %3166 = vperm.xlu1 %4732, %v6735_v50   ;;  %v3728_v8 = vmul.f32 0.0, %v5042_v44  ;;  %v2755_v29 = vmul.f32 %v6731_v6, %v7450_v4  ;;  %v2783_v6 = vmul.f32 %v6756_v47, %v7450_v4 }
 0x9a5   : > { %v3789_v59 = vsel %vm590_vm5, %v3780_v54, 0.0 }
 0x9a6   : > { %v3790_v33 = vadd.f32 %v3789_v59, %v7247_v55  ;;  %v7452_v53 = vpop.permute.xlu0 %3162  ;;  %v2770_v23 = vmul.f32 1.442695, %v2755_v29  ;;  %v2798_v47 = vmul.f32 1.442695, %v2783_v6 }
 0x9a7   : > { %v3910_v1 = vpop.permute.xlu1 %3909 }
 0x9a8   : > { %v3934_v28 = vmul.f32 %v3910_v1, %v7310_v0  ;;  %4734 = vset.pattern.permute.xlu1 %v7881_v51  ;;  %v7433_v17 = vadd.f32 %v3791_v36, %v3790_v33  ;;  %5049 = vpow2.f32 %v2770_v23 }
 0x9a9   : > { %3320 = vperm.xlu1 %4734, %v6735_v50   ;;  %5051 = vpow2.f32 %v2798_v47 }
 0x9aa   : > { %v3943_v27 = vsel %vm590_vm5, %v3934_v28, 0.0  ;;  %v5044_v50 = vpop.eup %5043 }
 0x9ab   : > { %v7440_v55 = vadd.f32 %v3943_v27, %v7285_v22  ;;  %v7463_v1 = vpop.permute.xlu0 %3316 }
 0x9ac   : > { %v3571_v49 = vpop.permute.xlu1 %3570 }
 0x9ad   : > { %v3588_v0 = vmul.f32 %v6802_v10, %v3571_v49  ;;  %4735 = vset.pattern.permute.xlu1 %v7878_v43 }
 0x9ae   : > { %3770 = vperm.xlu1 %4735, %v8013_v39   ;;  %v5046_v59 = vpop.eup %5045 }
 0x9af   : > { %v7445_v52 = vadd.f32 %v3728_v8, %v3588_v0  ;;  %v8043_v8 = vld [vmem:[#allocation49_spill] sm:$0xff] }
 0x9b0   : > { %v5048_v44 = vpop.eup %5047  ;;  %v3100_v0 = vmul.f32 %v3079_v30, %v8043_v8 }
 0x9b1   : > { %v3616_v22 = vpop.permute.xlu1 %3615  ;;  %v3813_v25 = vmul.f32 %v5044_v50, %v7445_v52 }
 0x9b2   : > { %v3632_v54 = vmul.f32 %v6824_v31, %v3616_v22  ;;  %4738 = vset.pattern.permute.xlu1 %v7881_v51  ;;  %v3111_v30 = vsel %vm590_vm5, %v3100_v0, 0.0 }
 0x9b3   : > { %4002 = vperm.xlu1 %4738, %v8013_v39  }
 0x9b4   : > { %v7460_v56 = vadd.f32 %v3813_v25, %v3632_v54  ;;  %v7481_v25 = vpop.permute.xlu0 %3844 }
 0x9b6   : > { %v3704_v33 = vpop.permute.xlu1 %3703  ;;  %v3890_v36 = vmul.f32 %v5046_v59, %v7460_v56 }
 0x9b7   : > { %v3720_v28 = vmul.f32 %v6865_v38, %v3704_v33  ;;  %4739 = vset.pattern.permute.xlu1 %v7878_v43  ;;  %v8044_v33 = vld [vmem:[#allocation54_spill] sm:$0xff] }
 0x9b8   : > { %3093 = vperm.xlu1 %4739, %v8015_v12   ;;  %v7469_v39 = vadd.f32 %v3890_v36, %v7343_v42  ;;  %v2811_v42 = vmul.f32 %v6778_v60, %v7450_v4  ;;  %v3254_v36 = vmul.f32 %v3236_v2, %v8044_v33  ;;  %v8046_v2 = vld [vmem:[#allocation17_spill] sm:$0xff] }
 0x9ba   : > { %v3967_v27 = vmul.f32 %v5048_v44, %v7469_v39  ;;  %v3922_v44 = vpop.permute.xlu0 %3921 }
 0x9bb   : > { %v3074_v49 = vpop.permute.xlu1 %3073 }
 0x9bc   : > { %v3099_v50 = vmul.f32 %v3074_v49, %v7082_v18  ;;  %4741 = vset.pattern.permute.xlu1 %v7876_v35  ;;  %v7477_v22 = vadd.f32 %v3967_v27, %v3720_v28  ;;  %v2826_v18 = vmul.f32 1.442695, %v2811_v42  ;;  %v2839_v35 = vmul.f32 %v6796_v45, %v7450_v4  ;;  %v8045_v28 = vld [vmem:[#allocation16_spill] sm:$0xff]  ;;  %v5050_v42 = vpop.eup %5049 }
 0x9bd   : > { %3247 = vperm.xlu1 %4741, %v8015_v12   ;;  %v3265_v27 = vsel %vm590_vm5, %v3254_v36, 0.0 }
 0x9be   : > { %v3109_v54 = vsel %vm590_vm5, %v3099_v50, 0.0  ;;  %5053 = vpow2.f32 %v2826_v18  ;;  %v2854_v45 = vmul.f32 1.442695, %v2839_v35  ;;  %v8047_v50 = vld [vmem:[#allocation28_spill] sm:$0xff]  ;;  %v5052_v35 = vpop.eup %5051 }
 0x9bf   : > { %v3110_v29 = vadd.f32 %v3109_v54, %v7368_v62 }
 0x9c0   : > { %v3232_v59 = vpop.permute.xlu1 %3231  ;;  %5055 = vpow2.f32 %v2854_v45 }
 0x9c1   : > { %v3253_v60 = vmul.f32 %v3232_v59, %v8045_v28  ;;  %4742 = vset.pattern.permute.xlu1 %v7881_v51  ;;  %v7492_v23 = vadd.f32 %v3111_v30, %v3110_v29  ;;  %v3047_v30 = vmul.f32 0.0, %v5050_v42 }
 0x9c2   : > { %3324 = vperm.xlu1 %4742, %v8015_v12   ;;  %v3437_v12 = vmul.f32 %v6704_v11, %v7450_v4  ;;  %v3465_v11 = vmul.f32 %v6723_v16, %v7450_v4 }
 0x9c3   : > { %v3263_v62 = vsel %vm590_vm5, %v3253_v60, 0.0 }
 0x9c4   : > { %v3264_v6 = vadd.f32 %v3263_v62, %v7387_v13  ;;  %v7506_v13 = vpop.permute.xlu0 %3088  ;;  %v3452_v59 = vmul.f32 1.442695, %v3437_v12  ;;  %v3480_v60 = vmul.f32 1.442695, %v3465_v11  ;;  %v3493_v62 = vmul.f32 %v6741_v61, %v7450_v4 }
 0x9c5   : > { %v3309_v49 = vpop.permute.xlu1 %3308  ;;  %v3521_v61 = vmul.f32 %v6762_v40, %v7450_v4 }
 0x9c6   : > { %v3330_v8 = vmul.f32 %v3309_v49, %v8046_v2  ;;  %4743 = vset.pattern.permute.xlu1 %v7878_v43  ;;  %v7500_v0 = vadd.f32 %v3265_v27, %v3264_v6  ;;  %5057 = vpow2.f32 %v3452_v59  ;;  %v8048_v27 = vld [vmem:[#allocation23_spill] sm:$0xff]  ;;  %v3508_v45 = vmul.f32 1.442695, %v3493_v62 }
 0x9c7   : > { %3775 = vperm.xlu1 %4743, %v8047_v50   ;;  %5059 = vpow2.f32 %v3480_v60  ;;  %v3039_v2 = vmul.f32 %v6900_v24, %v7370_v34  ;;  %v3536_v34 = vmul.f32 1.442695, %v3521_v61 }
 0x9c8   : > { %v3340_v47 = vsel %vm590_vm5, %v3330_v8, 0.0  ;;  %v7520_v33 = vpop.permute.xlu0 %3243  ;;  %5061 = vpow2.f32 %v3508_v45 }
 0x9c9   : > { %v7509_v54 = vadd.f32 %v3340_v47, %v7400_v15  ;;  %v2951_v15 = vmul.f32 %v6861_v7, %v7356_v63  ;;  %5063 = vpow2.f32 %v3536_v34 }
 0x9ca   : > { %v2894_v29 = vpop.permute.xlu1 %2893 }
 0x9cb   : > { %v2907_v43 = vmul.f32 %v6842_v9, %v2894_v29  ;;  %4744 = vset.pattern.permute.xlu1 %v7880_v19  ;;  %v5054_v16 = vpop.eup %5053  ;;  %v8049_v29 = vld [vmem:[#allocation22_spill] sm:$0xff] }
 0x9cc   : > { %3852 = vperm.xlu1 %4744, %v8047_v50   ;;  %v7531_v6 = vpop.permute.xlu0 %3848 }
 0x9cd   : > { %v7514_v18 = vadd.f32 %v3047_v30, %v2907_v43  ;;  %v3936_v30 = vmul.f32 %v7437_v37, %v8049_v29  ;;  %v8050_v43 = vld [vmem:[#allocation25_spill] sm:$0xff]  ;;  %v4785_v37 = vld [vmem:[%s7731_s5 + $0x98] sm:$0xff]  }
 0x9ce   : > { %4446 = vmatpush3.bf16.msra.mxu0 %v4785_v37 }
 0x9cf   : > { %v3132_v36 = vmul.f32 %v5052_v35, %v7514_v18  ;;  %v2982_v28 = vpop.permute.xlu1 %2981  ;;  %v8051_v35 = vld [vmem:[#allocation62_spill] sm:$0xff] }
 0x9d0   : > { %v2995_v19 = vmul.f32 %v6890_v21, %v2982_v28  ;;  %4746 = vset.pattern.permute.xlu1 %v7881_v51  ;;  %v5056_v51 = vpop.eup %5055  ;;  %v3926_v24 = vpop.permute.xlu0 %3925 }
 0x9d1   : > { %v7525_v9 = vadd.f32 %v3132_v36, %v2951_v15  ;;  %4006 = vperm.xlu1 %4746, %v8047_v50   ;;  %v3937_v15 = vmul.f32 %v3922_v44, %v8051_v35  ;;  %v3938_v4 = vmul.f32 %v3926_v24, %v7469_v39 }
 0x9d3   : > { %v3209_v7 = vmul.f32 %v5054_v16, %v7525_v9  ;;  %v5058_v11 = vpop.eup %5057  ;;  %v3949_v44 = vsel %vm590_vm5, %v3937_v15, 0.0 }
 0x9d4   : > { %v3837_v63 = vpop.permute.xlu1 %3836  ;;  %v3729_v60 = vmul.f32 0.0, %v5058_v11 }
 0x9d5   : > { %v3858_v49 = vmul.f32 %v3837_v63, %v8048_v27  ;;  %v7534_v21 = vadd.f32 %v3209_v7, %v2995_v19  ;;  %v8052_v7 = vmov 0.0   ;;  %v5060_v63 = vpop.eup %5059  ;;  %v3951_v27 = vsel %vm590_vm5, %v3938_v4, 0.0 }
 0x9d6   : > { %4447 = vmatprep.subr.bf16.mxu0 %v8052_v7  ;;  %v5062_v61 = vpop.eup %5061 }
 0x9d7   : > { %v3868_v8 = vsel %vm590_vm5, %v3858_v49, 0.0  ;;  %v3286_v50 = vmul.f32 %v5056_v51, %v7534_v21  ;;  %v5064_v24 = vpop.eup %5063 }
 0x9d8   : > { %v7543_v12 = vadd.f32 %v3868_v8, %v7326_v57  ;;  %v3947_v57 = vsel %vm590_vm5, %v3936_v30, 0.0  ;;  %v7573_v8 = vpop.permute.xlu0 %3170 }
 0x9d9   : > { %v3914_v42 = vpop.permute.xlu1 %3913  ;;  %v7545_v47 = vadd.f32 %v3286_v50, %v3039_v2  ;;  %v4787_v2 = vld [vmem:[%s7731_s5 + $0x88] sm:$0xff]  }
 0x9da   : > { %v3935_v59 = vmul.f32 %v3914_v42, %v8050_v43 }
 0x9dc   : > { %v3945_v36 = vsel %vm590_vm5, %v3935_v59, 0.0  ;;  %v3930_v43 = vpop.permute.xlu0 %3929 }
 0x9dd   : > { %v3946_v40 = vadd.f32 %v3945_v36, %v7440_v55  ;;  %v4786_v55 = vld [vmem:[%s7731_s5 + $0x90] sm:$0xff]  }
 0x9de   : > { %v3576_v28 = vpop.permute.xlu1 %3575  ;;  %4448 = vmatpush3.bf16.msra.mxu0 %v4786_v55  ;;  %v8054_v55 = vld [vmem:[#allocation61_spill] sm:$0xff] }
 0x9df   : > { %v3948_v19 = vadd.f32 %v3947_v57, %v3946_v40  ;;  %v3589_v16 = vmul.f32 %v6802_v10, %v3576_v28  ;;  %4449 = vmatprep.subr.bf16.mxu0 %v8052_v7  ;;  %v8053_v28 = vld [vmem:[#allocation51_spill] sm:$0xff] }
 0x9e1   : > { %v7563_v62 = vadd.f32 %v3729_v60, %v3589_v16  ;;  %v3950_v39 = vadd.f32 %v3949_v44, %v3948_v19 }
 0x9e2   : > { %4450 = vmatpush3.bf16.msra.mxu0 %v4787_v2 }
 0x9e3   : > { %v3814_v49 = vmul.f32 %v5060_v63, %v7563_v62  ;;  %v3620_v51 = vpop.permute.xlu1 %3619  ;;  %v3952_v10 = vadd.f32 %v3951_v27, %v3950_v39  ;;  %4451 = vmatprep.subr.bf16.mxu0 %v8052_v7 }
 0x9e4   : > { %v3633_v45 = vmul.f32 %v6824_v31, %v3620_v51  ;;  %v4788_v31 = vld [vmem:[%s7731_s5 + $0x80] sm:$0xff]  }
 0x9e6   : > { %v7575_v50 = vadd.f32 %v3814_v49, %v3633_v45  ;;  %4452 = vmatpush3.bf16.msra.mxu0 %v4788_v31  ;;  %v8055_v49 = vld [vmem:[#allocation15_spill] sm:$0xff] }
 0x9e8   : > { %v3664_v42 = vpop.permute.xlu1 %3663  ;;  %v3891_v29 = vmul.f32 %v5062_v61, %v7575_v50  ;;  %v8056_v61 = vld [vmem:[#allocation55_spill] sm:$0xff] }
 0x9e9   : > { %v3677_v30 = vmul.f32 %v6846_v5, %v3664_v42  ;;  %v3178_v5 = vmul.f32 %v7452_v53, %v7340_v20 }
 0x9eb   : > { %v3899_v59 = vadd.f32 %v3891_v29, %v3677_v30  ;;  %v3190_v16 = vsel %vm590_vm5, %v3178_v5, 0.0  ;;  %v3861_v29 = vmul.f32 %v7531_v6, %v7460_v56  ;;  %v3102_v56 = vmul.f32 %v7506_v13, %v7297_v58  ;;  %v8058_v6 = vld [vmem:[#allocation32_spill] sm:$0xff] }
 0x9ec   : > { %v3256_v5 = vmul.f32 %v7520_v33, %v7415_v26 }
 0x9ed   : > { %v3939_v34 = vmul.f32 %v3930_v43, %v3899_v59  ;;  %v3708_v11 = vpop.permute.xlu1 %3707  ;;  %v3968_v35 = vmul.f32 %v5064_v24, %v3899_v59 }
 0x9ee   : > { %v3721_v15 = vmul.f32 %v6865_v38, %v3708_v11  ;;  %v3332_v38 = vmul.f32 %v7463_v1, %v7359_v41  ;;  %v3860_v41 = vmul.f32 %v7481_v25, %v8056_v61  ;;  %v8057_v1 = vld [vmem:[#allocation44_spill] sm:$0xff]  ;;  %v3269_v58 = vsel %vm590_vm5, %v3256_v5, 0.0 }
 0x9ef   : > { %v3953_v36 = vsel %vm590_vm5, %v3939_v34, 0.0 }
 0x9f0   : > { %v7585_v40 = vadd.f32 %v3953_v36, %v3952_v10  ;;  %v7587_v57 = vadd.f32 %v3968_v35, %v3721_v15  ;;  %v3344_v20 = vsel %vm590_vm5, %v3332_v38, 0.0  ;;  %v3872_v30 = vsel %vm590_vm5, %v3860_v41, 0.0 }
 0x9f2   : > { %v3159_v4 = vpop.permute.xlu1 %3158 }
 0x9f3   : > { %v3177_v37 = vmul.f32 %v3159_v4, %v8053_v28  ;;  %v8059_v28 = vld [vmem:[#allocation21_spill] sm:$0xff] }
 0x9f5   : > { %v3188_v19 = vsel %vm590_vm5, %v3177_v37, 0.0 }
 0x9f6   : > { %v3189_v60 = vadd.f32 %v3188_v19, %v7382_v3 }
 0x9f7   : > { %v3313_v44 = vpop.permute.xlu1 %3312 }
 0x9f8   : > { %v3331_v39 = vmul.f32 %v3313_v44, %v8054_v55  ;;  %v3191_v7 = vadd.f32 %v3190_v16, %v3189_v60  ;;  %v8060_v16 = vld [vmem:[#allocation59_spill] sm:$0xff] }
 0x9fa   : > { %v3342_v63 = vsel %vm590_vm5, %v3331_v39, 0.0 }
 0x9fb   : > { %v3343_v27 = vadd.f32 %v3342_v63, %v7509_v54  ;;  %v8061_v63 = vld [vmem:[#allocation60_spill] sm:$0xff] }
 0x9fc   : > { %v3761_v53 = vpop.permute.xlu1 %3760 }
 0x9fd   : > { %v3782_v51 = vmul.f32 %v3761_v53, %v8055_v49  ;;  %v3345_v10 = vadd.f32 %v3344_v20, %v3343_v27  ;;  %v3180_v53 = vmul.f32 %v7573_v8, %v7525_v9 }
 0x9ff   : > { %v3793_v3 = vsel %vm590_vm5, %v3782_v51, 0.0 }
 0xa00   : > { %v3794_v45 = vadd.f32 %v3793_v3, %v7433_v17  ;;  %v3874_v17 = vsel %vm590_vm5, %v3861_v29, 0.0  ;;  %v3194_v3 = vsel %vm590_vm5, %v3180_v53, 0.0 }
 0xa01   : > { %v3841_v2 = vpop.permute.xlu1 %3840 }
 0xa02   : > { %v3859_v42 = vmul.f32 %v3841_v2, %v8057_v1 }
 0xa04   : > { %v3870_v54 = vsel %vm590_vm5, %v3859_v42, 0.0 }
 0xa05   : > { %v3871_v31 = vadd.f32 %v3870_v54, %v7543_v12 }
 0xa06   : > { %v3995_v43 = vpop.permute.xlu1 %3994 }
 0xa07   : > { %v3873_v59 = vadd.f32 %v3872_v30, %v3871_v31  ;;  %v4013_v24 = vmul.f32 %v3995_v43, %v7313_v32  ;;  %v3115_v32 = vsel %vm590_vm5, %v3102_v56, 0.0 }
 0xa09   : > { %v4024_v34 = vsel %vm590_vm5, %v4013_v24, 0.0  ;;  %v7615_v25 = vadd.f32 %v3874_v17, %v3873_v59  ;;  %v8062_v24 = vld [vmem:[#allocation57_spill] sm:$0xff] }
 0xa0a   : > { %v4025_v11 = vadd.f32 %v4024_v34, %v7397_v48  ;;  %v4259_v17 = vmul.f32 -1.442695, %v8062_v24 }
 0xa0b   : > { %v3084_v35 = vpop.permute.xlu1 %3083 }
 0xa0c   : > { %v3101_v12 = vmul.f32 %v3084_v35, %v8058_v6  ;;  %5065 = vpow2.f32 %v4259_v17 }
 0xa0e   : > { %v3113_v15 = vsel %vm590_vm5, %v3101_v12, 0.0 }
 0xa0f   : > { %v3114_v36 = vadd.f32 %v3113_v15, %v7492_v23 }
 0xa10   : > { %v3240_v4 = vpop.permute.xlu1 %3239 }
 0xa11   : > { %v3255_v37 = vmul.f32 %v3240_v4, %v8059_v28  ;;  %v3116_v19 = vadd.f32 %v3115_v32, %v3114_v36 }
 0xa13   : > { %v3267_v48 = vsel %vm590_vm5, %v3255_v37, 0.0 }
 0xa14   : > { %v3268_v60 = vadd.f32 %v3267_v48, %v7500_v0 }
 0xa15   : > { %v3766_v13 = vpop.permute.xlu1 %3765 }
 0xa16   : > { %v3783_v44 = vmul.f32 %v3766_v13, %v8060_v16  ;;  %v3270_v38 = vadd.f32 %v3269_v58, %v3268_v60 }
 0xa18   : > { %v3795_v23 = vsel %vm590_vm5, %v3783_v44, 0.0 }
 0xa19   : > { %v3796_v55 = vadd.f32 %v3795_v23, %v3794_v45  ;;  %v5066_v53 = vpop.eup %5065 }
 0xa1a   : > { %v3999_v39 = vpop.permute.xlu1 %3998 }
 0xa1b   : > { %v4014_v27 = vmul.f32 %v3999_v39, %v8061_v63 }
 0xa1d   : > { %v4026_v26 = vsel %vm590_vm5, %v4014_v27, 0.0 }
 0xa1e   : > { %v4027_v33 = vadd.f32 %v4026_v26, %v4025_v11 }
 0xa1f   : > { %v3167_v20 = vpop.permute.xlu1 %3166 }
 0xa20   : > { %v3179_v0 = vmul.f32 %v3167_v20, %v7406_v46 }
 0xa22   : > { %v3192_v49 = vsel %vm590_vm5, %v3179_v0, 0.0 }
 0xa23   : > { %v3193_v51 = vadd.f32 %v3192_v49, %v3191_v7 }
 0xa24   : > { %v3321_v2 = vpop.permute.xlu1 %3320 }
 0xa25   : > { %v3195_v61 = vadd.f32 %v3194_v3, %v3193_v51  ;;  %v3333_v45 = vmul.f32 %v3321_v2, %v7423_v14 }
 0xa27   : > { %v3346_v41 = vsel %vm590_vm5, %v3333_v45, 0.0  ;;  %v3196_v46 = vrot.slane %v3195_v61, 4 }
 0xa28   : > { %v3347_v1 = vadd.f32 %v3346_v41, %v3345_v10  ;;  %v4054_v41 = vadd.f32 1.0, %v5066_v53 }
 0xa29   : > { %v3771_v42 = vpop.permute.xlu1 %3770  ;;  %v3197_v43 = vadd.f32 %v3196_v46, %v3195_v61 }
 0xa2a   : > { %v3784_v29 = vmul.f32 %v3771_v42, %v7445_v52  ;;  %5067 = vrcp.f32 %v4054_v41 }
 0xa2b   : > { %v3198_v52 = vrot.slane %v3197_v43, 2 }
 0xa2c   : > { %v3797_v54 = vsel %vm590_vm5, %v3784_v29, 0.0 }
 0xa2d   : > { %v3798_v9 = vadd.f32 %v3797_v54, %v3796_v55 }
 0xa2e   : > { %v4003_v8 = vpop.permute.xlu1 %4002 }
 0xa2f   : > { %v4015_v31 = vmul.f32 %v4003_v8, %v7477_v22  ;;  %v3199_v22 = vadd.f32 %v3198_v52, %v3197_v43 }
 0xa31   : > { %v4028_v7 = vsel %vm590_vm5, %v4015_v31, 0.0  ;;  %v3200_v5 = vrot.slane %v3199_v22, 1 }
 0xa32   : > { %v7645_v30 = vadd.f32 %v4028_v7, %v4027_v33 }
 0xa33   : > { %v3094_v59 = vpop.permute.xlu1 %3093  ;;  %v3201_v13 = vadd.f32 %v3200_v5, %v3199_v22 }
 0xa34   : > { %v3103_v14 = vmul.f32 %v3094_v59, %v7514_v18 }
 0xa36   : > { %v3117_v10 = vsel %vm590_vm5, %v3103_v14, 0.0 }
 0xa37   : > { %v3118_v34 = vadd.f32 %v3117_v10, %v3116_v19 }
 0xa38   : > { %v3248_v11 = vpop.permute.xlu1 %3247 }
 0xa39   : > { %v3119_v35 = vrot.slane %v3118_v34, 4  ;;  %v3257_v56 = vmul.f32 %v3248_v11, %v7534_v21 }
 0xa3b   : > { %v3120_v6 = vadd.f32 %v3119_v35, %v3118_v34  ;;  %v3271_v12 = vsel %vm590_vm5, %v3257_v56, 0.0 }
 0xa3c   : > { %v3272_v15 = vadd.f32 %v3271_v12, %v3270_v38  ;;  %v3955_v38 = vrot.slane %v7585_v40, 4 }
 0xa3d   : > { %v3121_v36 = vrot.slane %v3120_v6, 2  ;;  %v3325_v32 = vpop.permute.xlu1 %3324 }
 0xa3e   : > { %v3273_v4 = vrot.slane %v3272_v15, 4  ;;  %v3334_v18 = vmul.f32 %v3325_v32, %v7545_v47  ;;  %v3956_v0 = vadd.f32 %v3955_v38, %v7585_v40  ;;  %v8063_v32 = vld [vmem:[#allocation26_spill] sm:$0xff] }
 0xa3f   : > { %v3122_v28 = vadd.f32 %v3121_v36, %v3120_v6 }
 0xa40   : > { %v3274_v37 = vadd.f32 %v3273_v4, %v3272_v15  ;;  %v3348_v19 = vsel %vm590_vm5, %v3334_v18, 0.0  ;;  %v3957_v29 = vrot.slane %v3956_v0, 2 }
 0xa41   : > { %v3123_v48 = vrot.slane %v3122_v28, 1  ;;  %v3349_v60 = vadd.f32 %v3348_v19, %v3347_v1  ;;  %v8064_v19 = vld [vmem:[#allocation35_spill] sm:$0xff] }
 0xa42   : > { %v3275_v58 = vrot.slane %v3274_v37, 2  ;;  %v3776_v21 = vpop.permute.xlu1 %3775  ;;  %v3958_v59 = vadd.f32 %v3957_v29, %v3956_v0 }
 0xa43   : > { %v3124_v16 = vadd.f32 %v3123_v48, %v3122_v28  ;;  %v3350_v44 = vrot.slane %v3349_v60, 4  ;;  %v3785_v23 = vmul.f32 %v3776_v21, %v7563_v62  ;;  %v5068_v28 = vpop.eup %5067 }
 0xa44   : > { %v3276_v55 = vadd.f32 %v3275_v58, %v3274_v37  ;;  %v3959_v11 = vrot.slane %v3958_v59, 1  ;;  %v4057_v58 = vmul.f32 %v5068_v28, %v8062_v24 }
 0xa45   : > { %v4038_v39 = vsel %vm2139_vm8, %v3124_v16, %v3201_v13  ;;  %v3351_v47 = vadd.f32 %v3350_v44, %v3349_v60  ;;  %v3799_v63 = vsel %vm590_vm5, %v3785_v23, 0.0  ;;  %v8065_v23 = vld [vmem:[#allocation45_spill] sm:$0xff] }
 0xa46   : > { %v3277_v27 = vrot.slane %v3276_v55, 1  ;;  %v3800_v26 = vadd.f32 %v3799_v63, %v3798_v9  ;;  %v3960_v12 = vadd.f32 %v3959_v11, %v3958_v59 }
 0xa47   : > { %v3352_v33 = vrot.slane %v3351_v47, 2  ;;  %v3853_v20 = vpop.permute.xlu1 %3852 }
 0xa48   : > { %v3278_v49 = vadd.f32 %v3277_v27, %v3276_v55  ;;  %v3801_v51 = vrot.slane %v3800_v26, 4  ;;  %v3862_v3 = vmul.f32 %v3853_v20, %v7575_v50 }
 0xa49   : > { %v3353_v62 = vadd.f32 %v3352_v33, %v3351_v47 }
 0xa4a   : > { %v4039_v2 = vsel %vm2141_vm9, %v4038_v39, %v3278_v49  ;;  %v3802_v61 = vadd.f32 %v3801_v51, %v3800_v26  ;;  %v3876_v45 = vsel %vm590_vm5, %v3862_v3, 0.0 }
 0xa4b   : > { %v3354_v1 = vrot.slane %v3353_v62, 1  ;;  %v3877_v42 = vadd.f32 %v3876_v45, %v7615_v25 }
 0xa4c   : > { %v3803_v54 = vrot.slane %v3802_v61, 2  ;;  %v4007_v9 = vpop.permute.xlu1 %4006 }
 0xa4d   : > { %v3355_v8 = vadd.f32 %v3354_v1, %v3353_v62  ;;  %v3878_v46 = vrot.slane %v3877_v42, 4  ;;  %v4016_v40 = vmul.f32 %v4007_v9, %v7587_v57 }
 0xa4e   : > { %v3804_v31 = vadd.f32 %v3803_v54, %v3802_v61 }
 0xa4f   : > { %v4040_v50 = vsel %vm491_vm3, %v4039_v2, %v3355_v8  ;;  %v3879_v7 = vadd.f32 %v3878_v46, %v3877_v42  ;;  %v4030_v43 = vsel %vm590_vm5, %v4016_v40, 0.0 }
 0xa50   : > { %v3805_v14 = vrot.slane %v3804_v31, 1  ;;  %v4031_v10 = vadd.f32 %v4030_v43, %v7645_v30  ;;  %v5072_v30 = vld [vmem:[%s7732_s6 + $0x40] sm:$0xff] }
 0xa51   : > { %v3880_v17 = vrot.slane %v3879_v7, 2  ;;  %v4048_v4 = vrot.slane %v5072_v30, %v8063_v32 }
 0xa52   : > { %v3806_v25 = vadd.f32 %v3805_v14, %v3804_v31  ;;  %v4032_v52 = vrot.slane %v4031_v10, 4 }
 0xa53   : > { %v3881_v34 = vadd.f32 %v3880_v17, %v3879_v7  ;;  %v4049_v48 = vmul.f32 %v4048_v4, %v8064_v19 }
 0xa54   : > { %v4041_v35 = vsel %vm547_vm4, %v4040_v50, %v3806_v25  ;;  %v4033_v56 = vadd.f32 %v4032_v52, %v4031_v10 }
 0xa55   : > { %v3882_v57 = vrot.slane %v3881_v34, 1 }
 0xa56   : > { %v4034_v22 = vrot.slane %v4033_v56, 2 }
 0xa57   : > { %v3883_v6 = vadd.f32 %v3882_v57, %v3881_v34 }
 0xa58   : > { %v4035_v15 = vadd.f32 %v4034_v22, %v4033_v56 }
 0xa59   : > { %v4042_v36 = vsel %vm2145_vm10, %v4041_v35, %v3883_v6 }
 0xa5a   : > { %v4043_v18 = vsel %vm2147_vm11, %v4042_v36, %v3960_v12  ;;  %v4036_v5 = vrot.slane %v4035_v15, 1 }
 0xa5c   : > { %v4037_v37 = vadd.f32 %v4036_v5, %v4035_v15 }
 0xa5e   : > { %v4044_v60 = vsel %vm2149_vm12, %v4043_v18, %v4037_v37 }
 0xa5f   : > { %v4050_v21 = vadd.f32 %v4049_v48, %v4044_v60 }
 0xa61   : > { %v4058_v13 = vmul.f32 %v4057_v58, %v4050_v21 }
 0xa63   : > { %v4059_v16 = vpack.c.bf16 %v4058_v13, %v4058_v13 }
 0xa65   : > { %4454 = vmatmul.mubr.msk.bf16.vlgmr.msra.gmra.mxu0 %vm590_vm5, %v4059_v16 }
 0xb25   : > { %v4121_v44 = vpop.f32.mrf.mxu0 }
 0xb26   : > { %v4122_v38 = vadd.f32 %v4121_v44, %v8065_v23 }
 0xb27   : > { %v4455_v24 = vpop.f32.mrf.mxu0 }
 0xb28   : > { %4127 = vst.msk [vmem:[%s269_s23] sm:$0xff] %vm392_vm2, %v4122_v38 }
 0xb29   : > { %v4124_v55 = vpop.f32.mrf.mxu0 }
 0xb2a   : > { %5086 = shalt.err (!%p5083_p3)
}
 0xb2b   : > { %s5087_s18 = scalar_lea.hbm %s7684_s13, 128  ;;  %s5091_s21 = scalar_lea.hbm %s7733_s7, 256 }
 0xb2c   : > { %p5088_p4 = scmp.ne.s32.totalorder %s7684_s13, %s5087_s18  ;;  %p5092_p9 = scmp.lt.s32.totalorder %s7684_s13, %s7733_s7 }
 0xb2d   : > { %p5093_p10 = scmp.lt.s32.totalorder %s5091_s21, %s5087_s18 }
 0xb2e   : > { %p5089_p7 = pnand %p5088_p4, %p5220_p5 }
 0xb2f   : > { %p5094_p11 = por %p5093_p10, %p5092_p9 }
 0xb30   : > { %p5090_p8 = pneg %p5089_p7 }
 0xb32   : > { %p5095_p12 = pnand %p5094_p11, %p5090_p8 }
 0xb34   : > { %5098 = shalt.err (!%p5095_p12)
}
 0xb35   : > { %4457 = dma.vmem_to_hbm [thread:$0]  (%p5220_p5), %s7686_s29, 128, %s7684_s13, %s4129_s28   ;;  %v4456_v39 = vpop.f32.mrf.mxu0 }
 0xb36 PF: > { %p4463_p13 = scmp.ge.s32.totalorder %s5133_s27, 2  ;;  %s4154_s8 = sand.u32 1, %s5121_s24  }
 0xb37   : > { %s4155_s9 = scalar_lea.sflag [#allocation3], %s4154_s8 }
 0xb38   : > { %p4460_p0 = pnand %p4463_p13, %p5224_p6 }
 0xb3a   : > { %p4461_p1 = pneg %p4460_p0 }
 0xb3c   : > { %5116 = dma.done.wait (%p4461_p1), %s4155_s9, 128  }
 0xb3d   : > { %5118 = vsyncadd (%p4461_p1), %s4155_s9, 4294967168  ;;  %p17_p2 = scmp.ge.s32.totalorder %s5207_s30, 4   ;;  %s8066_s24 = smov %s5125_s25 }
 0xb3e   : > { %s8067_s25 = smov %s5129_s26  ;;  %s8068_s26 = smov %s5218_s10 }
 0xb3f   : > { %s8069_s27 = smov %s5207_s30  ;;  %19 = sbr.rel (!%p17_p2) target bundleno = 3 (0x3), region = 83 }
 0xb44   :  { %4160 = vsyncpa [#allocation3], 1 }
 0xb45   :  { %4162 = vsyncpa [#allocation3 + $0x1], 1 }

</bundles_post_ra>
